<compile_context>
chip_gen: v7x
topology: tpu7x:2x2x1
jax: 0.10.0
libtpu: 0.0.40
codegen_flags: <defaults>
</compile_context>

<pallas_src>
import functools

import jax
import jax.numpy as jnp
from jax.experimental import pallas as pl
from jax.experimental.pallas import tpu as pltpu

# ---- hyperparameters from the PyTorch spec ----
BATCH = 2
SEQ = 10
EMBED = 512
NUM_HEADS = 8
HEAD_DIM = EMBED // NUM_HEADS          # 64
SCALE = 1.0 / (HEAD_DIM ** 0.5)        # forward divides scores by head_dim**0.5


def mha_kernel(x_ref, wqkv_ref, bqkv_ref, wo_ref, bo_ref, y_ref, attn_ref, *, bb):
    """Processes `bb` batch elements; all weights resident in VMEM."""
    # Merge the bb batch elements into one (bb*S, D) activation slab.
    if bb == 1:
        x = x_ref[0]
    else:
        x = jnp.concatenate([x_ref[b] for b in range(bb)], axis=0)
    x = x.astype(jnp.bfloat16)

    # ---- fused Q/K/V projection: one MXU weight sequence instead of three ----
    qkv = jnp.dot(x, wqkv_ref[...], preferred_element_type=jnp.float32)
    qkv = qkv + bqkv_ref[...]                       # (bb*S, 3D), f32

    # ---- build head-batched operands (bb*H, S, head_dim) ----
    def gather_heads(col_off):
        tiles = []
        for b in range(bb):
            for h in range(NUM_HEADS):
                r0 = b * SEQ
                c0 = col_off + h * HEAD_DIM
                tiles.append(qkv[r0:r0 + SEQ, c0:c0 + HEAD_DIM])
        return jnp.stack(tiles, axis=0).astype(jnp.bfloat16)

    qh = gather_heads(0)              # already scaled by 1/sqrt(head_dim)
    kh = gather_heads(EMBED)
    vh = gather_heads(2 * EMBED)

    # ---- batched attention over all bb*NUM_HEADS heads at once ----
    s = jnp.einsum("bqd,bkd->bqk", qh, kh, preferred_element_type=jnp.float32)
    s = s - jnp.max(s, axis=-1, keepdims=True)
    e = jnp.exp(s)
    p = e * pl.reciprocal(jnp.sum(e, axis=-1, keepdims=True), approx=True)

    # Packed writeback of the attention probabilities (one store per batch elem).
    for b in range(bb):
        attn_ref[b] = p[b * NUM_HEADS:(b + 1) * NUM_HEADS]

    ctx = jnp.einsum("bqk,bkd->bqd", p.astype(jnp.bfloat16), vh,
                     preferred_element_type=jnp.float32)      # (bb*H, S, hd)

    # ---- re-pack heads + output projection ----
    for b in range(bb):
        ctx_b = jnp.concatenate(
            [ctx[b * NUM_HEADS + h] for h in range(NUM_HEADS)], axis=-1)
        out_b = jnp.dot(ctx_b.astype(jnp.bfloat16), wo_ref[...],
                        preferred_element_type=jnp.float32) + bo_ref[...]
        y_ref[b] = out_b


@functools.partial(jax.jit, static_argnames=("bb",))
def mha_forward(x, wqkv, bqkv, wo, bo, *, bb):
    B, S, D = x.shape
    kernel = functools.partial(mha_kernel, bb=bb)
    wfull = lambda shape: pl.BlockSpec(shape, lambda b: (0,) * len(shape))

    grid_spec = pltpu.PrefetchScalarGridSpec(
        num_scalar_prefetch=0,
        grid=(B // bb,),
        in_specs=[
            pl.BlockSpec((bb, S, D), lambda b: (b, 0, 0)),      # x
            wfull((D, 3 * D)), wfull((1, 3 * D)),               # Wqkv, bqkv
            wfull((D, D)), wfull((1, D)),                       # Wo, bo
        ],
        out_specs=[
            pl.BlockSpec((bb, S, D), lambda b: (b, 0, 0)),                  # out
            pl.BlockSpec((bb, NUM_HEADS, S, S), lambda b: (b, 0, 0, 0)),    # attn
        ],
    )
    return pl.pallas_call(
        kernel,
        out_shape=(
            jax.ShapeDtypeStruct((B, S, D), jnp.float32),
            jax.ShapeDtypeStruct((B, NUM_HEADS, S, S), jnp.float32),
        ),
        grid_spec=grid_spec,
        compiler_params=pltpu.CompilerParams(
            dimension_semantics=("parallel",)),
    )(x, wqkv, bqkv, wo, bo)


def init_params(key):
    """PyTorch-style nn.Linear init; weights stored as (in, out)."""
    def linear(key, fan_in, fan_out):
        kw, kb = jax.random.split(key)
        bound = 1.0 / (fan_in ** 0.5)
        w = jax.random.uniform(kw, (fan_in, fan_out), jnp.float32, -bound, bound)
        b = jax.random.uniform(kb, (1, fan_out), jnp.float32, -bound, bound)
        return w, b
    keys = jax.random.split(key, 4)
    wq, bq = linear(keys[0], EMBED, EMBED)
    wk, bk = linear(keys[1], EMBED, EMBED)
    wv, bv = linear(keys[2], EMBED, EMBED)
    wo, bo = linear(keys[3], EMBED, EMBED)
    return wq, bq, wk, bk, wv, bv, wo, bo


def prepare_params(params):
    """Fuse Q/K/V weights, fold the score scale into Q, cast weights to bf16."""
    wq, bq, wk, bk, wv, bv, wo, bo = params
    wqkv = jnp.concatenate([wq * SCALE, wk, wv], axis=1).astype(jnp.bfloat16)
    bqkv = jnp.concatenate([bq * SCALE, bk, bv], axis=1)          # f32
    return wqkv, bqkv, wo.astype(jnp.bfloat16), bo


def reference(x, wqkv, bqkv, wo, bo):
    """Pure-JAX reference of the same (bf16-weight, f32-accumulate) forward."""
    B, S, D = x.shape
    qkv = jnp.einsum("bsd,df->bsf", x.astype(jnp.bfloat16), wqkv,
                     preferred_element_type=jnp.float32) + bqkv
    q, k, v = qkv[..., :D], qkv[..., D:2 * D], qkv[..., 2 * D:]

    def heads(t):
        t = t.reshape(B, S, NUM_HEADS, HEAD_DIM).transpose(0, 2, 1, 3)
        return t.astype(jnp.bfloat16)

    qh, kh, vh = heads(q), heads(k), heads(v)
    scores = jnp.einsum("bhqd,bhkd->bhqk", qh, kh,
                        preferred_element_type=jnp.float32)
    attn = jax.nn.softmax(scores, axis=-1)
    ctx = jnp.einsum("bhqk,bhkd->bhqd", attn.astype(jnp.bfloat16), vh,
                     preferred_element_type=jnp.float32)
    ctx = ctx.transpose(0, 2, 1, 3).reshape(B, S, D)
    out = jnp.einsum("bsd,df->bsf", ctx.astype(jnp.bfloat16), wo,
                     preferred_element_type=jnp.float32) + bo
    return out, attn


def pick_batch_block(batch):
    """v7x (2 TensorCores): one batch element per core via the parallel grid.
    Single-TC chips (v5e/v6e): fuse the whole batch into one grid step."""
    try:
        kind = jax.devices()[0].device_kind.lower()
    except Exception:
        kind = ""
    if ("v7" in kind or "7x" in kind) and batch % 2 == 0:
        return 1
    return batch


if __name__ == "__main__":
    key = jax.random.PRNGKey(0)
    kx, kp = jax.random.split(key)
    x = jax.random.normal(kx, (BATCH, SEQ, EMBED), jnp.float32)
    raw_params = init_params(kp)
    wqkv, bqkv, wo, bo = prepare_params(raw_params)

    bb = pick_batch_block(BATCH)
    y, attn = mha_forward(x, wqkv, bqkv, wo, bo, bb=bb)
    jax.block_until_ready((y, attn))

    y_ref, attn_ref = reference(x, wqkv, bqkv, wo, bo)
    assert y.shape == (BATCH, SEQ, EMBED)
    assert attn.shape == (BATCH, NUM_HEADS, SEQ, SEQ)
    assert jnp.allclose(attn, attn_ref, atol=2e-3, rtol=2e-3), "attn mismatch"
    assert jnp.allclose(y, y_ref, atol=5e-3, rtol=5e-3), "output mismatch"

    print("KERNEL_OK")
</pallas_src>

<mosaic_0001>
module attributes {stable_mosaic.version = 11 : i64} {
  func.func @mha_kernel(%arg0: i32, %arg1: memref<2x10x512xf32, #tpu.memory_space<vmem>>, %arg2: memref<512x1536xbf16, #tpu.memory_space<vmem>>, %arg3: memref<1x1536xf32, #tpu.memory_space<vmem>>, %arg4: memref<512x512xbf16, #tpu.memory_space<vmem>>, %arg5: memref<1x512xf32, #tpu.memory_space<vmem>>, %arg6: memref<2x10x512xf32, #tpu.memory_space<vmem>>, %arg7: memref<2x8x10x10xf32, #tpu.memory_space<vmem>>) attributes {dimension_semantics = [#tpu.dimension_semantics<parallel>], iteration_bounds = array<i64: 1>, scalar_prefetch = 0 : i64, scratch_operands = 0 : i64, tpu.core_type = #tpu.core_type<tc>, window_params = [{transform_indices = @transform_0, window_bounds = array<i64: 2, 10, 512>}, {pipeline_mode = #tpu.pipeline_mode<synchronous>, transform_indices = @transform_1, window_bounds = array<i64: 512, 1536>}, {pipeline_mode = #tpu.pipeline_mode<synchronous>, transform_indices = @transform_2, window_bounds = array<i64: 1, 1536>}, {pipeline_mode = #tpu.pipeline_mode<synchronous>, transform_indices = @transform_3, window_bounds = array<i64: 512, 512>}, {pipeline_mode = #tpu.pipeline_mode<synchronous>, transform_indices = @transform_4, window_bounds = array<i64: 1, 512>}, {transform_indices = @transform_5, window_bounds = array<i64: 2, 10, 512>}, {transform_indices = @transform_6, window_bounds = array<i64: 2, 8, 10, 10>}]} {
    %c0 = arith.constant 0 : index
    %c0_0 = arith.constant 0 : index
    %c0_1 = arith.constant 0 : index
    %0 = vector.load %arg1[%c0, %c0_0, %c0_1] : memref<2x10x512xf32, #tpu.memory_space<vmem>>, vector<1x10x512xf32>
    %1 = vector.shape_cast %0 : vector<1x10x512xf32> to vector<10x512xf32>
    %c1 = arith.constant 1 : index
    %c0_2 = arith.constant 0 : index
    %c0_3 = arith.constant 0 : index
    %2 = vector.load %arg1[%c1, %c0_2, %c0_3] : memref<2x10x512xf32, #tpu.memory_space<vmem>>, vector<1x10x512xf32>
    %3 = vector.shape_cast %2 : vector<1x10x512xf32> to vector<10x512xf32>
    %4 = tpu.concatenate %1, %3 in 0 : vector<10x512xf32>, vector<10x512xf32> -> vector<20x512xf32>
    %5 = arith.truncf %4 : vector<20x512xf32> to vector<20x512xbf16>
    %c0_4 = arith.constant 0 : index
    %c0_5 = arith.constant 0 : index
    %6 = vector.load %arg2[%c0_4, %c0_5] : memref<512x1536xbf16, #tpu.memory_space<vmem>>, vector<512x1536xbf16>
    %cst = arith.constant dense<0.000000e+00> : vector<20x1536xf32>
    %7 = tpu.matmul %5, %6, %cst {dimension_numbers = #tpu.dot_dimension_numbers<[1], [0], [0], [1], [0, 0, 1, 1], [], []>} : vector<20x512xbf16>, vector<512x1536xbf16>, vector<20x1536xf32> -> vector<20x1536xf32>
    %c0_6 = arith.constant 0 : index
    %c0_7 = arith.constant 0 : index
    %8 = vector.load %arg3[%c0_6, %c0_7] : memref<1x1536xf32, #tpu.memory_space<vmem>>, vector<1x1536xf32>
    %9 = vector.broadcast %8 : vector<1x1536xf32> to vector<20x1536xf32>
    %10 = arith.addf %7, %9 : vector<20x1536xf32>
    %11 = vector.extract_strided_slice %10 {offsets = [0, 0], sizes = [10, 64], strides = [1, 1]} : vector<20x1536xf32> to vector<10x64xf32>
    %12 = vector.extract_strided_slice %10 {offsets = [0, 64], sizes = [10, 64], strides = [1, 1]} : vector<20x1536xf32> to vector<10x64xf32>
    %13 = vector.extract_strided_slice %10 {offsets = [0, 128], sizes = [10, 64], strides = [1, 1]} : vector<20x1536xf32> to vector<10x64xf32>
    %14 = vector.extract_strided_slice %10 {offsets = [0, 192], sizes = [10, 64], strides = [1, 1]} : vector<20x1536xf32> to vector<10x64xf32>
    %15 = vector.extract_strided_slice %10 {offsets = [0, 256], sizes = [10, 64], strides = [1, 1]} : vector<20x1536xf32> to vector<10x64xf32>
    %16 = vector.extract_strided_slice %10 {offsets = [0, 320], sizes = [10, 64], strides = [1, 1]} : vector<20x1536xf32> to vector<10x64xf32>
    %17 = vector.extract_strided_slice %10 {offsets = [0, 384], sizes = [10, 64], strides = [1, 1]} : vector<20x1536xf32> to vector<10x64xf32>
    %18 = vector.extract_strided_slice %10 {offsets = [0, 448], sizes = [10, 64], strides = [1, 1]} : vector<20x1536xf32> to vector<10x64xf32>
    %19 = vector.extract_strided_slice %10 {offsets = [10, 0], sizes = [10, 64], strides = [1, 1]} : vector<20x1536xf32> to vector<10x64xf32>
    %20 = vector.extract_strided_slice %10 {offsets = [10, 64], sizes = [10, 64], strides = [1, 1]} : vector<20x1536xf32> to vector<10x64xf32>
    %21 = vector.extract_strided_slice %10 {offsets = [10, 128], sizes = [10, 64], strides = [1, 1]} : vector<20x1536xf32> to vector<10x64xf32>
    %22 = vector.extract_strided_slice %10 {offsets = [10, 192], sizes = [10, 64], strides = [1, 1]} : vector<20x1536xf32> to vector<10x64xf32>
    %23 = vector.extract_strided_slice %10 {offsets = [10, 256], sizes = [10, 64], strides = [1, 1]} : vector<20x1536xf32> to vector<10x64xf32>
    %24 = vector.extract_strided_slice %10 {offsets = [10, 320], sizes = [10, 64], strides = [1, 1]} : vector<20x1536xf32> to vector<10x64xf32>
    %25 = vector.extract_strided_slice %10 {offsets = [10, 384], sizes = [10, 64], strides = [1, 1]} : vector<20x1536xf32> to vector<10x64xf32>
    %26 = vector.extract_strided_slice %10 {offsets = [10, 448], sizes = [10, 64], strides = [1, 1]} : vector<20x1536xf32> to vector<10x64xf32>
    %27 = vector.shape_cast %11 : vector<10x64xf32> to vector<1x10x64xf32>
    %28 = vector.shape_cast %12 : vector<10x64xf32> to vector<1x10x64xf32>
    %29 = vector.shape_cast %13 : vector<10x64xf32> to vector<1x10x64xf32>
    %30 = vector.shape_cast %14 : vector<10x64xf32> to vector<1x10x64xf32>
    %31 = vector.shape_cast %15 : vector<10x64xf32> to vector<1x10x64xf32>
    %32 = vector.shape_cast %16 : vector<10x64xf32> to vector<1x10x64xf32>
    %33 = vector.shape_cast %17 : vector<10x64xf32> to vector<1x10x64xf32>
    %34 = vector.shape_cast %18 : vector<10x64xf32> to vector<1x10x64xf32>
    %35 = vector.shape_cast %19 : vector<10x64xf32> to vector<1x10x64xf32>
    %36 = vector.shape_cast %20 : vector<10x64xf32> to vector<1x10x64xf32>
    %37 = vector.shape_cast %21 : vector<10x64xf32> to vector<1x10x64xf32>
    %38 = vector.shape_cast %22 : vector<10x64xf32> to vector<1x10x64xf32>
    %39 = vector.shape_cast %23 : vector<10x64xf32> to vector<1x10x64xf32>
    %40 = vector.shape_cast %24 : vector<10x64xf32> to vector<1x10x64xf32>
    %41 = vector.shape_cast %25 : vector<10x64xf32> to vector<1x10x64xf32>
    %42 = vector.shape_cast %26 : vector<10x64xf32> to vector<1x10x64xf32>
    %43 = tpu.concatenate %27, %28, %29, %30, %31, %32, %33, %34, %35, %36, %37, %38, %39, %40, %41, %42 in 0 : vector<1x10x64xf32>, vector<1x10x64xf32>, vector<1x10x64xf32>, vector<1x10x64xf32>, vector<1x10x64xf32>, vector<1x10x64xf32>, vector<1x10x64xf32>, vector<1x10x64xf32>, vector<1x10x64xf32>, vector<1x10x64xf32>, vector<1x10x64xf32>, vector<1x10x64xf32>, vector<1x10x64xf32>, vector<1x10x64xf32>, vector<1x10x64xf32>, vector<1x10x64xf32> -> vector<16x10x64xf32>
    %44 = arith.truncf %43 : vector<16x10x64xf32> to vector<16x10x64xbf16>
    %45 = vector.extract_strided_slice %10 {offsets = [0, 512], sizes = [10, 64], strides = [1, 1]} : vector<20x1536xf32> to vector<10x64xf32>
    %46 = vector.extract_strided_slice %10 {offsets = [0, 576], sizes = [10, 64], strides = [1, 1]} : vector<20x1536xf32> to vector<10x64xf32>
    %47 = vector.extract_strided_slice %10 {offsets = [0, 640], sizes = [10, 64], strides = [1, 1]} : vector<20x1536xf32> to vector<10x64xf32>
    %48 = vector.extract_strided_slice %10 {offsets = [0, 704], sizes = [10, 64], strides = [1, 1]} : vector<20x1536xf32> to vector<10x64xf32>
    %49 = vector.extract_strided_slice %10 {offsets = [0, 768], sizes = [10, 64], strides = [1, 1]} : vector<20x1536xf32> to vector<10x64xf32>
    %50 = vector.extract_strided_slice %10 {offsets = [0, 832], sizes = [10, 64], strides = [1, 1]} : vector<20x1536xf32> to vector<10x64xf32>
    %51 = vector.extract_strided_slice %10 {offsets = [0, 896], sizes = [10, 64], strides = [1, 1]} : vector<20x1536xf32> to vector<10x64xf32>
    %52 = vector.extract_strided_slice %10 {offsets = [0, 960], sizes = [10, 64], strides = [1, 1]} : vector<20x1536xf32> to vector<10x64xf32>
    %53 = vector.extract_strided_slice %10 {offsets = [10, 512], sizes = [10, 64], strides = [1, 1]} : vector<20x1536xf32> to vector<10x64xf32>
    %54 = vector.extract_strided_slice %10 {offsets = [10, 576], sizes = [10, 64], strides = [1, 1]} : vector<20x1536xf32> to vector<10x64xf32>
    %55 = vector.extract_strided_slice %10 {offsets = [10, 640], sizes = [10, 64], strides = [1, 1]} : vector<20x1536xf32> to vector<10x64xf32>
    %56 = vector.extract_strided_slice %10 {offsets = [10, 704], sizes = [10, 64], strides = [1, 1]} : vector<20x1536xf32> to vector<10x64xf32>
    %57 = vector.extract_strided_slice %10 {offsets = [10, 768], sizes = [10, 64], strides = [1, 1]} : vector<20x1536xf32> to vector<10x64xf32>
    %58 = vector.extract_strided_slice %10 {offsets = [10, 832], sizes = [10, 64], strides = [1, 1]} : vector<20x1536xf32> to vector<10x64xf32>
    %59 = vector.extract_strided_slice %10 {offsets = [10, 896], sizes = [10, 64], strides = [1, 1]} : vector<20x1536xf32> to vector<10x64xf32>
    %60 = vector.extract_strided_slice %10 {offsets = [10, 960], sizes = [10, 64], strides = [1, 1]} : vector<20x1536xf32> to vector<10x64xf32>
    %61 = vector.shape_cast %45 : vector<10x64xf32> to vector<1x10x64xf32>
    %62 = vector.shape_cast %46 : vector<10x64xf32> to vector<1x10x64xf32>
    %63 = vector.shape_cast %47 : vector<10x64xf32> to vector<1x10x64xf32>
    %64 = vector.shape_cast %48 : vector<10x64xf32> to vector<1x10x64xf32>
    %65 = vector.shape_cast %49 : vector<10x64xf32> to vector<1x10x64xf32>
    %66 = vector.shape_cast %50 : vector<10x64xf32> to vector<1x10x64xf32>
    %67 = vector.shape_cast %51 : vector<10x64xf32> to vector<1x10x64xf32>
    %68 = vector.shape_cast %52 : vector<10x64xf32> to vector<1x10x64xf32>
    %69 = vector.shape_cast %53 : vector<10x64xf32> to vector<1x10x64xf32>
    %70 = vector.shape_cast %54 : vector<10x64xf32> to vector<1x10x64xf32>
    %71 = vector.shape_cast %55 : vector<10x64xf32> to vector<1x10x64xf32>
    %72 = vector.shape_cast %56 : vector<10x64xf32> to vector<1x10x64xf32>
    %73 = vector.shape_cast %57 : vector<10x64xf32> to vector<1x10x64xf32>
    %74 = vector.shape_cast %58 : vector<10x64xf32> to vector<1x10x64xf32>
    %75 = vector.shape_cast %59 : vector<10x64xf32> to vector<1x10x64xf32>
    %76 = vector.shape_cast %60 : vector<10x64xf32> to vector<1x10x64xf32>
    %77 = tpu.concatenate %61, %62, %63, %64, %65, %66, %67, %68, %69, %70, %71, %72, %73, %74, %75, %76 in 0 : vector<1x10x64xf32>, vector<1x10x64xf32>, vector<1x10x64xf32>, vector<1x10x64xf32>, vector<1x10x64xf32>, vector<1x10x64xf32>, vector<1x10x64xf32>, vector<1x10x64xf32>, vector<1x10x64xf32>, vector<1x10x64xf32>, vector<1x10x64xf32>, vector<1x10x64xf32>, vector<1x10x64xf32>, vector<1x10x64xf32>, vector<1x10x64xf32>, vector<1x10x64xf32> -> vector<16x10x64xf32>
    %78 = arith.truncf %77 : vector<16x10x64xf32> to vector<16x10x64xbf16>
    %79 = vector.extract_strided_slice %10 {offsets = [0, 1024], sizes = [10, 64], strides = [1, 1]} : vector<20x1536xf32> to vector<10x64xf32>
    %80 = vector.extract_strided_slice %10 {offsets = [0, 1088], sizes = [10, 64], strides = [1, 1]} : vector<20x1536xf32> to vector<10x64xf32>
    %81 = vector.extract_strided_slice %10 {offsets = [0, 1152], sizes = [10, 64], strides = [1, 1]} : vector<20x1536xf32> to vector<10x64xf32>
    %82 = vector.extract_strided_slice %10 {offsets = [0, 1216], sizes = [10, 64], strides = [1, 1]} : vector<20x1536xf32> to vector<10x64xf32>
    %83 = vector.extract_strided_slice %10 {offsets = [0, 1280], sizes = [10, 64], strides = [1, 1]} : vector<20x1536xf32> to vector<10x64xf32>
    %84 = vector.extract_strided_slice %10 {offsets = [0, 1344], sizes = [10, 64], strides = [1, 1]} : vector<20x1536xf32> to vector<10x64xf32>
    %85 = vector.extract_strided_slice %10 {offsets = [0, 1408], sizes = [10, 64], strides = [1, 1]} : vector<20x1536xf32> to vector<10x64xf32>
    %86 = vector.extract_strided_slice %10 {offsets = [0, 1472], sizes = [10, 64], strides = [1, 1]} : vector<20x1536xf32> to vector<10x64xf32>
    %87 = vector.extract_strided_slice %10 {offsets = [10, 1024], sizes = [10, 64], strides = [1, 1]} : vector<20x1536xf32> to vector<10x64xf32>
    %88 = vector.extract_strided_slice %10 {offsets = [10, 1088], sizes = [10, 64], strides = [1, 1]} : vector<20x1536xf32> to vector<10x64xf32>
    %89 = vector.extract_strided_slice %10 {offsets = [10, 1152], sizes = [10, 64], strides = [1, 1]} : vector<20x1536xf32> to vector<10x64xf32>
    %90 = vector.extract_strided_slice %10 {offsets = [10, 1216], sizes = [10, 64], strides = [1, 1]} : vector<20x1536xf32> to vector<10x64xf32>
    %91 = vector.extract_strided_slice %10 {offsets = [10, 1280], sizes = [10, 64], strides = [1, 1]} : vector<20x1536xf32> to vector<10x64xf32>
    %92 = vector.extract_strided_slice %10 {offsets = [10, 1344], sizes = [10, 64], strides = [1, 1]} : vector<20x1536xf32> to vector<10x64xf32>
    %93 = vector.extract_strided_slice %10 {offsets = [10, 1408], sizes = [10, 64], strides = [1, 1]} : vector<20x1536xf32> to vector<10x64xf32>
    %94 = vector.extract_strided_slice %10 {offsets = [10, 1472], sizes = [10, 64], strides = [1, 1]} : vector<20x1536xf32> to vector<10x64xf32>
    %95 = vector.shape_cast %79 : vector<10x64xf32> to vector<1x10x64xf32>
    %96 = vector.shape_cast %80 : vector<10x64xf32> to vector<1x10x64xf32>
    %97 = vector.shape_cast %81 : vector<10x64xf32> to vector<1x10x64xf32>
    %98 = vector.shape_cast %82 : vector<10x64xf32> to vector<1x10x64xf32>
    %99 = vector.shape_cast %83 : vector<10x64xf32> to vector<1x10x64xf32>
    %100 = vector.shape_cast %84 : vector<10x64xf32> to vector<1x10x64xf32>
    %101 = vector.shape_cast %85 : vector<10x64xf32> to vector<1x10x64xf32>
    %102 = vector.shape_cast %86 : vector<10x64xf32> to vector<1x10x64xf32>
    %103 = vector.shape_cast %87 : vector<10x64xf32> to vector<1x10x64xf32>
    %104 = vector.shape_cast %88 : vector<10x64xf32> to vector<1x10x64xf32>
    %105 = vector.shape_cast %89 : vector<10x64xf32> to vector<1x10x64xf32>
    %106 = vector.shape_cast %90 : vector<10x64xf32> to vector<1x10x64xf32>
    %107 = vector.shape_cast %91 : vector<10x64xf32> to vector<1x10x64xf32>
    %108 = vector.shape_cast %92 : vector<10x64xf32> to vector<1x10x64xf32>
    %109 = vector.shape_cast %93 : vector<10x64xf32> to vector<1x10x64xf32>
    %110 = vector.shape_cast %94 : vector<10x64xf32> to vector<1x10x64xf32>
    %111 = tpu.concatenate %95, %96, %97, %98, %99, %100, %101, %102, %103, %104, %105, %106, %107, %108, %109, %110 in 0 : vector<1x10x64xf32>, vector<1x10x64xf32>, vector<1x10x64xf32>, vector<1x10x64xf32>, vector<1x10x64xf32>, vector<1x10x64xf32>, vector<1x10x64xf32>, vector<1x10x64xf32>, vector<1x10x64xf32>, vector<1x10x64xf32>, vector<1x10x64xf32>, vector<1x10x64xf32>, vector<1x10x64xf32>, vector<1x10x64xf32>, vector<1x10x64xf32>, vector<1x10x64xf32> -> vector<16x10x64xf32>
    %112 = arith.truncf %111 : vector<16x10x64xf32> to vector<16x10x64xbf16>
    "tpu.trace_start"() <{level = 10 : i32, message = "bqd,bkd->bqk"}> : () -> ()
    %cst_8 = arith.constant dense<0.000000e+00> : vector<16x10x10xf32>
    %113 = tpu.matmul %44, %78, %cst_8 {dimension_numbers = #tpu.dot_dimension_numbers<[2], [2], [1], [1], [0, 0, 0, 1, 1, 1], [0], [0]>} : vector<16x10x64xbf16>, vector<16x10x64xbf16>, vector<16x10x10xf32> -> vector<16x10x10xf32>
    "tpu.trace_stop"() : () -> ()
    %cst_9 = arith.constant dense<0xFF800000> : vector<16x10xf32>
    %114 = vector.multi_reduction <maximumf>, %113, %cst_9 [2] : vector<16x10x10xf32> to vector<16x10xf32>
    %115 = vector.shape_cast %114 : vector<16x10xf32> to vector<16x10x1xf32>
    %116 = vector.broadcast %115 : vector<16x10x1xf32> to vector<16x10x10xf32>
    %117 = arith.subf %113, %116 : vector<16x10x10xf32>
    %118 = math.exp %117 : vector<16x10x10xf32>
    %cst_10 = arith.constant dense<0.000000e+00> : vector<16x10xf32>
    %119 = vector.multi_reduction <add>, %118, %cst_10 [2] : vector<16x10x10xf32> to vector<16x10xf32>
    %120 = vector.shape_cast %119 : vector<16x10xf32> to vector<16x10x1xf32>
    %121 = tpu.reciprocal %120 {approx = true} : vector<16x10x1xf32> -> vector<16x10x1xf32>
    %122 = vector.broadcast %121 : vector<16x10x1xf32> to vector<16x10x10xf32>
    %123 = arith.mulf %118, %122 : vector<16x10x10xf32>
    %124 = vector.extract_strided_slice %123 {offsets = [0, 0, 0], sizes = [8, 10, 10], strides = [1, 1, 1]} : vector<16x10x10xf32> to vector<8x10x10xf32>
    %c0_11 = arith.constant 0 : index
    %c0_12 = arith.constant 0 : index
    %c0_13 = arith.constant 0 : index
    %c0_14 = arith.constant 0 : index
    %125 = vector.load %arg7[%c0_11, %c0_12, %c0_13, %c0_14] : memref<2x8x10x10xf32, #tpu.memory_space<vmem>>, vector<1x8x10x10xf32>
    %126 = vector.shape_cast %125 : vector<1x8x10x10xf32> to vector<8x10x10xf32>
    %127 = vector.shape_cast %124 : vector<8x10x10xf32> to vector<1x8x10x10xf32>
    tpu.vector_store %arg7[%c0_11, %c0_12, %c0_13, %c0_14], %127 {strides = array<i32>} : memref<2x8x10x10xf32, #tpu.memory_space<vmem>>, vector<1x8x10x10xf32>,
    %128 = vector.extract_strided_slice %123 {offsets = [8, 0, 0], sizes = [8, 10, 10], strides = [1, 1, 1]} : vector<16x10x10xf32> to vector<8x10x10xf32>
    %c1_15 = arith.constant 1 : index
    %c0_16 = arith.constant 0 : index
    %c0_17 = arith.constant 0 : index
    %c0_18 = arith.constant 0 : index
    %129 = vector.load %arg7[%c1_15, %c0_16, %c0_17, %c0_18] : memref<2x8x10x10xf32, #tpu.memory_space<vmem>>, vector<1x8x10x10xf32>
    %130 = vector.shape_cast %129 : vector<1x8x10x10xf32> to vector<8x10x10xf32>
    %131 = vector.shape_cast %128 : vector<8x10x10xf32> to vector<1x8x10x10xf32>
    tpu.vector_store %arg7[%c1_15, %c0_16, %c0_17, %c0_18], %131 {strides = array<i32>} : memref<2x8x10x10xf32, #tpu.memory_space<vmem>>, vector<1x8x10x10xf32>,
    %132 = arith.truncf %123 : vector<16x10x10xf32> to vector<16x10x10xbf16>
    "tpu.trace_start"() <{level = 10 : i32, message = "bqk,bkd->bqd"}> : () -> ()
    %cst_19 = arith.constant dense<0.000000e+00> : vector<16x10x64xf32>
    %133 = tpu.matmul %132, %112, %cst_19 {dimension_numbers = #tpu.dot_dimension_numbers<[2], [1], [1], [2], [0, 0, 0, 1, 1, 2], [0], [0]>} : vector<16x10x10xbf16>, vector<16x10x64xbf16>, vector<16x10x64xf32> -> vector<16x10x64xf32>
    "tpu.trace_stop"() : () -> ()
    %134 = vector.extract_strided_slice %133 {offsets = [0, 0, 0], sizes = [1, 10, 64], strides = [1, 1, 1]} : vector<16x10x64xf32> to vector<1x10x64xf32>
    %135 = vector.shape_cast %134 : vector<1x10x64xf32> to vector<10x64xf32>
    %136 = vector.extract_strided_slice %133 {offsets = [1, 0, 0], sizes = [1, 10, 64], strides = [1, 1, 1]} : vector<16x10x64xf32> to vector<1x10x64xf32>
    %137 = vector.shape_cast %136 : vector<1x10x64xf32> to vector<10x64xf32>
    %138 = vector.extract_strided_slice %133 {offsets = [2, 0, 0], sizes = [1, 10, 64], strides = [1, 1, 1]} : vector<16x10x64xf32> to vector<1x10x64xf32>
    %139 = vector.shape_cast %138 : vector<1x10x64xf32> to vector<10x64xf32>
    %140 = vector.extract_strided_slice %133 {offsets = [3, 0, 0], sizes = [1, 10, 64], strides = [1, 1, 1]} : vector<16x10x64xf32> to vector<1x10x64xf32>
    %141 = vector.shape_cast %140 : vector<1x10x64xf32> to vector<10x64xf32>
    %142 = vector.extract_strided_slice %133 {offsets = [4, 0, 0], sizes = [1, 10, 64], strides = [1, 1, 1]} : vector<16x10x64xf32> to vector<1x10x64xf32>
    %143 = vector.shape_cast %142 : vector<1x10x64xf32> to vector<10x64xf32>
    %144 = vector.extract_strided_slice %133 {offsets = [5, 0, 0], sizes = [1, 10, 64], strides = [1, 1, 1]} : vector<16x10x64xf32> to vector<1x10x64xf32>
    %145 = vector.shape_cast %144 : vector<1x10x64xf32> to vector<10x64xf32>
    %146 = vector.extract_strided_slice %133 {offsets = [6, 0, 0], sizes = [1, 10, 64], strides = [1, 1, 1]} : vector<16x10x64xf32> to vector<1x10x64xf32>
    %147 = vector.shape_cast %146 : vector<1x10x64xf32> to vector<10x64xf32>
    %148 = vector.extract_strided_slice %133 {offsets = [7, 0, 0], sizes = [1, 10, 64], strides = [1, 1, 1]} : vector<16x10x64xf32> to vector<1x10x64xf32>
    %149 = vector.shape_cast %148 : vector<1x10x64xf32> to vector<10x64xf32>
    %150 = tpu.concatenate %135, %137, %139, %141, %143, %145, %147, %149 in 1 : vector<10x64xf32>, vector<10x64xf32>, vector<10x64xf32>, vector<10x64xf32>, vector<10x64xf32>, vector<10x64xf32>, vector<10x64xf32>, vector<10x64xf32> -> vector<10x512xf32>
    %151 = arith.truncf %150 : vector<10x512xf32> to vector<10x512xbf16>
    %c0_20 = arith.constant 0 : index
    %c0_21 = arith.constant 0 : index
    %152 = vector.load %arg4[%c0_20, %c0_21] : memref<512x512xbf16, #tpu.memory_space<vmem>>, vector<512x512xbf16>
    %cst_22 = arith.constant dense<0.000000e+00> : vector<10x512xf32>
    %153 = tpu.matmul %151, %152, %cst_22 {dimension_numbers = #tpu.dot_dimension_numbers<[1], [0], [0], [1], [0, 0, 1, 1], [], []>} : vector<10x512xbf16>, vector<512x512xbf16>, vector<10x512xf32> -> vector<10x512xf32>
    %c0_23 = arith.constant 0 : index
    %c0_24 = arith.constant 0 : index
    %154 = vector.load %arg5[%c0_23, %c0_24] : memref<1x512xf32, #tpu.memory_space<vmem>>, vector<1x512xf32>
    %155 = vector.broadcast %154 : vector<1x512xf32> to vector<10x512xf32>
    %156 = arith.addf %153, %155 : vector<10x512xf32>
    %c0_25 = arith.constant 0 : index
    %c0_26 = arith.constant 0 : index
    %c0_27 = arith.constant 0 : index
    %157 = vector.load %arg6[%c0_25, %c0_26, %c0_27] : memref<2x10x512xf32, #tpu.memory_space<vmem>>, vector<1x10x512xf32>
    %158 = vector.shape_cast %157 : vector<1x10x512xf32> to vector<10x512xf32>
    %159 = vector.shape_cast %156 : vector<10x512xf32> to vector<1x10x512xf32>
    tpu.vector_store %arg6[%c0_25, %c0_26, %c0_27], %159 {strides = array<i32>} : memref<2x10x512xf32, #tpu.memory_space<vmem>>, vector<1x10x512xf32>,
    %160 = vector.extract_strided_slice %133 {offsets = [8, 0, 0], sizes = [1, 10, 64], strides = [1, 1, 1]} : vector<16x10x64xf32> to vector<1x10x64xf32>
    %161 = vector.shape_cast %160 : vector<1x10x64xf32> to vector<10x64xf32>
    %162 = vector.extract_strided_slice %133 {offsets = [9, 0, 0], sizes = [1, 10, 64], strides = [1, 1, 1]} : vector<16x10x64xf32> to vector<1x10x64xf32>
    %163 = vector.shape_cast %162 : vector<1x10x64xf32> to vector<10x64xf32>
    %164 = vector.extract_strided_slice %133 {offsets = [10, 0, 0], sizes = [1, 10, 64], strides = [1, 1, 1]} : vector<16x10x64xf32> to vector<1x10x64xf32>
    %165 = vector.shape_cast %164 : vector<1x10x64xf32> to vector<10x64xf32>
    %166 = vector.extract_strided_slice %133 {offsets = [11, 0, 0], sizes = [1, 10, 64], strides = [1, 1, 1]} : vector<16x10x64xf32> to vector<1x10x64xf32>
    %167 = vector.shape_cast %166 : vector<1x10x64xf32> to vector<10x64xf32>
    %168 = vector.extract_strided_slice %133 {offsets = [12, 0, 0], sizes = [1, 10, 64], strides = [1, 1, 1]} : vector<16x10x64xf32> to vector<1x10x64xf32>
    %169 = vector.shape_cast %168 : vector<1x10x64xf32> to vector<10x64xf32>
    %170 = vector.extract_strided_slice %133 {offsets = [13, 0, 0], sizes = [1, 10, 64], strides = [1, 1, 1]} : vector<16x10x64xf32> to vector<1x10x64xf32>
    %171 = vector.shape_cast %170 : vector<1x10x64xf32> to vector<10x64xf32>
    %172 = vector.extract_strided_slice %133 {offsets = [14, 0, 0], sizes = [1, 10, 64], strides = [1, 1, 1]} : vector<16x10x64xf32> to vector<1x10x64xf32>
    %173 = vector.shape_cast %172 : vector<1x10x64xf32> to vector<10x64xf32>
    %174 = vector.extract_strided_slice %133 {offsets = [15, 0, 0], sizes = [1, 10, 64], strides = [1, 1, 1]} : vector<16x10x64xf32> to vector<1x10x64xf32>
    %175 = vector.shape_cast %174 : vector<1x10x64xf32> to vector<10x64xf32>
    %176 = tpu.concatenate %161, %163, %165, %167, %169, %171, %173, %175 in 1 : vector<10x64xf32>, vector<10x64xf32>, vector<10x64xf32>, vector<10x64xf32>, vector<10x64xf32>, vector<10x64xf32>, vector<10x64xf32>, vector<10x64xf32> -> vector<10x512xf32>
    %177 = arith.truncf %176 : vector<10x512xf32> to vector<10x512xbf16>
    %c0_28 = arith.constant 0 : index
    %c0_29 = arith.constant 0 : index
    %178 = vector.load %arg4[%c0_28, %c0_29] : memref<512x512xbf16, #tpu.memory_space<vmem>>, vector<512x512xbf16>
    %cst_30 = arith.constant dense<0.000000e+00> : vector<10x512xf32>
    %179 = tpu.matmul %177, %178, %cst_30 {dimension_numbers = #tpu.dot_dimension_numbers<[1], [0], [0], [1], [0, 0, 1, 1], [], []>} : vector<10x512xbf16>, vector<512x512xbf16>, vector<10x512xf32> -> vector<10x512xf32>
    %c0_31 = arith.constant 0 : index
    %c0_32 = arith.constant 0 : index
    %180 = vector.load %arg5[%c0_31, %c0_32] : memref<1x512xf32, #tpu.memory_space<vmem>>, vector<1x512xf32>
    %181 = vector.broadcast %180 : vector<1x512xf32> to vector<10x512xf32>
    %182 = arith.addf %179, %181 : vector<10x512xf32>
    %c1_33 = arith.constant 1 : index
    %c0_34 = arith.constant 0 : index
    %c0_35 = arith.constant 0 : index
    %183 = vector.load %arg6[%c1_33, %c0_34, %c0_35] : memref<2x10x512xf32, #tpu.memory_space<vmem>>, vector<1x10x512xf32>
    %184 = vector.shape_cast %183 : vector<1x10x512xf32> to vector<10x512xf32>
    %185 = vector.shape_cast %182 : vector<10x512xf32> to vector<1x10x512xf32>
    tpu.vector_store %arg6[%c1_33, %c0_34, %c0_35], %185 {strides = array<i32>} : memref<2x10x512xf32, #tpu.memory_space<vmem>>, vector<1x10x512xf32>,
    return
  }
  func.func @transform_0(%arg0: i32) -> (i32, i32, i32) {
    %c0_i32 = arith.constant 0 : i32
    %c0_i32_0 = arith.constant 0 : i32
    %c0_i32_1 = arith.constant 0 : i32
    return %arg0, %c0_i32, %c0_i32_0 : i32, i32, i32
  }
  func.func @transform_1(%arg0: i32) -> (i32, i32) {
    %c0_i32 = arith.constant 0 : i32
    %c0_i32_0 = arith.constant 0 : i32
    %c0_i32_1 = arith.constant 0 : i32
    return %c0_i32, %c0_i32_0 : i32, i32
  }
  func.func @transform_2(%arg0: i32) -> (i32, i32) {
    %c0_i32 = arith.constant 0 : i32
    %c0_i32_0 = arith.constant 0 : i32
    %c0_i32_1 = arith.constant 0 : i32
    return %c0_i32, %c0_i32_0 : i32, i32
  }
  func.func @transform_3(%arg0: i32) -> (i32, i32) {
    %c0_i32 = arith.constant 0 : i32
    %c0_i32_0 = arith.constant 0 : i32
    %c0_i32_1 = arith.constant 0 : i32
    return %c0_i32, %c0_i32_0 : i32, i32
  }
  func.func @transform_4(%arg0: i32) -> (i32, i32) {
    %c0_i32 = arith.constant 0 : i32
    %c0_i32_0 = arith.constant 0 : i32
    %c0_i32_1 = arith.constant 0 : i32
    return %c0_i32, %c0_i32_0 : i32, i32
  }
  func.func @transform_5(%arg0: i32) -> (i32, i32, i32) {
    %c0_i32 = arith.constant 0 : i32
    %c0_i32_0 = arith.constant 0 : i32
    %c0_i32_1 = arith.constant 0 : i32
    return %arg0, %c0_i32, %c0_i32_0 : i32, i32, i32
  }
  func.func @transform_6(%arg0: i32) -> (i32, i32, i32, i32) {
    %c0_i32 = arith.constant 0 : i32
    %c0_i32_0 = arith.constant 0 : i32
    %c0_i32_1 = arith.constant 0 : i32
    %c0_i32_2 = arith.constant 0 : i32
    return %arg0, %c0_i32, %c0_i32_0, %c0_i32_1 : i32, i32, i32, i32
  }
}

</mosaic_0001>

<bundles_post_ra>
// kernel: mha_forward.1
= control target key start
LH: loop header
LB: loop body
LE: loop exit
PB: predicated region body
PF: predicated region fallthrough
CT: control target
= control target key end

     0   :  { %12 = vsyncpa [#allocation3], 0  ;;  %s11423_s0 = inlined_call_operand.vmem [shape: f32[2,10,512], index: 0, kind: input, shape index: {}]   ;;  %s11424_s1 = inlined_call_operand.hbm [shape: bf16[512,1536], index: 1, kind: input, shape index: {}]   ;;  %s11425_s2 = inlined_call_operand.hbm [shape: f32[1,1536], index: 2, kind: input, shape index: {}]   ;;  %s11426_s3 = inlined_call_operand.hbm [shape: bf16[512,512], index: 3, kind: input, shape index: {}]   ;;  %s11427_s4 = inlined_call_operand.hbm [shape: f32[1,512], index: 4, kind: input, shape index: {}]   ;;  %s11428_s5 = inlined_call_operand.vmem [shape: f32[2,10,512], index: 5, kind: output, shape index: {0}]   ;;  %s11429_s6 = inlined_call_operand.vmem [shape: f32[2,8,10,10], index: 6, kind: output, shape index: {1}]  }
   0x1   :  { %13 = vsyncpa [#allocation5], 0 }
   0x2   :  { %14 = vsyncpa [#allocation8], 0  ;;  %s9587_s21 = smov [#allocation4]   ;;  %s9588_s23 = smov [#allocation2]  }
   0x3   :  { %s35_s22 = sshll.u32 %s9587_s21, 4  ;;  %s22_s24 = sshll.u32 %s9588_s23, 4  ;;  %s36_s22 = int_to_ptr.vmem [resolvable:$true] %s35_s22  ;;  %s9633_s24 = int_to_ptr.vmem [resolvable:$true] %s22_s24 }
   0x4   :  { %s9493_s27 = scalar_lea.hbm %s11425_s2, 192 }
   0x5   :  { %p9494_p0 = scmp.ne.s32.totalorder %s11425_s2, %s9493_s27  ;;  %p9497_p1 = scmp.lt.u32.totalorder %s9493_s27, %s11425_s2 }
   0x7   :  { %p9499_p2 = pnand %p9497_p1, %p9494_p0 }
   0x9   :  { %9502 = shalt.err (!%p9499_p2)
}
   0xa   :  { %s9503_s8 = scalar_lea.vmem %s36_s22, 192  ;;  %p9508_p4 = scmp.lt.s32.totalorder %s36_s22, %s36_s22 }
   0xb   :  { %p9504_p3 = scmp.ne.s32.totalorder %s36_s22, %s9503_s8  ;;  %p9509_p5 = scmp.lt.s32.totalorder %s9503_s8, %s9503_s8 }
   0xd   :  { %p9510_p6 = por %p9509_p5, %p9508_p4 }
   0xf   :  { %p9511_p7 = pnand %p9510_p6, %p9504_p3 }
  0x11   :  { %9514 = shalt.err (!%p9511_p7)
}
  0x12   :  { %38 = dma.hbm_to_vmem [thread:$0]  %s11425_s2, 192, %s36_s22, [#allocation5]  }
  0x13   :  { %s9515_s13 = scalar_lea.hbm %s11424_s1, 49152 }
  0x14   :  { %p9516_p8 = scmp.ne.s32.totalorder %s11424_s1, %s9515_s13  ;;  %p9519_p9 = scmp.lt.u32.totalorder %s9515_s13, %s11424_s1 }
  0x16   :  { %p9521_p10 = pnand %p9519_p9, %p9516_p8 }
  0x18   :  { %9524 = shalt.err (!%p9521_p10)
}
  0x19   :  { %s9525_s18 = scalar_lea.vmem %s9633_s24, 49152  ;;  %p9530_p12 = scmp.lt.s32.totalorder %s9633_s24, %s9633_s24 }
  0x1a   :  { %p9526_p11 = scmp.ne.s32.totalorder %s9633_s24, %s9525_s18  ;;  %p9531_p13 = scmp.lt.s32.totalorder %s9525_s18, %s9525_s18 }
  0x1c   :  { %p9532_p0 = por %p9531_p13, %p9530_p12 }
  0x1e   :  { %p9533_p1 = pnand %p9532_p0, %p9526_p11 }
  0x20   :  { %9536 = shalt.err (!%p9533_p1)
}
  0x21   :  { %s9589_s2 = smov 768   ;;  %s9590_s19 = smov 48  }
  0x22   :  { %28 = dma.hbm_to_vmem [thread:$0]  %s11424_s1, 49152, %s9633_s24, [#allocation3], %s9589_s2, %s9589_s2, %s9590_s19  }
  0x23   :  { %s9591_s22 = smov [#allocation6]   ;;  %s9537_s27 = scalar_lea.hbm %s11426_s3, 16384 }
  0x24   :  { %s44_s23 = sshll.u32 %s9591_s22, 4  ;;  %p9538_p2 = scmp.ne.s32.totalorder %s11426_s3, %s9537_s27  ;;  %s45_s23 = int_to_ptr.vmem [resolvable:$true] %s44_s23 }
  0x25   :  { %p9541_p3 = scmp.lt.u32.totalorder %s9537_s27, %s11426_s3 }
  0x27   :  { %p9543_p4 = pnand %p9541_p3, %p9538_p2 }
  0x29   :  { %9546 = shalt.err (!%p9543_p4)
}
  0x2a   :  { %s9547_s8 = scalar_lea.vmem %s45_s23, 16384  ;;  %p9552_p6 = scmp.lt.s32.totalorder %s45_s23, %s45_s23 }
  0x2b   :  { %p9548_p5 = scmp.ne.s32.totalorder %s45_s23, %s9547_s8  ;;  %p9553_p7 = scmp.lt.s32.totalorder %s9547_s8, %s9547_s8 }
  0x2d   :  { %p9554_p8 = por %p9553_p7, %p9552_p6 }
  0x2f   :  { %p9555_p9 = pnand %p9554_p8, %p9548_p5 }
  0x31   :  { %9558 = shalt.err (!%p9555_p9)
}
  0x32   :  { %s9592_s1 = smov 256   ;;  %s9593_s24 = smov 16  }
  0x33   :  { %50 = dma.hbm_to_vmem [thread:$0]  %s11426_s3, 16384, %s45_s23, [#allocation5], %s9592_s1, %s9592_s1, %s9593_s24  }
  0x34   :  { %s9594_s11 = smov [#allocation7]   ;;  %s9559_s15 = scalar_lea.hbm %s11427_s4, 64 }
  0x35   :  { %s57_s12 = sshll.u32 %s9594_s11, 4  ;;  %p9560_p10 = scmp.ne.s32.totalorder %s11427_s4, %s9559_s15  ;;  %s58_s12 = int_to_ptr.vmem [resolvable:$true] %s57_s12 }
  0x36   :  { %p9563_p11 = scmp.lt.u32.totalorder %s9559_s15, %s11427_s4 }
  0x38   :  { %p9565_p12 = pnand %p9563_p11, %p9560_p10 }
  0x3a   :  { %9568 = shalt.err (!%p9565_p12)
}
  0x3b   :  { %s9569_s19 = scalar_lea.vmem %s58_s12, 64  ;;  %p9574_p0 = scmp.lt.s32.totalorder %s58_s12, %s58_s12 }
  0x3c   :  { %p9570_p13 = scmp.ne.s32.totalorder %s58_s12, %s9569_s19  ;;  %p9575_p1 = scmp.lt.s32.totalorder %s9569_s19, %s9569_s19 }
  0x3e   :  { %p9576_p2 = por %p9575_p1, %p9574_p0 }
  0x40   :  { %p9577_p3 = pnand %p9576_p2, %p9570_p13 }
  0x42   :  { %9580 = shalt.err (!%p9577_p3)
}
  0x43   :  { %60 = dma.hbm_to_vmem [thread:$0]  %s11427_s4, 64, %s58_s12, [#allocation8]  }
  0x44   :  { %9581 = dma.done.wait [#allocation3], 49152  }
  0x45   :  { %9582 = vsyncadd [#allocation3], 4294918144 }
  0x46   :  { %9583 = dma.done.wait [#allocation5], 16576  }
  0x47   :  { %9584 = vsyncadd [#allocation5], 4294950720 }
  0x48   :  { %9585 = dma.done.wait [#allocation8], 64  }
  0x49   :  { %9586 = vsyncadd [#allocation8], 4294967232  ;;  %v8597_v0 = vld [vmem:[#allocation2 + $0x4] ss:$48 sps:$4 sm:$0xff]   ;;  %v8599_v1 = vld [vmem:[#allocation2] ss:$48 sps:$4 sm:$0xff]  }
  0x4a   :  { %2500 = vmatprep.subr.bf16.mxu0 %v8597_v0  ;;  %v8600_v2 = vld [vmem:[#allocation2 + $0x64] ss:$48 sps:$4 sm:$0xff]   ;;  %v8602_v3 = vld [vmem:[#allocation2 + $0x60] ss:$48 sps:$4 sm:$0xff]   ;;  %v8605_v5 = vld [vmem:[#allocation2 + $0xc] ss:$48 sps:$4 sm:$0xff]  }
  0x4b   :  { %2501 = vmatpush1.bf16.msra.mxu0 %v8599_v1  ;;  %v8603_v4 = vld [vmem:[#allocation2 + $0xc4] ss:$48 sps:$4 sm:$0xff]   ;;  %v8608_v6 = vld [vmem:[#allocation2 + $0x8] ss:$48 sps:$4 sm:$0xff]   ;;  %2602 = vmatprep.subr.bf16.mxu1 %v8605_v5  ;;  %v8607_v7 = vld [vmem:[#allocation2 + $0xc0] ss:$48 sps:$4 sm:$0xff]  }
  0x4c   :  { %2502 = vmatprep.subr.bf16.mxu0 %v8600_v2  ;;  %2603 = vmatpush1.bf16.msra.mxu1 %v8608_v6  ;;  %v8611_v8 = vld [vmem:[#allocation2 + $0x6c] ss:$48 sps:$4 sm:$0xff]   ;;  %v8614_v9 = vld [vmem:[#allocation2 + $0x68] ss:$48 sps:$4 sm:$0xff]   ;;  %v8609_v10 = vld [vmem:[#allocation2 + $0x124] ss:$48 sps:$4 sm:$0xff]  }
  0x4d   :  { %2604 = vmatprep.subr.bf16.mxu1 %v8611_v8  ;;  %v8617_v11 = vld [vmem:[#allocation2 + $0xcc] ss:$48 sps:$4 sm:$0xff]   ;;  %v8613_v12 = vld [vmem:[#allocation2 + $0x120] ss:$48 sps:$4 sm:$0xff]   ;;  %v8620_v13 = vld [vmem:[#allocation2 + $0xc8] ss:$48 sps:$4 sm:$0xff]  }
  0x4e   :  { %v8615_v14 = vld [vmem:[#allocation2 + $0x184] ss:$48 sps:$4 sm:$0xff]   ;;  %v8623_v15 = vld [vmem:[#allocation2 + $0x12c] ss:$48 sps:$4 sm:$0xff]   ;;  %v8619_v16 = vld [vmem:[#allocation2 + $0x180] ss:$48 sps:$4 sm:$0xff]  }
  0x4f   :  { %2503 = vmatpush1.bf16.msra.mxu0 %v8602_v3  ;;  %v8621_v17 = vld [vmem:[#allocation2 + $0x1e4] ss:$48 sps:$4 sm:$0xff]   ;;  %v8626_v18 = vld [vmem:[#allocation2 + $0x128] ss:$48 sps:$4 sm:$0xff]   ;;  %v8629_v19 = vld [vmem:[#allocation2 + $0x18c] ss:$48 sps:$4 sm:$0xff]  }
  0x50   :  { %2504 = vmatprep.subr.bf16.mxu0 %v8603_v4  ;;  %2605 = vmatpush1.bf16.msra.mxu1 %v8614_v9  ;;  %v8625_v20 = vld [vmem:[#allocation2 + $0x1e0] ss:$48 sps:$4 sm:$0xff]   ;;  %v8632_v21 = vld [vmem:[#allocation2 + $0x188] ss:$48 sps:$4 sm:$0xff]   ;;  %v8627_v22 = vld [vmem:[#allocation2 + $0x244] ss:$48 sps:$4 sm:$0xff]  }
  0x51   :  { %2606 = vmatprep.subr.bf16.mxu1 %v8617_v11  ;;  %v8635_v23 = vld [vmem:[#allocation2 + $0x1ec] ss:$48 sps:$4 sm:$0xff]   ;;  %v8631_v24 = vld [vmem:[#allocation2 + $0x240] ss:$48 sps:$4 sm:$0xff]   ;;  %v8633_v25 = vld [vmem:[#allocation2 + $0x2a4] ss:$48 sps:$4 sm:$0xff]  }
  0x52   :  { %v8638_v26 = vld [vmem:[#allocation2 + $0x1e8] ss:$48 sps:$4 sm:$0xff]   ;;  %v8641_v27 = vld [vmem:[#allocation2 + $0x24c] ss:$48 sps:$4 sm:$0xff]   ;;  %v8637_v28 = vld [vmem:[#allocation2 + $0x2a0] ss:$48 sps:$4 sm:$0xff]  }
  0x53   :  { %2505 = vmatpush1.bf16.msra.mxu0 %v8607_v7  ;;  %v8644_v29 = vld [vmem:[#allocation2 + $0x248] ss:$48 sps:$4 sm:$0xff]   ;;  %v8639_v30 = vld [vmem:[#allocation2 + $0x304] ss:$48 sps:$4 sm:$0xff]   ;;  %v8647_v31 = vld [vmem:[#allocation2 + $0x2ac] ss:$48 sps:$4 sm:$0xff]  }
  0x54   :  { %2506 = vmatprep.subr.bf16.mxu0 %v8609_v10  ;;  %2607 = vmatpush1.bf16.msra.mxu1 %v8620_v13  ;;  %v8643_v32 = vld [vmem:[#allocation2 + $0x300] ss:$48 sps:$4 sm:$0xff]   ;;  %v8645_v33 = vld [vmem:[#allocation2 + $0x364] ss:$48 sps:$4 sm:$0xff]   ;;  %v8650_v34 = vld [vmem:[#allocation2 + $0x2a8] ss:$48 sps:$4 sm:$0xff]  }
  0x55   :  { %2608 = vmatprep.subr.bf16.mxu1 %v8623_v15  ;;  %v8653_v35 = vld [vmem:[#allocation2 + $0x30c] ss:$48 sps:$4 sm:$0xff]   ;;  %v8649_v36 = vld [vmem:[#allocation2 + $0x360] ss:$48 sps:$4 sm:$0xff]   ;;  %v8656_v37 = vld [vmem:[#allocation2 + $0x308] ss:$48 sps:$4 sm:$0xff]  }
  0x56   :  { %v8651_v38 = vld [vmem:[#allocation2 + $0x3c4] ss:$48 sps:$4 sm:$0xff]   ;;  %v8659_v39 = vld [vmem:[#allocation2 + $0x36c] ss:$48 sps:$4 sm:$0xff]   ;;  %v8655_v40 = vld [vmem:[#allocation2 + $0x3c0] ss:$48 sps:$4 sm:$0xff]  }
  0x57   :  { %2507 = vmatpush1.bf16.msra.mxu0 %v8613_v12  ;;  %v8657_v41 = vld [vmem:[#allocation2 + $0x424] ss:$48 sps:$4 sm:$0xff]   ;;  %v8662_v42 = vld [vmem:[#allocation2 + $0x368] ss:$48 sps:$4 sm:$0xff]   ;;  %v8665_v43 = vld [vmem:[#allocation2 + $0x3cc] ss:$48 sps:$4 sm:$0xff]  }
  0x58   :  { %2508 = vmatprep.subr.bf16.mxu0 %v8615_v14  ;;  %2609 = vmatpush1.bf16.msra.mxu1 %v8626_v18  ;;  %v79_v44 = vld [vmem:[%s11423_s0 + $0x28] sm:$0x3]  ;;  %vm99_vm0 = vcmask 1041408   ;;  %v8661_v48 = vld [vmem:[#allocation2 + $0x420] ss:$48 sps:$4 sm:$0xff]   ;;  %vm3145_vm1 = vcmask 1045504  }
  0x59   :  { %2610 = vmatprep.subr.bf16.mxu1 %v8629_v19  ;;  %v9694_v45 = vld [vmem:[%s11423_s0 + $0x48] sm:$0xff]  ;;  %v8663_v51 = vld [vmem:[#allocation2 + $0x484] ss:$48 sps:$4 sm:$0xff]   ;;  %v8667_v54 = vld [vmem:[#allocation2 + $0x480] ss:$48 sps:$4 sm:$0xff]   ;;  %vm9596_vm2 = vmmov 0  }
  0x5a   :  { %v75_v46 = vld [vmem:[%s11423_s0 + $0x8] sm:$0xff]  ;;  %v101_v47 = vrot.slane %v9694_v45, 6  ;;  %v8669_v56 = vld [vmem:[#allocation2 + $0x4e4] ss:$48 sps:$4 sm:$0xff]   ;;  %v8673_v58 = vld [vmem:[#allocation2 + $0x4e0] ss:$48 sps:$4 sm:$0xff]  }
  0x5b   :  { %2509 = vmatpush1.bf16.msra.mxu0 %v8619_v16  ;;  %v8668_v49 = vld [vmem:[#allocation2 + $0x3c8] ss:$48 sps:$4 sm:$0xff]   ;;  %v8671_v52 = vld [vmem:[#allocation2 + $0x42c] ss:$48 sps:$4 sm:$0xff]   ;;  %v8675_v59 = vld [vmem:[#allocation2 + $0x544] ss:$48 sps:$4 sm:$0xff]  }
  0x5c   :  { %2510 = vmatprep.subr.bf16.mxu0 %v8621_v17  ;;  %2611 = vmatpush1.bf16.msra.mxu1 %v8632_v21  ;;  %v121_v50 = vsel %vm99_vm0, %v79_v44, %v101_v47  ;;  %v8674_v55 = vld [vmem:[#allocation2 + $0x428] ss:$48 sps:$4 sm:$0xff]   ;;  %v8677_v57 = vld [vmem:[#allocation2 + $0x48c] ss:$48 sps:$4 sm:$0xff]   ;;  %v9710_v62 = vld [vmem:[%s11423_s0 + $0x40] sm:$0xff]  ;;  %vm3401_vm3 = vcmask 523264  }
  0x5d   :  { %2612 = vmatprep.subr.bf16.mxu1 %v8635_v23  ;;  %v9703_v53 = vpack.c.bf16 %v121_v50, %v75_v46  ;;  %v8680_v60 = vld [vmem:[#allocation2 + $0x488] ss:$48 sps:$4 sm:$0xff]   ;;  %v8683_v61 = vld [vmem:[#allocation2 + $0x4ec] ss:$48 sps:$4 sm:$0xff]   ;;  %v8679_v63 = vld [vmem:[#allocation2 + $0x540] ss:$48 sps:$4 sm:$0xff]  }
  0x5e   :  { %v8681_v0 = vld [vmem:[#allocation2 + $0x5a4] ss:$48 sps:$4 sm:$0xff]   ;;  %v8686_v1 = vld [vmem:[#allocation2 + $0x4e8] ss:$48 sps:$4 sm:$0xff]   ;;  %v100_v2 = vrot.slane %v9710_v62, 6  ;;  %vm4560_vm4 = vcmask 1044480  }
  0x5f   :  { %2511 = vmatpush1.bf16.msra.mxu0 %v8625_v20  ;;  %2532 = vmatprep.mubr.bf16.mxu0 %v9703_v53  ;;  %v8690_v3 = vld [vmem:[#allocation2 + $0x54c] ss:$48 sps:$4 sm:$0xff]   ;;  %v78_v4 = vld [vmem:[%s11423_s0 + $0x20] sm:$0x3]  ;;  %v8692_v8 = vld [vmem:[#allocation2 + $0x548] ss:$48 sps:$4 sm:$0xff]  }
  0x60   :  { %2512 = vmatprep.subr.bf16.mxu0 %v8627_v22  ;;  %2613 = vmatpush1.bf16.msra.mxu1 %v8638_v26  ;;  %v8685_v5 = vld [vmem:[#allocation2 + $0x5a0] ss:$48 sps:$4 sm:$0xff]   ;;  %v120_v7 = vsel %vm99_vm0, %v78_v4, %v100_v2  ;;  %v8689_v9 = vld [vmem:[#allocation2 + $0x604] ss:$48 sps:$4 sm:$0xff]   ;;  %v8696_v10 = vld [vmem:[#allocation2 + $0x5ac] ss:$48 sps:$4 sm:$0xff]  }
  0x61   :  { %2614 = vmatprep.subr.bf16.mxu1 %v8641_v27  ;;  %2634 = vmatprep.mubr.bf16.mxu1 %v9703_v53  ;;  %v74_v6 = vld [vmem:[%s11423_s0] sm:$0xff]  ;;  %v8698_v13 = vld [vmem:[#allocation2 + $0x5a8] ss:$48 sps:$4 sm:$0xff]   ;;  %v8704_v15 = vld [vmem:[#allocation2 + $0x60c] ss:$48 sps:$4 sm:$0xff]   ;;  %vm4154_vm5 = vcmask 80896  }
  0x62   :  { %v8687_v11 = vld [vmem:[#allocation2 + $0x600] ss:$48 sps:$4 sm:$0xff]   ;;  %v9722_v12 = vpack.c.bf16 %v120_v7, %v74_v6  ;;  %v8695_v14 = vld [vmem:[#allocation2 + $0x664] ss:$48 sps:$4 sm:$0xff]   ;;  %v8702_v17 = vld [vmem:[#allocation2 + $0x608] ss:$48 sps:$4 sm:$0xff]  }
  0x63   :  { %2513 = vmatpush1.bf16.msra.mxu0 %v8631_v24  ;;  %v8693_v16 = vld [vmem:[#allocation2 + $0x660] ss:$48 sps:$4 sm:$0xff]   ;;  %v8701_v18 = vld [vmem:[#allocation2 + $0x6c4] ss:$48 sps:$4 sm:$0xff]   ;;  %v8710_v19 = vld [vmem:[#allocation2 + $0x66c] ss:$48 sps:$4 sm:$0xff]  }
  0x64   :  { %2514 = vmatprep.subr.bf16.mxu0 %v8633_v25  ;;  %2615 = vmatpush1.bf16.msra.mxu1 %v8644_v29  ;;  %v8699_v20 = vld [vmem:[#allocation2 + $0x6c0] ss:$48 sps:$4 sm:$0xff]   ;;  %v8708_v21 = vld [vmem:[#allocation2 + $0x668] ss:$48 sps:$4 sm:$0xff]   ;;  %v8707_v22 = vld [vmem:[#allocation2 + $0x724] ss:$48 sps:$4 sm:$0xff]  }
  0x65   :  { %2616 = vmatprep.subr.bf16.mxu1 %v8647_v31  ;;  %v8716_v23 = vld [vmem:[#allocation2 + $0x6cc] ss:$48 sps:$4 sm:$0xff]   ;;  %v8705_v24 = vld [vmem:[#allocation2 + $0x720] ss:$48 sps:$4 sm:$0xff]   ;;  %v8714_v25 = vld [vmem:[#allocation2 + $0x6c8] ss:$48 sps:$4 sm:$0xff]  }
  0x66   :  { %v8713_v26 = vld [vmem:[#allocation2 + $0x784] ss:$48 sps:$4 sm:$0xff]   ;;  %v8722_v27 = vld [vmem:[#allocation2 + $0x72c] ss:$48 sps:$4 sm:$0xff]   ;;  %v7355_v31 = vld [vmem:[%s11423_s0 + $0x68] sm:$0x3] }
  0x67   :  { %2515 = vmatpush1.bf16.msra.mxu0 %v8637_v28  ;;  %v8711_v28 = vld [vmem:[#allocation2 + $0x780] ss:$48 sps:$4 sm:$0xff]   ;;  %v8719_v29 = vld [vmem:[#allocation2 + $0x7e4] ss:$48 sps:$4 sm:$0xff]   ;;  %v8732_v45 = vld [vmem:[#allocation2 + $0x7e8] ss:$48 sps:$4 sm:$0xff]  }
  0x68   :  { %2516 = vmatprep.subr.bf16.mxu0 %v8639_v30  ;;  %2617 = vmatpush1.bf16.msra.mxu1 %v8650_v34  ;;  %v8720_v30 = vld [vmem:[#allocation2 + $0x728] ss:$48 sps:$4 sm:$0xff]   ;;  %v106_v34 = vrot.slane %v7355_v31, 6  ;;  %v8723_v44 = vld [vmem:[#allocation2 + $0x840] ss:$48 sps:$4 sm:$0xff]   ;;  %vm4158_vm6 = vcmask 74752  }
  0x69   :  { %2618 = vmatprep.subr.bf16.mxu1 %v8653_v35  ;;  %v81_v46 = vld [vmem:[%s11423_s0 + $0x38] sm:$0x3]  ;;  %v8731_v50 = vld [vmem:[#allocation2 + $0x8a4] ss:$48 sps:$4 sm:$0xff]   ;;  %v8752_v62 = vld [vmem:[#allocation2 + $0x90c] ss:$48 sps:$4 sm:$0xff]  }
  0x6a   :  { %v8755_v4 = vld [vmem:[#allocation2 + $0xa24] ss:$48 sps:$4 sm:$0xff]   ;;  %v8764_v6 = vld [vmem:[#allocation2 + $0x9cc] ss:$48 sps:$4 sm:$0xff]   ;;  %v8753_v7 = vld [vmem:[#allocation2 + $0xa20] ss:$48 sps:$4 sm:$0xff]  }
  0x6b   :  { %2517 = vmatpush1.bf16.msra.mxu0 %v8643_v32  ;;  %v7354_v32 = vld [vmem:[%s11423_s0 + $0x60] sm:$0x3]  ;;  %v8783_v31 = vld [vmem:[#allocation2 + $0xb48] ss:$48 sps:$4 sm:$0xff]  }
  0x6c   :  { %2518 = vmatprep.subr.bf16.mxu0 %v8645_v33  ;;  %2619 = vmatpush1.bf16.msra.mxu1 %v8656_v37  ;;  %v8728_v33 = vld [vmem:[#allocation2 + $0x78c] ss:$48 sps:$4 sm:$0xff]   ;;  %v104_v35 = vrot.slane %v7354_v32, 6  ;;  %v107_v37 = vsel %vm99_vm0, %v101_v47, %v106_v34 }
  0x6d   :  { %2620 = vmatprep.subr.bf16.mxu1 %v8659_v39  ;;  %v8725_v39 = vld [vmem:[#allocation2 + $0x844] ss:$48 sps:$4 sm:$0xff]   ;;  %v9751_v47 = vld [vmem:[%s11423_s0 + $0x58] sm:$0xff] }
  0x6e   :  { %v8791_v34 = vld [vmem:[#allocation2 + $0xbac] ss:$48 sps:$4 sm:$0xff]  }
  0x6f   :  { %2519 = vmatpush1.bf16.msra.mxu0 %v8649_v36  ;;  %v8717_v36 = vld [vmem:[#allocation2 + $0x7e0] ss:$48 sps:$4 sm:$0xff]  }
  0x70   :  { %2520 = vmatprep.subr.bf16.mxu0 %v8651_v38  ;;  %2621 = vmatpush1.bf16.msra.mxu1 %v8662_v42  ;;  %v105_v38 = vsel %vm99_vm0, %v100_v2, %v104_v35  ;;  %v8758_v2 = vld [vmem:[#allocation2 + $0x96c] ss:$48 sps:$4 sm:$0xff]   ;;  %v7356_v35 = vld [vmem:[%s11423_s0 + $0x70] sm:$0x3] }
  0x71   :  { %2622 = vmatprep.subr.bf16.mxu1 %v8665_v43  ;;  %v9740_v42 = vpack.c.bf16 %v105_v38, %v105_v38  ;;  %v8734_v43 = vld [vmem:[#allocation2 + $0x7ec] ss:$48 sps:$4 sm:$0xff]   ;;  %v8786_v38 = vld [vmem:[#allocation2 + $0x10] ss:$48 sps:$4 sm:$0xff]  }
  0x73   :  { %2521 = vmatpush1.bf16.msra.mxu0 %v8655_v40  ;;  %v8726_v40 = vld [vmem:[#allocation2 + $0x788] ss:$48 sps:$4 sm:$0xff]  }
  0x74   :  { %2522 = vmatprep.subr.bf16.mxu0 %v8657_v41  ;;  %2623 = vmatpush1.bf16.msra.mxu1 %v8668_v49  ;;  %v9738_v41 = vpack.c.bf16 %v107_v37, %v107_v37  ;;  %v103_v49 = vrot.slane %v9751_v47, 6 }
  0x75   :  { %2624 = vmatprep.subr.bf16.mxu1 %v8671_v52 }
  0x76   :  { %v123_v52 = vsel %vm99_vm0, %v81_v46, %v103_v49  ;;  %v8792_v46 = vld [vmem:[#allocation2 + $0x70] ss:$48 sps:$4 sm:$0xff]  }
  0x77   :  { %2523 = vmatpush1.bf16.msra.mxu0 %v8661_v48  ;;  %v77_v48 = vld [vmem:[%s11423_s0 + $0x18] sm:$0xff] }
  0x78   :  { %2524 = vmatprep.subr.bf16.mxu0 %v8663_v51  ;;  %2625 = vmatpush1.bf16.msra.mxu1 %v8674_v55  ;;  %v8740_v51 = vld [vmem:[#allocation2 + $0x84c] ss:$48 sps:$4 sm:$0xff]   ;;  %v9761_v55 = vpack.c.bf16 %v123_v52, %v77_v48  ;;  %v8797_v48 = vld [vmem:[#allocation2 + $0xd4] ss:$48 sps:$4 sm:$0xff]   ;;  %v8795_v52 = vld [vmem:[#allocation2 + $0xd0] ss:$48 sps:$4 sm:$0xff]  }
  0x79   :  { %2626 = vmatprep.subr.bf16.mxu1 %v8677_v57  ;;  %v8737_v57 = vld [vmem:[#allocation2 + $0x904] ss:$48 sps:$4 sm:$0xff]  }
  0x7b   :  { %2525 = vmatpush1.bf16.msra.mxu0 %v8667_v54  ;;  %v8729_v54 = vld [vmem:[#allocation2 + $0x8a0] ss:$48 sps:$4 sm:$0xff]  }
  0x7c   :  { %2526 = vmatprep.subr.bf16.mxu0 %v8669_v56  ;;  %2627 = vmatpush1.bf16.msra.mxu1 %v8680_v60  ;;  %v8738_v56 = vld [vmem:[#allocation2 + $0x848] ss:$48 sps:$4 sm:$0xff]   ;;  %v8743_v60 = vld [vmem:[#allocation2 + $0x964] ss:$48 sps:$4 sm:$0xff]  }
  0x7d   :  { %2628 = vmatprep.subr.bf16.mxu1 %v8683_v61  ;;  %v8744_v61 = vld [vmem:[#allocation2 + $0x8a8] ss:$48 sps:$4 sm:$0xff]  }
  0x7f   :  { %2527 = vmatpush1.bf16.msra.mxu0 %v8673_v58  ;;  %v8746_v58 = vld [vmem:[#allocation2 + $0x8ac] ss:$48 sps:$4 sm:$0xff]  }
  0x80   :  { %2528 = vmatprep.subr.bf16.mxu0 %v8675_v59  ;;  %2629 = vmatpush1.bf16.msra.mxu1 %v8686_v1  ;;  %v8735_v59 = vld [vmem:[#allocation2 + $0x900] ss:$48 sps:$4 sm:$0xff]   ;;  %v8750_v1 = vld [vmem:[#allocation2 + $0x908] ss:$48 sps:$4 sm:$0xff]  }
  0x81   :  { %2630 = vmatprep.subr.bf16.mxu1 %v8690_v3  ;;  %v8747_v3 = vld [vmem:[#allocation2 + $0x9c0] ss:$48 sps:$4 sm:$0xff]  }
  0x83   :  { %2529 = vmatpush1.bf16.msra.mxu0 %v8679_v63  ;;  %v8741_v63 = vld [vmem:[#allocation2 + $0x960] ss:$48 sps:$4 sm:$0xff]  }
  0x84   :  { %2530 = vmatprep.subr.bf16.mxu0 %v8681_v0  ;;  %2631 = vmatpush1.bf16.msra.mxu1 %v8692_v8  ;;  %v8749_v0 = vld [vmem:[#allocation2 + $0x9c4] ss:$48 sps:$4 sm:$0xff]  }
  0x85   :  { %2632 = vmatprep.subr.bf16.mxu1 %v8696_v10  ;;  %v8761_v8 = vld [vmem:[#allocation2 + $0xa84] ss:$48 sps:$4 sm:$0xff]   ;;  %v8770_v10 = vld [vmem:[#allocation2 + $0xa2c] ss:$48 sps:$4 sm:$0xff]  }
  0x87   :  { %2531 = vmatpush1.bf16.msra.mxu0 %v8685_v5  ;;  %v8756_v5 = vld [vmem:[#allocation2 + $0x968] ss:$48 sps:$4 sm:$0xff]  }
  0x88   :  { %2551 = vmatprep.subr.bf16.mxu0 %v8689_v9  ;;  %2633 = vmatpush1.bf16.msra.mxu1 %v8698_v13  ;;  %v8762_v9 = vld [vmem:[#allocation2 + $0x9c8] ss:$48 sps:$4 sm:$0xff]   ;;  %v8767_v13 = vld [vmem:[#allocation2 + $0xae4] ss:$48 sps:$4 sm:$0xff]  }
  0x89   :  { %2653 = vmatprep.subr.bf16.mxu1 %v8704_v15  ;;  %v8776_v15 = vld [vmem:[#allocation2 + $0xa8c] ss:$48 sps:$4 sm:$0xff]  }
  0x8a   :  { %2533 = vmatmul.mubr.bf16.vlgmr.msra.gmra.mrb[0].mxu0 %v9722_v12 }
  0x8b   :  { %2552 = vmatpush1.bf16.msra.mxu0 %v8687_v11  ;;  %2635 = vmatmul.mubr.bf16.vlgmr.msra.gmra.mrb[0].mxu1 %v9722_v12  ;;  %v8759_v11 = vld [vmem:[#allocation2 + $0xa80] ss:$48 sps:$4 sm:$0xff]  }
  0x8c   :  { %2553 = vmatprep.subr.bf16.mxu0 %v8695_v14  ;;  %2654 = vmatpush1.bf16.msra.mxu1 %v8702_v17  ;;  %v8768_v14 = vld [vmem:[#allocation2 + $0xa28] ss:$48 sps:$4 sm:$0xff]   ;;  %v8773_v17 = vld [vmem:[#allocation2 + $0xb44] ss:$48 sps:$4 sm:$0xff]  }
  0x8d   :  { %2655 = vmatprep.subr.bf16.mxu1 %v8710_v19  ;;  %2542 = vmatprep.mubr.bf16.mxu0 %v9738_v41  ;;  %v8782_v19 = vld [vmem:[#allocation2 + $0xaec] ss:$48 sps:$4 sm:$0xff]  }
  0x8e   :  { %2644 = vmatprep.mubr.bf16.mxu1 %v9738_v41 }
  0x8f   :  { %2554 = vmatpush1.bf16.msra.mxu0 %v8693_v16  ;;  %v8765_v16 = vld [vmem:[#allocation2 + $0xae0] ss:$48 sps:$4 sm:$0xff]  }
  0x90   :  { %2555 = vmatprep.subr.bf16.mxu0 %v8701_v18  ;;  %2656 = vmatpush1.bf16.msra.mxu1 %v8708_v21  ;;  %v8774_v18 = vld [vmem:[#allocation2 + $0xa88] ss:$48 sps:$4 sm:$0xff]   ;;  %v8771_v21 = vld [vmem:[#allocation2 + $0xb40] ss:$48 sps:$4 sm:$0xff]  }
  0x91   :  { %2657 = vmatprep.subr.bf16.mxu1 %v8716_v23  ;;  %v7357_v23 = vld [vmem:[%s11423_s0 + $0x78] sm:$0x3] }
  0x92   :  { %2543 = vmatmul.mubr.bf16.gmra.mrb[4].mxu0 %v9740_v42 }
  0x93   :  { %2556 = vmatpush1.bf16.msra.mxu0 %v8699_v20  ;;  %2645 = vmatmul.mubr.bf16.gmra.mrb[4].mxu1 %v9740_v42  ;;  %v7352_v20 = vld [vmem:[%s11423_s0 + $0x50] sm:$0xff] }
  0x94   :  { %2557 = vmatprep.subr.bf16.mxu0 %v8707_v22  ;;  %2658 = vmatpush1.bf16.msra.mxu1 %v8714_v25  ;;  %v8779_v22 = vld [vmem:[#allocation2 + $0xba4] ss:$48 sps:$4 sm:$0xff]   ;;  %v80_v25 = vld [vmem:[%s11423_s0 + $0x30] sm:$0x3] }
  0x95   :  { %2659 = vmatprep.subr.bf16.mxu1 %v8722_v27  ;;  %2583 = vmatprep.mubr.bf16.mxu0 %v9761_v55  ;;  %v8785_v27 = vld [vmem:[#allocation2 + $0xb4c] ss:$48 sps:$4 sm:$0xff]  }
  0x96   :  { %2685 = vmatprep.mubr.bf16.mxu1 %v9761_v55 }
  0x97   :  { %2558 = vmatpush1.bf16.msra.mxu0 %v8705_v24  ;;  %v8780_v24 = vld [vmem:[#allocation2 + $0xae8] ss:$48 sps:$4 sm:$0xff]  }
  0x98   :  { %2559 = vmatprep.subr.bf16.mxu0 %v8713_v26  ;;  %2660 = vmatpush1.bf16.msra.mxu1 %v8720_v30  ;;  %v102_v26 = vrot.slane %v7352_v20, 6  ;;  %v76_v30 = vld [vmem:[%s11423_s0 + $0x10] sm:$0xff]  ;;  %s9597_s0 = smov 64  }
  0x99   :  { %2661 = vmatprep.subr.bf16.mxu1 %v8728_v33  ;;  %v8788_v33 = vld [vmem:[#allocation2 + $0x14] ss:$48 sps:$4 sm:$0xff]  }
  0x9a   :  { %v122_v32 = vsel %vm99_vm0, %v80_v25, %v102_v26  ;;  %v8845_v20 = vld [vmem:[#allocation2 + $0x3d4] ss:$48 sps:$4 sm:$0xff]   ;;  %v8852_v25 = vld [vmem:[#allocation2 + $0x378] ss:$48 sps:$4 sm:$0xff]  }
  0x9b   :  { %2560 = vmatpush1.bf16.msra.mxu0 %v8711_v28  ;;  %v8777_v28 = vld [vmem:[#allocation2 + $0xba0] ss:$48 sps:$4 sm:$0xff]   ;;  %v9784_v37 = vpack.c.bf16 %v122_v32, %v76_v30  ;;  %v8866_v30 = vld [vmem:[#allocation2 + $0x43c] ss:$48 sps:$4 sm:$0xff]   ;;  %v8863_v32 = vld [vmem:[#allocation2 + $0x4f4] ss:$48 sps:$4 sm:$0xff]  }
  0x9c   :  { %2561 = vmatprep.subr.bf16.mxu0 %v8719_v29  ;;  %2662 = vmatpush1.bf16.msra.mxu1 %v8726_v40  ;;  %v110_v29 = vrot.slane %v7357_v23, 6  ;;  %v108_v40 = vrot.slane %v7356_v35, 6  ;;  %v8843_v23 = vld [vmem:[#allocation2 + $0x3d0] ss:$48 sps:$4 sm:$0xff]  }
  0x9d   :  { %2663 = vmatprep.subr.bf16.mxu1 %v8734_v43  ;;  %v8794_v43 = vld [vmem:[#allocation2 + $0x74] ss:$48 sps:$4 sm:$0xff]   ;;  %v8861_v35 = vld [vmem:[#allocation2 + $0x4f0] ss:$48 sps:$4 sm:$0xff]  }
  0x9e   :  { %v109_v47 = vsel %vm99_vm0, %v102_v26, %v108_v40  ;;  %v8860_v26 = vld [vmem:[#allocation2 + $0x3dc] ss:$48 sps:$4 sm:$0xff]   ;;  %v8867_v40 = vld [vmem:[#allocation2 + $0x550] ss:$48 sps:$4 sm:$0xff]  }
  0x9f   :  { %2562 = vmatpush1.bf16.msra.mxu0 %v8717_v36  ;;  %v111_v36 = vsel %vm99_vm0, %v103_v49, %v110_v29  ;;  %v8798_v49 = vld [vmem:[#allocation2 + $0x18] ss:$48 sps:$4 sm:$0xff]  }
  0xa0   :  { %2563 = vmatprep.subr.bf16.mxu0 %v8725_v39  ;;  %2664 = vmatpush1.bf16.msra.mxu1 %v8732_v45  ;;  %v8789_v39 = vld [vmem:[#allocation2 + $0xba8] ss:$48 sps:$4 sm:$0xff]   ;;  %v8800_v45 = vld [vmem:[#allocation2 + $0x1c] ss:$48 sps:$4 sm:$0xff]  }
  0xa1   :  { %2665 = vmatprep.subr.bf16.mxu1 %v8740_v51  ;;  %v9791_v51 = vpack.c.bf16 %v109_v47, %v109_v47  ;;  %v8858_v29 = vld [vmem:[#allocation2 + $0x3d8] ss:$48 sps:$4 sm:$0xff]   ;;  %v8873_v47 = vld [vmem:[#allocation2 + $0x5b0] ss:$48 sps:$4 sm:$0xff]  }
  0xa3   :  { %2564 = vmatpush1.bf16.msra.mxu0 %v8723_v44  ;;  %v9786_v44 = vpack.c.bf16 %v111_v36, %v111_v36  ;;  %v8870_v36 = vld [vmem:[#allocation2 + $0x498] ss:$48 sps:$4 sm:$0xff]  }
  0xa4   :  { %2565 = vmatprep.subr.bf16.mxu0 %v8731_v50  ;;  %2666 = vmatpush1.bf16.msra.mxu1 %v8738_v56  ;;  %v8806_v50 = vld [vmem:[#allocation2 + $0x7c] ss:$48 sps:$4 sm:$0xff]   ;;  %v8804_v56 = vld [vmem:[#allocation2 + $0x78] ss:$48 sps:$4 sm:$0xff]  }
  0xa5   :  { %2667 = vmatprep.subr.bf16.mxu1 %v8746_v58  ;;  %v8801_v58 = vld [vmem:[#allocation2 + $0x130] ss:$48 sps:$4 sm:$0xff]  }
  0xa7   :  { %2566 = vmatpush1.bf16.msra.mxu0 %v8729_v54  ;;  %v8803_v54 = vld [vmem:[#allocation2 + $0x134] ss:$48 sps:$4 sm:$0xff]  }
  0xa8   :  { %2567 = vmatprep.subr.bf16.mxu0 %v8737_v57  ;;  %2668 = vmatpush1.bf16.msra.mxu1 %v8744_v61  ;;  %v8812_v57 = vld [vmem:[#allocation2 + $0xdc] ss:$48 sps:$4 sm:$0xff]  }
  0xa9   :  { %2669 = vmatprep.subr.bf16.mxu1 %v8752_v62  ;;  %v8818_v61 = vld [vmem:[#allocation2 + $0x13c] ss:$48 sps:$4 sm:$0xff]   ;;  %v8807_v62 = vld [vmem:[#allocation2 + $0x190] ss:$48 sps:$4 sm:$0xff]  }
  0xab   :  { %2568 = vmatpush1.bf16.msra.mxu0 %v8735_v59  ;;  %v8809_v59 = vld [vmem:[#allocation2 + $0x194] ss:$48 sps:$4 sm:$0xff]  }
  0xac   :  { %2569 = vmatprep.subr.bf16.mxu0 %v8743_v60  ;;  %2670 = vmatpush1.bf16.msra.mxu1 %v8750_v1  ;;  %v8810_v60 = vld [vmem:[#allocation2 + $0xd8] ss:$48 sps:$4 sm:$0xff]   ;;  %v8824_v1 = vld [vmem:[#allocation2 + $0x19c] ss:$48 sps:$4 sm:$0xff]  }
  0xad   :  { %2671 = vmatprep.subr.bf16.mxu1 %v8758_v2  ;;  %v8813_v2 = vld [vmem:[#allocation2 + $0x1f0] ss:$48 sps:$4 sm:$0xff]  }
  0xaf   :  { %2570 = vmatpush1.bf16.msra.mxu0 %v8741_v63  ;;  %v8815_v63 = vld [vmem:[#allocation2 + $0x1f4] ss:$48 sps:$4 sm:$0xff]  }
  0xb0   :  { %2571 = vmatprep.subr.bf16.mxu0 %v8749_v0  ;;  %2672 = vmatpush1.bf16.msra.mxu1 %v8756_v5  ;;  %v8816_v0 = vld [vmem:[#allocation2 + $0x138] ss:$48 sps:$4 sm:$0xff]   ;;  %v8830_v5 = vld [vmem:[#allocation2 + $0x1fc] ss:$48 sps:$4 sm:$0xff]  }
  0xb1   :  { %2673 = vmatprep.subr.bf16.mxu1 %v8764_v6  ;;  %v8819_v6 = vld [vmem:[#allocation2 + $0x250] ss:$48 sps:$4 sm:$0xff]  }
  0xb3   :  { %2572 = vmatpush1.bf16.msra.mxu0 %v8747_v3  ;;  %v8821_v3 = vld [vmem:[#allocation2 + $0x254] ss:$48 sps:$4 sm:$0xff]  }
  0xb4   :  { %2573 = vmatprep.subr.bf16.mxu0 %v8755_v4  ;;  %2674 = vmatpush1.bf16.msra.mxu1 %v8762_v9  ;;  %v8822_v4 = vld [vmem:[#allocation2 + $0x198] ss:$48 sps:$4 sm:$0xff]   ;;  %v8836_v9 = vld [vmem:[#allocation2 + $0x25c] ss:$48 sps:$4 sm:$0xff]  }
  0xb5   :  { %2675 = vmatprep.subr.bf16.mxu1 %v8770_v10  ;;  %v8825_v10 = vld [vmem:[#allocation2 + $0x2b0] ss:$48 sps:$4 sm:$0xff]  }
  0xb7   :  { %2574 = vmatpush1.bf16.msra.mxu0 %v8753_v7  ;;  %v8827_v7 = vld [vmem:[#allocation2 + $0x2b4] ss:$48 sps:$4 sm:$0xff]  }
  0xb8   :  { %2575 = vmatprep.subr.bf16.mxu0 %v8761_v8  ;;  %2676 = vmatpush1.bf16.msra.mxu1 %v8768_v14  ;;  %v8828_v8 = vld [vmem:[#allocation2 + $0x1f8] ss:$48 sps:$4 sm:$0xff]   ;;  %v8842_v14 = vld [vmem:[#allocation2 + $0x2bc] ss:$48 sps:$4 sm:$0xff]  }
  0xb9   :  { %2677 = vmatprep.subr.bf16.mxu1 %v8776_v15  ;;  %v8831_v15 = vld [vmem:[#allocation2 + $0x310] ss:$48 sps:$4 sm:$0xff]  }
  0xbb   :  { %2576 = vmatpush1.bf16.msra.mxu0 %v8759_v11  ;;  %v8833_v11 = vld [vmem:[#allocation2 + $0x314] ss:$48 sps:$4 sm:$0xff]  }
  0xbc   :  { %2577 = vmatprep.subr.bf16.mxu0 %v8767_v13  ;;  %2678 = vmatpush1.bf16.msra.mxu1 %v8774_v18  ;;  %v8834_v13 = vld [vmem:[#allocation2 + $0x258] ss:$48 sps:$4 sm:$0xff]   ;;  %v8848_v18 = vld [vmem:[#allocation2 + $0x31c] ss:$48 sps:$4 sm:$0xff]  }
  0xbd   :  { %2679 = vmatprep.subr.bf16.mxu1 %v8782_v19  ;;  %v8837_v19 = vld [vmem:[#allocation2 + $0x370] ss:$48 sps:$4 sm:$0xff]  }
  0xbf   :  { %2578 = vmatpush1.bf16.msra.mxu0 %v8765_v16  ;;  %v8839_v16 = vld [vmem:[#allocation2 + $0x374] ss:$48 sps:$4 sm:$0xff]  }
  0xc0   :  { %2579 = vmatprep.subr.bf16.mxu0 %v8773_v17  ;;  %2680 = vmatpush1.bf16.msra.mxu1 %v8780_v24  ;;  %v8840_v17 = vld [vmem:[#allocation2 + $0x2b8] ss:$48 sps:$4 sm:$0xff]   ;;  %v8851_v24 = vld [vmem:[#allocation2 + $0x434] ss:$48 sps:$4 sm:$0xff]  }
  0xc1   :  { %2681 = vmatprep.subr.bf16.mxu1 %v8785_v27  ;;  %v8849_v27 = vld [vmem:[#allocation2 + $0x430] ss:$48 sps:$4 sm:$0xff]  }
  0xc3   :  { %2580 = vmatpush1.bf16.msra.mxu0 %v8771_v21  ;;  %v8846_v21 = vld [vmem:[#allocation2 + $0x318] ss:$48 sps:$4 sm:$0xff]  }
  0xc4   :  { %2581 = vmatprep.subr.bf16.mxu0 %v8779_v22  ;;  %2682 = vmatpush1.bf16.msra.mxu1 %v8783_v31  ;;  %v8854_v22 = vld [vmem:[#allocation2 + $0x37c] ss:$48 sps:$4 sm:$0xff]   ;;  %v8855_v31 = vld [vmem:[#allocation2 + $0x490] ss:$48 sps:$4 sm:$0xff]  }
  0xc5   :  { %2683 = vmatprep.subr.bf16.mxu1 %v8791_v34  ;;  %v8872_v34 = vld [vmem:[#allocation2 + $0x49c] ss:$48 sps:$4 sm:$0xff]  }
  0xc7   :  { %2582 = vmatpush1.bf16.msra.mxu0 %v8777_v28  ;;  %v8857_v28 = vld [vmem:[#allocation2 + $0x494] ss:$48 sps:$4 sm:$0xff]  }
  0xc8   :  { %2704 = vmatprep.subr.bf16.mxu0 %v8788_v33  ;;  %2684 = vmatpush1.bf16.msra.mxu1 %v8789_v39  ;;  %v8864_v33 = vld [vmem:[#allocation2 + $0x438] ss:$48 sps:$4 sm:$0xff]   ;;  %v8878_v39 = vld [vmem:[#allocation2 + $0x4fc] ss:$48 sps:$4 sm:$0xff]  }
  0xc9   :  { %2806 = vmatprep.subr.bf16.mxu1 %v8800_v45  ;;  %v8875_v45 = vld [vmem:[#allocation2 + $0x5b4] ss:$48 sps:$4 sm:$0xff]  }
  0xca   :  { %2584 = vmatmul.mubr.bf16.vlgmr.msra.gmra.mrb[0].mxu0 %v9784_v37 }
  0xcb   :  { %2705 = vmatpush1.bf16.msra.mxu0 %v8786_v38  ;;  %2593 = vmatprep.mubr.bf16.mxu0 %v9786_v44  ;;  %v8869_v38 = vld [vmem:[#allocation2 + $0x554] ss:$48 sps:$4 sm:$0xff]  }
  0xcc   :  { %2706 = vmatprep.subr.bf16.mxu0 %v8794_v43  ;;  %2686 = vmatmul.mubr.bf16.vlgmr.msra.gmra.mrb[0].mxu1 %v9784_v37  ;;  %v8876_v43 = vld [vmem:[#allocation2 + $0x4f8] ss:$48 sps:$4 sm:$0xff]  }
  0xcd   :  { %2807 = vmatpush1.bf16.msra.mxu1 %v8798_v49  ;;  %2695 = vmatprep.mubr.bf16.mxu1 %v9786_v44  ;;  %v8881_v49 = vld [vmem:[#allocation2 + $0x614] ss:$48 sps:$4 sm:$0xff]  }
  0xce   :  { %2808 = vmatprep.subr.bf16.mxu1 %v8806_v50  ;;  %v8890_v50 = vld [vmem:[#allocation2 + $0x5bc] ss:$48 sps:$4 sm:$0xff]  }
  0xcf   :  { %2707 = vmatpush1.bf16.msra.mxu0 %v8792_v46  ;;  %v8884_v46 = vld [vmem:[#allocation2 + $0x55c] ss:$48 sps:$4 sm:$0xff]  }
  0xd0   :  { %2708 = vmatprep.subr.bf16.mxu0 %v8797_v48  ;;  %v8882_v48 = vld [vmem:[#allocation2 + $0x558] ss:$48 sps:$4 sm:$0xff]  }
  0xd1   :  { %2809 = vmatpush1.bf16.msra.mxu1 %v8804_v56  ;;  %v8887_v56 = vld [vmem:[#allocation2 + $0x674] ss:$48 sps:$4 sm:$0xff]  }
  0xd2   :  { %2594 = vmatmul.mubr.bf16.gmra.mrb[4].mxu0 %v9791_v51  ;;  %2810 = vmatprep.subr.bf16.mxu1 %v8812_v57  ;;  %v8896_v57 = vld [vmem:[#allocation2 + $0x61c] ss:$48 sps:$4 sm:$0xff]  }
  0xd3   :  { %2709 = vmatpush1.bf16.msra.mxu0 %v8795_v52  ;;  %2736 = vmatprep.mubr.bf16.mxu0 %v9703_v53  ;;  %v8879_v52 = vld [vmem:[#allocation2 + $0x610] ss:$48 sps:$4 sm:$0xff]  }
  0xd4   :  { %2710 = vmatprep.subr.bf16.mxu0 %v8803_v54  ;;  %2696 = vmatmul.mubr.bf16.gmra.mrb[4].mxu1 %v9791_v51  ;;  %v8888_v54 = vld [vmem:[#allocation2 + $0x5b8] ss:$48 sps:$4 sm:$0xff]  }
  0xd5   :  { %2811 = vmatpush1.bf16.msra.mxu1 %v8810_v60  ;;  %2838 = vmatprep.mubr.bf16.mxu1 %v9703_v53  ;;  %v8893_v60 = vld [vmem:[#allocation2 + $0x6d4] ss:$48 sps:$4 sm:$0xff]  }
  0xd6   :  { %2812 = vmatprep.subr.bf16.mxu1 %v8818_v61  ;;  %v8902_v61 = vld [vmem:[#allocation2 + $0x67c] ss:$48 sps:$4 sm:$0xff]  }
  0xd7   :  { %2711 = vmatpush1.bf16.msra.mxu0 %v8801_v58  ;;  %v8885_v58 = vld [vmem:[#allocation2 + $0x670] ss:$48 sps:$4 sm:$0xff]  }
  0xd8   :  { %2712 = vmatprep.subr.bf16.mxu0 %v8809_v59  ;;  %v8894_v59 = vld [vmem:[#allocation2 + $0x618] ss:$48 sps:$4 sm:$0xff]  }
  0xd9   :  { %2813 = vmatpush1.bf16.msra.mxu1 %v8816_v0  ;;  %v8899_v0 = vld [vmem:[#allocation2 + $0x734] ss:$48 sps:$4 sm:$0xff]  }
  0xda   :  { %2814 = vmatprep.subr.bf16.mxu1 %v8824_v1  ;;  %v8908_v1 = vld [vmem:[#allocation2 + $0x6dc] ss:$48 sps:$4 sm:$0xff]  }
  0xdb   :  { %2713 = vmatpush1.bf16.msra.mxu0 %v8807_v62  ;;  %v8891_v62 = vld [vmem:[#allocation2 + $0x6d0] ss:$48 sps:$4 sm:$0xff]  }
  0xdc   :  { %2714 = vmatprep.subr.bf16.mxu0 %v8815_v63  ;;  %v8900_v63 = vld [vmem:[#allocation2 + $0x678] ss:$48 sps:$4 sm:$0xff]  }
  0xdd   :  { %2815 = vmatpush1.bf16.msra.mxu1 %v8822_v4  ;;  %v8905_v4 = vld [vmem:[#allocation2 + $0x794] ss:$48 sps:$4 sm:$0xff]  }
  0xde   :  { %2816 = vmatprep.subr.bf16.mxu1 %v8830_v5  ;;  %v8914_v5 = vld [vmem:[#allocation2 + $0x73c] ss:$48 sps:$4 sm:$0xff]  }
  0xdf   :  { %2715 = vmatpush1.bf16.msra.mxu0 %v8813_v2  ;;  %v8897_v2 = vld [vmem:[#allocation2 + $0x730] ss:$48 sps:$4 sm:$0xff]  }
  0xe0   :  { %2716 = vmatprep.subr.bf16.mxu0 %v8821_v3  ;;  %v8906_v3 = vld [vmem:[#allocation2 + $0x6d8] ss:$48 sps:$4 sm:$0xff]  }
  0xe1   :  { %2817 = vmatpush1.bf16.msra.mxu1 %v8828_v8  ;;  %v8911_v8 = vld [vmem:[#allocation2 + $0x7f4] ss:$48 sps:$4 sm:$0xff]  }
  0xe2   :  { %2818 = vmatprep.subr.bf16.mxu1 %v8836_v9  ;;  %v8920_v9 = vld [vmem:[#allocation2 + $0x79c] ss:$48 sps:$4 sm:$0xff]  }
  0xe3   :  { %2717 = vmatpush1.bf16.msra.mxu0 %v8819_v6  ;;  %v8903_v6 = vld [vmem:[#allocation2 + $0x790] ss:$48 sps:$4 sm:$0xff]  }
  0xe4   :  { %2718 = vmatprep.subr.bf16.mxu0 %v8827_v7  ;;  %v8912_v7 = vld [vmem:[#allocation2 + $0x738] ss:$48 sps:$4 sm:$0xff]  }
  0xe5   :  { %2819 = vmatpush1.bf16.msra.mxu1 %v8834_v13  ;;  %v8917_v13 = vld [vmem:[#allocation2 + $0x854] ss:$48 sps:$4 sm:$0xff]  }
  0xe6   :  { %2820 = vmatprep.subr.bf16.mxu1 %v8842_v14  ;;  %v8926_v14 = vld [vmem:[#allocation2 + $0x7fc] ss:$48 sps:$4 sm:$0xff]  }
  0xe7   :  { %2719 = vmatpush1.bf16.msra.mxu0 %v8825_v10  ;;  %v8909_v10 = vld [vmem:[#allocation2 + $0x7f0] ss:$48 sps:$4 sm:$0xff]  }
  0xe8   :  { %2720 = vmatprep.subr.bf16.mxu0 %v8833_v11  ;;  %v8918_v11 = vld [vmem:[#allocation2 + $0x798] ss:$48 sps:$4 sm:$0xff]  }
  0xe9   :  { %2821 = vmatpush1.bf16.msra.mxu1 %v8840_v17  ;;  %v8923_v17 = vld [vmem:[#allocation2 + $0x8b4] ss:$48 sps:$4 sm:$0xff]  }
  0xea   :  { %2822 = vmatprep.subr.bf16.mxu1 %v8848_v18  ;;  %v8932_v18 = vld [vmem:[#allocation2 + $0x85c] ss:$48 sps:$4 sm:$0xff]  }
  0xeb   :  { %2721 = vmatpush1.bf16.msra.mxu0 %v8831_v15  ;;  %v8915_v15 = vld [vmem:[#allocation2 + $0x850] ss:$48 sps:$4 sm:$0xff]  }
  0xec   :  { %2722 = vmatprep.subr.bf16.mxu0 %v8839_v16  ;;  %v8924_v16 = vld [vmem:[#allocation2 + $0x7f8] ss:$48 sps:$4 sm:$0xff]  }
  0xed   :  { %2823 = vmatpush1.bf16.msra.mxu1 %v8846_v21  ;;  %v8930_v21 = vld [vmem:[#allocation2 + $0x858] ss:$48 sps:$4 sm:$0xff]  }
  0xee   :  { %2824 = vmatprep.subr.bf16.mxu1 %v8854_v22  ;;  %v8938_v22 = vld [vmem:[#allocation2 + $0x8bc] ss:$48 sps:$4 sm:$0xff]  }
  0xef   :  { %2723 = vmatpush1.bf16.msra.mxu0 %v8837_v19  ;;  %v8921_v19 = vld [vmem:[#allocation2 + $0x8b0] ss:$48 sps:$4 sm:$0xff]  }
  0xf0   :  { %2724 = vmatprep.subr.bf16.mxu0 %v8845_v20  ;;  %v8929_v20 = vld [vmem:[#allocation2 + $0x914] ss:$48 sps:$4 sm:$0xff]  }
  0xf1   :  { %2825 = vmatpush1.bf16.msra.mxu1 %v8852_v25  ;;  %v8935_v25 = vld [vmem:[#allocation2 + $0x974] ss:$48 sps:$4 sm:$0xff]  }
  0xf2   :  { %2826 = vmatprep.subr.bf16.mxu1 %v8860_v26  ;;  %v8944_v26 = vld [vmem:[#allocation2 + $0x91c] ss:$48 sps:$4 sm:$0xff]  }
  0xf3   :  { %2725 = vmatpush1.bf16.msra.mxu0 %v8843_v23  ;;  %v8927_v23 = vld [vmem:[#allocation2 + $0x910] ss:$48 sps:$4 sm:$0xff]  }
  0xf4   :  { %2726 = vmatprep.subr.bf16.mxu0 %v8851_v24  ;;  %v8936_v24 = vld [vmem:[#allocation2 + $0x8b8] ss:$48 sps:$4 sm:$0xff]  }
  0xf5   :  { %2827 = vmatpush1.bf16.msra.mxu1 %v8858_v29  ;;  %v8941_v29 = vld [vmem:[#allocation2 + $0x9d4] ss:$48 sps:$4 sm:$0xff]  }
  0xf6   :  { %2828 = vmatprep.subr.bf16.mxu1 %v8866_v30  ;;  %v8950_v30 = vld [vmem:[#allocation2 + $0x97c] ss:$48 sps:$4 sm:$0xff]  }
  0xf7   :  { %2727 = vmatpush1.bf16.msra.mxu0 %v8849_v27  ;;  %v8933_v27 = vld [vmem:[#allocation2 + $0x970] ss:$48 sps:$4 sm:$0xff]  }
  0xf8   :  { %2728 = vmatprep.subr.bf16.mxu0 %v8857_v28  ;;  %v8942_v28 = vld [vmem:[#allocation2 + $0x918] ss:$48 sps:$4 sm:$0xff]  }
  0xf9   :  { %2829 = vmatpush1.bf16.msra.mxu1 %v8864_v33  ;;  %v8947_v33 = vld [vmem:[#allocation2 + $0xa34] ss:$48 sps:$4 sm:$0xff]  }
  0xfa   :  { %2830 = vmatprep.subr.bf16.mxu1 %v8872_v34  ;;  %v8956_v34 = vld [vmem:[#allocation2 + $0x9dc] ss:$48 sps:$4 sm:$0xff]  }
  0xfb   :  { %2729 = vmatpush1.bf16.msra.mxu0 %v8855_v31  ;;  %v8939_v31 = vld [vmem:[#allocation2 + $0x9d0] ss:$48 sps:$4 sm:$0xff]  }
  0xfc   :  { %2730 = vmatprep.subr.bf16.mxu0 %v8863_v32  ;;  %v8948_v32 = vld [vmem:[#allocation2 + $0x978] ss:$48 sps:$4 sm:$0xff]  }
  0xfd   :  { %2831 = vmatpush1.bf16.msra.mxu1 %v8870_v36  ;;  %v8954_v36 = vld [vmem:[#allocation2 + $0x9d8] ss:$48 sps:$4 sm:$0xff]  }
  0xfe   :  { %2832 = vmatprep.subr.bf16.mxu1 %v8878_v39  ;;  %v8962_v39 = vld [vmem:[#allocation2 + $0xa3c] ss:$48 sps:$4 sm:$0xff]  }
  0xff   :  { %2731 = vmatpush1.bf16.msra.mxu0 %v8861_v35  ;;  %v8945_v35 = vld [vmem:[#allocation2 + $0xa30] ss:$48 sps:$4 sm:$0xff]  }
 0x100   :  { %2732 = vmatprep.subr.bf16.mxu0 %v8869_v38  ;;  %v8953_v38 = vld [vmem:[#allocation2 + $0xa94] ss:$48 sps:$4 sm:$0xff]  }
 0x101   :  { %2833 = vmatpush1.bf16.msra.mxu1 %v8876_v43  ;;  %v8960_v43 = vld [vmem:[#allocation2 + $0xa38] ss:$48 sps:$4 sm:$0xff]  }
 0x102   :  { %2834 = vmatprep.subr.bf16.mxu1 %v8884_v46  ;;  %v8968_v46 = vld [vmem:[#allocation2 + $0xa9c] ss:$48 sps:$4 sm:$0xff]  }
 0x103   :  { %2733 = vmatpush1.bf16.msra.mxu0 %v8867_v40  ;;  %v8951_v40 = vld [vmem:[#allocation2 + $0xa90] ss:$48 sps:$4 sm:$0xff]  }
 0x104   :  { %2734 = vmatprep.subr.bf16.mxu0 %v8875_v45  ;;  %v8959_v45 = vld [vmem:[#allocation2 + $0xaf4] ss:$48 sps:$4 sm:$0xff]  }
 0x105   :  { %2835 = vmatpush1.bf16.msra.mxu1 %v8882_v48  ;;  %v8966_v48 = vld [vmem:[#allocation2 + $0xa98] ss:$48 sps:$4 sm:$0xff]  }
 0x106   :  { %2836 = vmatprep.subr.bf16.mxu1 %v8890_v50  ;;  %v8974_v50 = vld [vmem:[#allocation2 + $0xafc] ss:$48 sps:$4 sm:$0xff]  }
 0x107   :  { %2735 = vmatpush1.bf16.msra.mxu0 %v8873_v47  ;;  %v8957_v47 = vld [vmem:[#allocation2 + $0xaf0] ss:$48 sps:$4 sm:$0xff]  }
 0x108   :  { %2755 = vmatprep.subr.bf16.mxu0 %v8881_v49  ;;  %v8965_v49 = vld [vmem:[#allocation2 + $0xb54] ss:$48 sps:$4 sm:$0xff]  }
 0x109   :  { %2837 = vmatpush1.bf16.msra.mxu1 %v8888_v54  ;;  %v8972_v54 = vld [vmem:[#allocation2 + $0xaf8] ss:$48 sps:$4 sm:$0xff]  }
 0x10a   :  { %2737 = vmatmul.mubr.bf16.vlgmr.msra.gmra.mrb[8].mxu0 %v9722_v12  ;;  %2857 = vmatprep.subr.bf16.mxu1 %v8896_v57  ;;  %v8977_v57 = vld [vmem:[#allocation2 + $0xb5c] ss:$48 sps:$4 sm:$0xff]  }
 0x10b   :  { %2756 = vmatpush1.bf16.msra.mxu0 %v8879_v52  ;;  %2746 = vmatprep.mubr.bf16.mxu0 %v9738_v41  ;;  %v8963_v52 = vld [vmem:[#allocation2 + $0xb50] ss:$48 sps:$4 sm:$0xff]  }
 0x10c   :  { %2757 = vmatprep.subr.bf16.mxu0 %v8887_v56  ;;  %2839 = vmatmul.mubr.bf16.vlgmr.msra.gmra.mrb[8].mxu1 %v9722_v12  ;;  %v8971_v56 = vld [vmem:[#allocation2 + $0xbb4] ss:$48 sps:$4 sm:$0xff]  }
 0x10d   :  { %2858 = vmatpush1.bf16.msra.mxu1 %v8894_v59  ;;  %2848 = vmatprep.mubr.bf16.mxu1 %v9738_v41  ;;  %v8975_v59 = vld [vmem:[#allocation2 + $0xb58] ss:$48 sps:$4 sm:$0xff]  }
 0x10e   :  { %2859 = vmatprep.subr.bf16.mxu1 %v8902_v61  ;;  %v8983_v61 = vld [vmem:[#allocation2 + $0x24] ss:$48 sps:$4 sm:$0xff]  }
 0x10f   :  { %2758 = vmatpush1.bf16.msra.mxu0 %v8885_v58  ;;  %v8969_v58 = vld [vmem:[#allocation2 + $0xbb0] ss:$48 sps:$4 sm:$0xff]  }
 0x110   :  { %2759 = vmatprep.subr.bf16.mxu0 %v8893_v60  ;;  %v8980_v60 = vld [vmem:[#allocation2 + $0xbbc] ss:$48 sps:$4 sm:$0xff]  }
 0x111   :  { %2860 = vmatpush1.bf16.msra.mxu1 %v8900_v63  ;;  %v8981_v63 = vld [vmem:[#allocation2 + $0x20] ss:$48 sps:$4 sm:$0xff]  }
 0x112   :  { %2747 = vmatmul.mubr.bf16.gmra.mrb[12].mxu0 %v9740_v42  ;;  %2861 = vmatprep.subr.bf16.mxu1 %v8908_v1  ;;  %v8986_v1 = vld [vmem:[#allocation2 + $0x84] ss:$48 sps:$4 sm:$0xff]  }
 0x113   :  { %2760 = vmatpush1.bf16.msra.mxu0 %v8891_v62  ;;  %2787 = vmatprep.mubr.bf16.mxu0 %v9761_v55  ;;  %v8978_v62 = vld [vmem:[#allocation2 + $0xbb8] ss:$48 sps:$4 sm:$0xff]  }
 0x114   :  { %2761 = vmatprep.subr.bf16.mxu0 %v8899_v0  ;;  %2849 = vmatmul.mubr.bf16.gmra.mrb[12].mxu1 %v9740_v42  ;;  %v9022_v0 = vld [vmem:[#allocation2 + $0x2c] ss:$48 sps:$4 sm:$0xff]  }
 0x115   :  { %2862 = vmatpush1.bf16.msra.mxu1 %v8906_v3  ;;  %2889 = vmatprep.mubr.bf16.mxu1 %v9761_v55  ;;  %v8989_v3 = vld [vmem:[#allocation2 + $0xe4] ss:$48 sps:$4 sm:$0xff]  }
 0x116   :  { %2863 = vmatprep.subr.bf16.mxu1 %v8914_v5  ;;  %v9028_v5 = vld [vmem:[#allocation2 + $0x8c] ss:$48 sps:$4 sm:$0xff]  }
 0x117   :  { %2762 = vmatpush1.bf16.msra.mxu0 %v8897_v2  ;;  %v8984_v2 = vld [vmem:[#allocation2 + $0x80] ss:$48 sps:$4 sm:$0xff]  }
 0x118   :  { %2763 = vmatprep.subr.bf16.mxu0 %v8905_v4  ;;  %v9020_v4 = vld [vmem:[#allocation2 + $0x28] ss:$48 sps:$4 sm:$0xff]  }
 0x119   :  { %2864 = vmatpush1.bf16.msra.mxu1 %v8912_v7  ;;  %v8987_v7 = vld [vmem:[#allocation2 + $0xe0] ss:$48 sps:$4 sm:$0xff]  }
 0x11a   :  { %2865 = vmatprep.subr.bf16.mxu1 %v8920_v9  ;;  %v8992_v9 = vld [vmem:[#allocation2 + $0x144] ss:$48 sps:$4 sm:$0xff]  }
 0x11b   :  { %2764 = vmatpush1.bf16.msra.mxu0 %v8903_v6  ;;  %v9026_v6 = vld [vmem:[#allocation2 + $0x88] ss:$48 sps:$4 sm:$0xff]  }
 0x11c   :  { %2765 = vmatprep.subr.bf16.mxu0 %v8911_v8  ;;  %v9034_v8 = vld [vmem:[#allocation2 + $0xec] ss:$48 sps:$4 sm:$0xff]  }
 0x11d   :  { %2866 = vmatpush1.bf16.msra.mxu1 %v8918_v11  ;;  %v8990_v11 = vld [vmem:[#allocation2 + $0x140] ss:$48 sps:$4 sm:$0xff]  }
 0x11e   :  { %2867 = vmatprep.subr.bf16.mxu1 %v8926_v14  ;;  %v8995_v14 = vld [vmem:[#allocation2 + $0x1a4] ss:$48 sps:$4 sm:$0xff]  }
 0x11f   :  { %2766 = vmatpush1.bf16.msra.mxu0 %v8909_v10  ;;  %v9032_v10 = vld [vmem:[#allocation2 + $0xe8] ss:$48 sps:$4 sm:$0xff]  }
 0x120   :  { %2767 = vmatprep.subr.bf16.mxu0 %v8917_v13  ;;  %v9040_v13 = vld [vmem:[#allocation2 + $0x14c] ss:$48 sps:$4 sm:$0xff]  }
 0x121   :  { %2868 = vmatpush1.bf16.msra.mxu1 %v8924_v16  ;;  %v8993_v16 = vld [vmem:[#allocation2 + $0x1a0] ss:$48 sps:$4 sm:$0xff]  }
 0x122   :  { %2869 = vmatprep.subr.bf16.mxu1 %v8932_v18  ;;  %v8998_v18 = vld [vmem:[#allocation2 + $0x204] ss:$48 sps:$4 sm:$0xff]  }
 0x123   :  { %2768 = vmatpush1.bf16.msra.mxu0 %v8915_v15  ;;  %v9038_v15 = vld [vmem:[#allocation2 + $0x148] ss:$48 sps:$4 sm:$0xff]  }
 0x124   :  { %2769 = vmatprep.subr.bf16.mxu0 %v8923_v17  ;;  %v9046_v17 = vld [vmem:[#allocation2 + $0x1ac] ss:$48 sps:$4 sm:$0xff]  }
 0x125   :  { %2870 = vmatpush1.bf16.msra.mxu1 %v8930_v21  ;;  %v9052_v21 = vld [vmem:[#allocation2 + $0x20c] ss:$48 sps:$4 sm:$0xff]  }
 0x126   :  { %2871 = vmatprep.subr.bf16.mxu1 %v8938_v22  ;;  %v9001_v22 = vld [vmem:[#allocation2 + $0x264] ss:$48 sps:$4 sm:$0xff]  }
 0x127   :  { %2770 = vmatpush1.bf16.msra.mxu0 %v8921_v19  ;;  %v9044_v19 = vld [vmem:[#allocation2 + $0x1a8] ss:$48 sps:$4 sm:$0xff]  }
 0x128   :  { %2771 = vmatprep.subr.bf16.mxu0 %v8929_v20  ;;  %v8996_v20 = vld [vmem:[#allocation2 + $0x200] ss:$48 sps:$4 sm:$0xff]  }
 0x129   :  { %2872 = vmatpush1.bf16.msra.mxu1 %v8936_v24  ;;  %v8999_v24 = vld [vmem:[#allocation2 + $0x260] ss:$48 sps:$4 sm:$0xff]  }
 0x12a   :  { %2873 = vmatprep.subr.bf16.mxu1 %v8944_v26  ;;  %v9004_v26 = vld [vmem:[#allocation2 + $0x2c4] ss:$48 sps:$4 sm:$0xff]  }
 0x12b   :  { %2772 = vmatpush1.bf16.msra.mxu0 %v8927_v23  ;;  %v9050_v23 = vld [vmem:[#allocation2 + $0x208] ss:$48 sps:$4 sm:$0xff]  }
 0x12c   :  { %2773 = vmatprep.subr.bf16.mxu0 %v8935_v25  ;;  %v9058_v25 = vld [vmem:[#allocation2 + $0x26c] ss:$48 sps:$4 sm:$0xff]  }
 0x12d   :  { %2874 = vmatpush1.bf16.msra.mxu1 %v8942_v28  ;;  %v9064_v28 = vld [vmem:[#allocation2 + $0x2cc] ss:$48 sps:$4 sm:$0xff]  }
 0x12e   :  { %2875 = vmatprep.subr.bf16.mxu1 %v8950_v30  ;;  %v9062_v30 = vld [vmem:[#allocation2 + $0x2c8] ss:$48 sps:$4 sm:$0xff]  }
 0x12f   :  { %2774 = vmatpush1.bf16.msra.mxu0 %v8933_v27  ;;  %v9002_v27 = vld [vmem:[#allocation2 + $0x2c0] ss:$48 sps:$4 sm:$0xff]  }
 0x130   :  { %2775 = vmatprep.subr.bf16.mxu0 %v8941_v29  ;;  %v9007_v29 = vld [vmem:[#allocation2 + $0x324] ss:$48 sps:$4 sm:$0xff]  }
 0x131   :  { %2876 = vmatpush1.bf16.msra.mxu1 %v8948_v32  ;;  %v9070_v32 = vld [vmem:[#allocation2 + $0x32c] ss:$48 sps:$4 sm:$0xff]  }
 0x132   :  { %2877 = vmatprep.subr.bf16.mxu1 %v8956_v34  ;;  %v9068_v34 = vld [vmem:[#allocation2 + $0x328] ss:$48 sps:$4 sm:$0xff]  }
 0x133   :  { %2776 = vmatpush1.bf16.msra.mxu0 %v8939_v31  ;;  %v9005_v31 = vld [vmem:[#allocation2 + $0x320] ss:$48 sps:$4 sm:$0xff]  }
 0x134   :  { %2777 = vmatprep.subr.bf16.mxu0 %v8947_v33  ;;  %v9010_v33 = vld [vmem:[#allocation2 + $0x384] ss:$48 sps:$4 sm:$0xff]  }
 0x135   :  { %2878 = vmatpush1.bf16.msra.mxu1 %v8954_v36  ;;  %v9076_v36 = vld [vmem:[#allocation2 + $0x38c] ss:$48 sps:$4 sm:$0xff]  }
 0x136   :  { %2879 = vmatprep.subr.bf16.mxu1 %v8962_v39  ;;  %v9074_v39 = vld [vmem:[#allocation2 + $0x388] ss:$48 sps:$4 sm:$0xff]  }
 0x137   :  { %2778 = vmatpush1.bf16.msra.mxu0 %v8945_v35  ;;  %v9008_v35 = vld [vmem:[#allocation2 + $0x380] ss:$48 sps:$4 sm:$0xff]  }
 0x138   :  { %2779 = vmatprep.subr.bf16.mxu0 %v8953_v38  ;;  %v9013_v38 = vld [vmem:[#allocation2 + $0x3e4] ss:$48 sps:$4 sm:$0xff]  }
 0x139   :  { %2880 = vmatpush1.bf16.msra.mxu1 %v8960_v43  ;;  %v9082_v43 = vld [vmem:[#allocation2 + $0x3ec] ss:$48 sps:$4 sm:$0xff]  }
 0x13a   :  { %2881 = vmatprep.subr.bf16.mxu1 %v8968_v46  ;;  %v9080_v46 = vld [vmem:[#allocation2 + $0x3e8] ss:$48 sps:$4 sm:$0xff]  }
 0x13b   :  { %2780 = vmatpush1.bf16.msra.mxu0 %v8951_v40  ;;  %v9011_v40 = vld [vmem:[#allocation2 + $0x3e0] ss:$48 sps:$4 sm:$0xff]  }
 0x13c   :  { %2781 = vmatprep.subr.bf16.mxu0 %v8959_v45  ;;  %v9016_v45 = vld [vmem:[#allocation2 + $0x444] ss:$48 sps:$4 sm:$0xff]  }
 0x13d   :  { %2882 = vmatpush1.bf16.msra.mxu1 %v8966_v48  ;;  %v9088_v48 = vld [vmem:[#allocation2 + $0x44c] ss:$48 sps:$4 sm:$0xff]  }
 0x13e   :  { %2883 = vmatprep.subr.bf16.mxu1 %v8974_v50  ;;  %v9086_v50 = vld [vmem:[#allocation2 + $0x448] ss:$48 sps:$4 sm:$0xff]  }
 0x13f   :  { %2782 = vmatpush1.bf16.msra.mxu0 %v8957_v47  ;;  %v9014_v47 = vld [vmem:[#allocation2 + $0x440] ss:$48 sps:$4 sm:$0xff]  }
 0x140   :  { %2783 = vmatprep.subr.bf16.mxu0 %v8965_v49  ;;  %v9019_v49 = vld [vmem:[#allocation2 + $0x4a4] ss:$48 sps:$4 sm:$0xff]  }
 0x141   :  { %2884 = vmatpush1.bf16.msra.mxu1 %v8972_v54  ;;  %v9094_v54 = vld [vmem:[#allocation2 + $0x4ac] ss:$48 sps:$4 sm:$0xff]  }
 0x142   :  { %2885 = vmatprep.subr.bf16.mxu1 %v8977_v57  ;;  %v9092_v57 = vld [vmem:[#allocation2 + $0x4a8] ss:$48 sps:$4 sm:$0xff]  }
 0x143   :  { %2784 = vmatpush1.bf16.msra.mxu0 %v8963_v52  ;;  %v9017_v52 = vld [vmem:[#allocation2 + $0x4a0] ss:$48 sps:$4 sm:$0xff]  }
 0x144   :  { %2785 = vmatprep.subr.bf16.mxu0 %v8971_v56  ;;  %v9025_v56 = vld [vmem:[#allocation2 + $0x504] ss:$48 sps:$4 sm:$0xff]  }
 0x145   :  { %2886 = vmatpush1.bf16.msra.mxu1 %v8975_v59  ;;  %v9100_v59 = vld [vmem:[#allocation2 + $0x50c] ss:$48 sps:$4 sm:$0xff]  }
 0x146   :  { %2887 = vmatprep.subr.bf16.mxu1 %v8980_v60  ;;  %v9031_v60 = vld [vmem:[#allocation2 + $0x564] ss:$48 sps:$4 sm:$0xff]  }
 0x147   :  { %2786 = vmatpush1.bf16.msra.mxu0 %v8969_v58  ;;  %v9023_v58 = vld [vmem:[#allocation2 + $0x500] ss:$48 sps:$4 sm:$0xff]  }
 0x148   :  { %2908 = vmatprep.subr.bf16.mxu0 %v8983_v61  ;;  %v9098_v61 = vld [vmem:[#allocation2 + $0x508] ss:$48 sps:$4 sm:$0xff]  }
 0x149   :  { %2888 = vmatpush1.bf16.msra.mxu1 %v8978_v62  ;;  %v9029_v62 = vld [vmem:[#allocation2 + $0x560] ss:$48 sps:$4 sm:$0xff]  }
 0x14a   :  { %2788 = vmatmul.mubr.bf16.vlgmr.msra.gmra.mrb[8].mxu0 %v9784_v37  ;;  %3010 = vmatprep.subr.bf16.mxu1 %v9022_v0  ;;  %v9037_v0 = vld [vmem:[#allocation2 + $0x5c4] ss:$48 sps:$4 sm:$0xff]  }
 0x14b   :  { %2797 = vmatprep.mubr.bf16.mxu0 %v9786_v44  ;;  %2909 = vmatpush1.bf16.msra.mxu0 %v8981_v63  ;;  %v9106_v63 = vld [vmem:[#allocation2 + $0x56c] ss:$48 sps:$4 sm:$0xff]  }
 0x14c   :  { %2910 = vmatprep.subr.bf16.mxu0 %v8986_v1  ;;  %2890 = vmatmul.mubr.bf16.vlgmr.msra.gmra.mrb[8].mxu1 %v9784_v37  ;;  %v9104_v1 = vld [vmem:[#allocation2 + $0x568] ss:$48 sps:$4 sm:$0xff]  }
 0x14d   :  { %2899 = vmatprep.mubr.bf16.mxu1 %v9786_v44  ;;  %3011 = vmatpush1.bf16.msra.mxu1 %v9020_v4  ;;  %v9043_v4 = vld [vmem:[#allocation2 + $0x624] ss:$48 sps:$4 sm:$0xff]  }
 0x14e   :  { %3012 = vmatprep.subr.bf16.mxu1 %v9028_v5  ;;  %v9110_v5 = vld [vmem:[#allocation2 + $0x5c8] ss:$48 sps:$4 sm:$0xff]  }
 0x14f   :  { %2911 = vmatpush1.bf16.msra.mxu0 %v8984_v2  ;;  %v9035_v2 = vld [vmem:[#allocation2 + $0x5c0] ss:$48 sps:$4 sm:$0xff]  }
 0x150   :  { %2912 = vmatprep.subr.bf16.mxu0 %v8989_v3  ;;  %v9112_v3 = vld [vmem:[#allocation2 + $0x5cc] ss:$48 sps:$4 sm:$0xff]  }
 0x151   :  { %3013 = vmatpush1.bf16.msra.mxu1 %v9026_v6  ;;  %v9041_v6 = vld [vmem:[#allocation2 + $0x620] ss:$48 sps:$4 sm:$0xff]  }
 0x152   :  { %2798 = vmatmul.mubr.bf16.gmra.mrb[12].mxu0 %v9791_v51  ;;  %3014 = vmatprep.subr.bf16.mxu1 %v9034_v8  ;;  %v9049_v8 = vld [vmem:[#allocation2 + $0x684] ss:$48 sps:$4 sm:$0xff]  }
 0x153   :  { %2940 = vmatprep.mubr.bf16.mxu0 %v9703_v53  ;;  %2913 = vmatpush1.bf16.msra.mxu0 %v8987_v7  ;;  %v9118_v7 = vld [vmem:[#allocation2 + $0x62c] ss:$48 sps:$4 sm:$0xff]  }
 0x154   :  { %2914 = vmatprep.subr.bf16.mxu0 %v8992_v9  ;;  %2900 = vmatmul.mubr.bf16.gmra.mrb[12].mxu1 %v9791_v51  ;;  %v9116_v9 = vld [vmem:[#allocation2 + $0x628] ss:$48 sps:$4 sm:$0xff]  }
 0x155   :  { %3015 = vmatpush1.bf16.msra.mxu1 %v9032_v10  ;;  %3042 = vmatprep.mubr.bf16.mxu1 %v9703_v53  ;;  %v9056_v53 = vld [vmem:[#allocation2 + $0x268] ss:$48 sps:$4 sm:$0xff]   ;;  %v9047_v10 = vld [vmem:[#allocation2 + $0x680] ss:$48 sps:$4 sm:$0xff]  }
 0x156   :  { %3016 = vmatprep.subr.bf16.mxu1 %v9040_v13  ;;  %v9055_v13 = vld [vmem:[#allocation2 + $0x6e4] ss:$48 sps:$4 sm:$0xff]  }
 0x157   :  { %2915 = vmatpush1.bf16.msra.mxu0 %v8990_v11  ;;  %v9124_v11 = vld [vmem:[#allocation2 + $0x68c] ss:$48 sps:$4 sm:$0xff]  }
 0x158   :  { %2916 = vmatprep.subr.bf16.mxu0 %v8995_v14  ;;  %v9122_v14 = vld [vmem:[#allocation2 + $0x688] ss:$48 sps:$4 sm:$0xff]  }
 0x159   :  { %3017 = vmatpush1.bf16.msra.mxu1 %v9038_v15  ;;  %v520_v15 = vlaneseq }
 0x15a   :  { %3018 = vmatprep.subr.bf16.mxu1 %v9046_v17  ;;  %v9130_v17 = vld [vmem:[#allocation2 + $0x6ec] ss:$48 sps:$4 sm:$0xff]  }
 0x15b   :  { %2917 = vmatpush1.bf16.msra.mxu0 %v8993_v16  ;;  %v9053_v16 = vld [vmem:[#allocation2 + $0x6e0] ss:$48 sps:$4 sm:$0xff]  }
 0x15c   :  { %2918 = vmatprep.subr.bf16.mxu0 %v8998_v18  ;;  %v9061_v18 = vld [vmem:[#allocation2 + $0x744] ss:$48 sps:$4 sm:$0xff]  }
 0x15d   :  { %3019 = vmatpush1.bf16.msra.mxu1 %v9044_v19  ;;  %v9128_v19 = vld [vmem:[#allocation2 + $0x6e8] ss:$48 sps:$4 sm:$0xff]  }
 0x15e   :  { %3020 = vmatprep.subr.bf16.mxu1 %v9052_v21  ;;  %v9059_v21 = vld [vmem:[#allocation2 + $0x740] ss:$48 sps:$4 sm:$0xff]  }
 0x15f   :  { %2919 = vmatpush1.bf16.msra.mxu0 %v8996_v20  ;;  %v9820_v20 = vshrl.u32 %v520_v15, 7  ;;  %v9097_v15 = vld [vmem:[#allocation2 + $0x984] ss:$48 sps:$4 sm:$0xff]  }
 0x160   :  { %2920 = vmatprep.subr.bf16.mxu0 %v9001_v22  ;;  %v9067_v22 = vld [vmem:[#allocation2 + $0x7a4] ss:$48 sps:$4 sm:$0xff]  }
 0x161   :  { %3021 = vmatpush1.bf16.msra.mxu1 %v9050_v23  ;;  %v9826_v23 = vsub.s32 0, %v9820_v20 }
 0x162   :  { %3022 = vmatprep.subr.bf16.mxu1 %v9058_v25  ;;  %v9828_v25 = vld [vmem:[#allocation4] sm:$0xff] }
 0x163   :  { %2921 = vmatpush1.bf16.msra.mxu0 %v8999_v24  ;;  %11516 = vst [vmem:[#allocation12_spill] sm:$0xff] %v9826_v23  ;;  %v9065_v24 = vld [vmem:[#allocation2 + $0x7a0] ss:$48 sps:$4 sm:$0xff]  }
 0x164   :  { %2922 = vmatprep.subr.bf16.mxu0 %v9004_v26  ;;  %v9831_v26 = vsub.s32 1, %v9820_v20 }
 0x165   :  { %3023 = vmatpush1.bf16.msra.mxu1 %v9056_v53  ;;  %v9073_v53 = vld [vmem:[#allocation2 + $0x804] ss:$48 sps:$4 sm:$0xff]  }
 0x166   :  { %3024 = vmatprep.subr.bf16.mxu1 %v9064_v28  ;;  %11517 = vst [vmem:[#allocation13_spill] sm:$0xff] %v9831_v26  ;;  %v9071_v28 = vld [vmem:[#allocation2 + $0x800] ss:$48 sps:$4 sm:$0xff]  }
 0x167   :  { %2923 = vmatpush1.bf16.msra.mxu0 %v9002_v27  ;;  %v9834_v27 = vsub.s32 2, %v9820_v20 }
 0x168   :  { %2924 = vmatprep.subr.bf16.mxu0 %v9007_v29  ;;  %v9139_v29 = vld [vmem:[#allocation2 + $0x7ac] ss:$48 sps:$4 sm:$0xff]  }
 0x169   :  { %3025 = vmatpush1.bf16.msra.mxu1 %v9062_v30  ;;  %11518 = vst [vmem:[#allocation14_spill] sm:$0xff] %v9834_v27 }
 0x16a   :  { %3026 = vmatprep.subr.bf16.mxu1 %v9070_v32  ;;  %v9079_v32 = vld [vmem:[#allocation2 + $0x864] ss:$48 sps:$4 sm:$0xff]  }
 0x16b   :  { %2925 = vmatpush1.bf16.msra.mxu0 %v9005_v31  ;;  %v527_v31 = vrot.slane %v9828_v25, %v9831_v26 }
 0x16c   :  { %2926 = vmatprep.subr.bf16.mxu0 %v9010_v33  ;;  %v9137_v33 = vld [vmem:[#allocation2 + $0x7a8] ss:$48 sps:$4 sm:$0xff]  }
 0x16d   :  { %3027 = vmatpush1.bf16.msra.mxu1 %v9068_v34 }
 0x16e   :  { %3028 = vmatprep.subr.bf16.mxu1 %v9076_v36 }
 0x16f   :  { %2927 = vmatpush1.bf16.msra.mxu0 %v9008_v35  ;;  %v531_v35 = vrot.slane %v9828_v25, %v9834_v27 }
 0x170   :  { %2928 = vmatprep.subr.bf16.mxu0 %v9013_v38 }
 0x171   :  { %3029 = vmatpush1.bf16.msra.mxu1 %v9074_v39 }
 0x172   :  { %3030 = vmatprep.subr.bf16.mxu1 %v9082_v43 }
 0x173   :  { %2929 = vmatpush1.bf16.msra.mxu0 %v9011_v40 }
 0x174   :  { %2930 = vmatprep.subr.bf16.mxu0 %v9016_v45  ;;  %v9077_v45 = vld [vmem:[#allocation2 + $0x860] ss:$48 sps:$4 sm:$0xff]  }
 0x175   :  { %3031 = vmatpush1.bf16.msra.mxu1 %v9080_v46  ;;  %v9142_v46 = vld [vmem:[#allocation2 + $0x80c] ss:$48 sps:$4 sm:$0xff]  }
 0x176   :  { %3032 = vmatprep.subr.bf16.mxu1 %v9088_v48 }
 0x177   :  { %2931 = vmatpush1.bf16.msra.mxu0 %v9014_v47 }
 0x178   :  { %2932 = vmatprep.subr.bf16.mxu0 %v9019_v49 }
 0x179   :  { %3033 = vmatpush1.bf16.msra.mxu1 %v9086_v50  ;;  %v9085_v50 = vld [vmem:[#allocation2 + $0x8c4] ss:$48 sps:$4 sm:$0xff]  }
 0x17a   :  { %3034 = vmatprep.subr.bf16.mxu1 %v9094_v54 }
 0x17b   :  { %2933 = vmatpush1.bf16.msra.mxu0 %v9017_v52  ;;  %v9140_v52 = vld [vmem:[#allocation2 + $0x808] ss:$48 sps:$4 sm:$0xff]  }
 0x17c   :  { %2934 = vmatprep.subr.bf16.mxu0 %v9025_v56 }
 0x17d   :  { %3035 = vmatpush1.bf16.msra.mxu1 %v9092_v57 }
 0x17e   :  { %3036 = vmatprep.subr.bf16.mxu1 %v9100_v59 }
 0x17f   :  { %2935 = vmatpush1.bf16.msra.mxu0 %v9023_v58 }
 0x180   :  { %2936 = vmatprep.subr.bf16.mxu0 %v9031_v60 }
 0x181   :  { %3037 = vmatpush1.bf16.msra.mxu1 %v9098_v61 }
 0x182   :  { %3038 = vmatprep.subr.bf16.mxu1 %v9106_v63 }
 0x183   :  { %2937 = vmatpush1.bf16.msra.mxu0 %v9029_v62 }
 0x184   :  { %2938 = vmatprep.subr.bf16.mxu0 %v9037_v0  ;;  %v9083_v0 = vld [vmem:[#allocation2 + $0x8c0] ss:$48 sps:$4 sm:$0xff]  }
 0x185   :  { %3039 = vmatpush1.bf16.msra.mxu1 %v9104_v1  ;;  %v9145_v1 = vld [vmem:[#allocation2 + $0x86c] ss:$48 sps:$4 sm:$0xff]  }
 0x186   :  { %3040 = vmatprep.subr.bf16.mxu1 %v9112_v3 }
 0x187   :  { %2939 = vmatpush1.bf16.msra.mxu0 %v9035_v2 }
 0x188   :  { %2959 = vmatprep.subr.bf16.mxu0 %v9043_v4 }
 0x189   :  { %3041 = vmatpush1.bf16.msra.mxu1 %v9110_v5  ;;  %v9091_v5 = vld [vmem:[#allocation2 + $0x924] ss:$48 sps:$4 sm:$0xff]  }
 0x18a   :  { %2941 = vmatmul.mubr.bf16.vlgmr.msra.gmra.mrb[16].mxu0 %v9722_v12  ;;  %3061 = vmatprep.subr.bf16.mxu1 %v9118_v7 }
 0x18b   :  { %2960 = vmatpush1.bf16.msra.mxu0 %v9041_v6  ;;  %2950 = vmatprep.mubr.bf16.mxu0 %v9738_v41  ;;  %v9143_v6 = vld [vmem:[#allocation2 + $0x868] ss:$48 sps:$4 sm:$0xff]  }
 0x18c   :  { %2961 = vmatprep.subr.bf16.mxu0 %v9049_v8  ;;  %3043 = vmatmul.mubr.bf16.vlgmr.msra.gmra.mrb[16].mxu1 %v9722_v12  ;;  %v9136_v12 = vld [vmem:[#allocation2 + $0x74c] ss:$48 sps:$4 sm:$0xff]  }
 0x18d   :  { %3062 = vmatpush1.bf16.msra.mxu1 %v9116_v9  ;;  %3052 = vmatprep.mubr.bf16.mxu1 %v9738_v41  ;;  %v9134_v41 = vld [vmem:[#allocation2 + $0x748] ss:$48 sps:$4 sm:$0xff]  }
 0x18e   :  { %3063 = vmatprep.subr.bf16.mxu1 %v9124_v11 }
 0x18f   :  { %2962 = vmatpush1.bf16.msra.mxu0 %v9047_v10 }
 0x190   :  { %2963 = vmatprep.subr.bf16.mxu0 %v9055_v13 }
 0x191   :  { %3064 = vmatpush1.bf16.msra.mxu1 %v9122_v14  ;;  %v9089_v14 = vld [vmem:[#allocation2 + $0x920] ss:$48 sps:$4 sm:$0xff]  }
 0x192   :  { %2951 = vmatmul.mubr.bf16.gmra.mrb[20].mxu0 %v9740_v42  ;;  %3065 = vmatprep.subr.bf16.mxu1 %v9130_v17 }
 0x193   :  { %2964 = vmatpush1.bf16.msra.mxu0 %v9053_v16  ;;  %2991 = vmatprep.mubr.bf16.mxu0 %v9761_v55 }
 0x194   :  { %2965 = vmatprep.subr.bf16.mxu0 %v9061_v18  ;;  %3053 = vmatmul.mubr.bf16.gmra.mrb[20].mxu1 %v9740_v42  ;;  %v9837_v42 = vsub.s32 3, %v9820_v20 }
 0x195   :  { %3066 = vmatpush1.bf16.msra.mxu1 %v9128_v19  ;;  %3093 = vmatprep.mubr.bf16.mxu1 %v9761_v55  ;;  %v523_v55 = vrot.slane %v9828_v25, %v9826_v23  ;;  %v9148_v19 = vld [vmem:[#allocation2 + $0x8cc] ss:$48 sps:$4 sm:$0xff]  }
 0x196   :  { %3067 = vmatprep.subr.bf16.mxu1 %v9136_v12  ;;  %11519 = vst [vmem:[#allocation15_spill] sm:$0xff] %v9837_v42  ;;  %v9847_v38 = vrot.slane %v9828_v25, %v9837_v42 }
 0x197   :  { %2966 = vmatpush1.bf16.msra.mxu0 %v9059_v21 }
 0x198   :  { %2967 = vmatprep.subr.bf16.mxu0 %v9067_v22 }
 0x199   :  { %3068 = vmatpush1.bf16.msra.mxu1 %v9134_v41 }
 0x19a   :  { %3069 = vmatprep.subr.bf16.mxu1 %v9139_v29 }
 0x19b   :  { %2968 = vmatpush1.bf16.msra.mxu0 %v9065_v24 }
 0x19c   :  { %2969 = vmatprep.subr.bf16.mxu0 %v9073_v53  ;;  %v9146_v53 = vld [vmem:[#allocation2 + $0x8c8] ss:$48 sps:$4 sm:$0xff]  }
 0x19d   :  { %v2585_v30 = vpop.f32.mrb[0].mxu0  ;;  %3070 = vmatpush1.bf16.msra.mxu1 %v9137_v33 }
 0x19e   :  { %v2587_v34 = vpop.f32.mrb[1].mxu0  ;;  %v9849_v39 = vadd.f32 %v2585_v30, %v523_v55  ;;  %3071 = vmatprep.subr.bf16.mxu1 %v9142_v46  ;;  %v9095_v46 = vld [vmem:[#allocation2 + $0x980] ss:$48 sps:$4 sm:$0xff]  }
 0x19f   :  { %v2589_v36 = vpop.f32.mrb[2].mxu0  ;;  %2970 = vmatpush1.bf16.msra.mxu0 %v9071_v28  ;;  %v9853_v47 = vadd.f32 %v2587_v34, %v527_v31  ;;  %v2687_v49 = vpop.f32.mrb[0].mxu1 }
 0x1a0   :  { %v9851_v40 = vadd.f32 %v2589_v36, %v523_v55  ;;  %v2591_v43 = vpop.f32.mrb[3].mxu0  ;;  %2971 = vmatprep.subr.bf16.mxu0 %v9079_v32  ;;  %v9859_v56 = vadd.f32 %v2687_v49, %v531_v35  ;;  %v2689_v57 = vpop.f32.mrb[1].mxu1  ;;  %v9151_v49 = vld [vmem:[#allocation2 + $0x92c] ss:$48 sps:$4 sm:$0xff]  }
 0x1a1   :  { %v9855_v48 = vadd.f32 %v2591_v43, %v527_v31  ;;  %v9866_v60 = vadd.f32 %v2689_v57, %v9847_v38  ;;  %v2691_v61 = vpop.f32.mrb[2].mxu1  ;;  %3072 = vmatpush1.bf16.msra.mxu1 %v9140_v52  ;;  %v9103_v57 = vld [vmem:[#allocation2 + $0x9e4] ss:$48 sps:$4 sm:$0xff]  }
 0x1a2   :  { %v3193_v54 = vpack.c.bf16 %v9851_v40, %v9849_v39  ;;  %v8442_v58 = vpack.i.bf16 %v9851_v40, %v9849_v39  ;;  %v9868_v62 = vadd.f32 %v2691_v61, %v531_v35  ;;  %v2693_v63 = vpop.f32.mrb[3].mxu1  ;;  %3073 = vmatprep.subr.bf16.mxu1 %v9145_v1  ;;  %v3146_v16 = vrot.slane %v9851_v40, 2  ;;  %v9149_v61 = vld [vmem:[#allocation2 + $0x928] ss:$48 sps:$4 sm:$0xff]  }
 0x1a3   :  { %v3195_v59 = vpack.c.bf16 %v9855_v48, %v9853_v47  ;;  %2972 = vmatpush1.bf16.msra.mxu0 %v9077_v45  ;;  %v8452_v2 = vpack.i.bf16 %v9855_v48, %v9853_v47  ;;  %v9873_v4 = vadd.f32 %v2693_v63, %v9847_v38  ;;  %v3158_v22 = vrot.slane %v9855_v48, 2 }
 0x1a4   :  { %2973 = vmatprep.subr.bf16.mxu0 %v9085_v50  ;;  %v3197_v9 = vpack.c.bf16 %v9868_v62, %v9859_v56  ;;  %v8462_v21 = vpack.i.bf16 %v9868_v62, %v9859_v56 }
 0x1a5   :  { %v2595_v3 = vpop.f32.mrb[4].mxu0  ;;  %v3199_v13 = vpack.c.bf16 %v9873_v4, %v9866_v60  ;;  %3074 = vmatpush1.bf16.msra.mxu1 %v9143_v6  ;;  %v8472_v12 = vpack.i.bf16 %v9873_v4, %v9866_v60  ;;  %v3182_v28 = vrot.slane %v9873_v4, 2  ;;  %v9154_v6 = vld [vmem:[#allocation2 + $0x98c] ss:$48 sps:$4 sm:$0xff]  }
 0x1a6   :  { %v8314_v7 = vadd.f32 %v2595_v3, %v523_v55  ;;  %v2597_v8 = vpop.f32.mrb[5].mxu0  ;;  %v3170_v55 = vrot.slane %v9868_v62, 2  ;;  %3075 = vmatprep.subr.bf16.mxu1 %v9148_v19  ;;  %v9113_v19 = vld [vmem:[#allocation2 + $0xaa0] ss:$48 sps:$4 sm:$0xff]  }
 0x1a7   :  { %v8315_v10 = vadd.f32 %v2597_v8, %v527_v31  ;;  %v2599_v11 = vpop.f32.mrb[6].mxu0  ;;  %2974 = vmatpush1.bf16.msra.mxu0 %v9083_v0  ;;  %v2697_v24 = vpop.f32.mrb[4].mxu1 }
 0x1a8   :  { %v9880_v17 = vrot.slane %v8314_v7, 2  ;;  %v2600_v18 = vpop.f32.mrb[7].mxu0  ;;  %2975 = vmatprep.subr.bf16.mxu0 %v9091_v5  ;;  %v8320_v29 = vadd.f32 %v2697_v24, %v531_v35  ;;  %v2699_v30 = vpop.f32.mrb[5].mxu1  ;;  %v9101_v5 = vld [vmem:[#allocation2 + $0x9e0] ss:$48 sps:$4 sm:$0xff]  }
 0x1a9   :  { %v9887_v41 = vrot.slane %v8315_v10, 2  ;;  %v8321_v32 = vadd.f32 %v2699_v30, %v9847_v38  ;;  %v2701_v33 = vpop.f32.mrb[6].mxu1  ;;  %3076 = vmatpush1.bf16.msra.mxu1 %v9146_v53  ;;  %v9109_v10 = vld [vmem:[#allocation2 + $0xa44] ss:$48 sps:$4 sm:$0xff]   ;;  %v9152_v11 = vld [vmem:[#allocation2 + $0x988] ss:$48 sps:$4 sm:$0xff]  }
 0x1aa   :  { %v9893_v31 = vsel %vm3145_vm1, %v3146_v16, %v9880_v17  ;;  %v9904_v35 = vrot.slane %v8320_v29, 2  ;;  %v2702_v45 = vpop.f32.mrb[7].mxu1  ;;  %3077 = vmatprep.subr.bf16.mxu1 %v9151_v49  ;;  %v9115_v16 = vld [vmem:[#allocation2 + $0xaa4] ss:$48 sps:$4 sm:$0xff]   ;;  %v9155_v18 = vld [vmem:[#allocation2 + $0x9e8] ss:$48 sps:$4 sm:$0xff]  }
 0x1ab   :  { %v8482_v34 = vpack.i.bf16 %v9880_v17, %v9893_v31  ;;  %v3201_v36 = vpack.c.bf16 %v9880_v17, %v9893_v31  ;;  %v9902_v43 = vsel %vm3145_vm1, %v3158_v22, %v9887_v41  ;;  %2976 = vmatpush1.bf16.msra.mxu0 %v9089_v14  ;;  %v9910_v52 = vrot.slane %v8321_v32, 2  ;;  %v9107_v14 = vld [vmem:[#allocation2 + $0xa40] ss:$48 sps:$4 sm:$0xff]   ;;  %v9160_v22 = vld [vmem:[#allocation2 + $0xa4c] ss:$48 sps:$4 sm:$0xff]  }
 0x1ac   :  { %v8492_v38 = vpack.i.bf16 %v9887_v41, %v9902_v43  ;;  %v3203_v50 = vpack.c.bf16 %v9887_v41, %v9902_v43  ;;  %2977 = vmatprep.subr.bf16.mxu0 %v9097_v15  ;;  %v9914_v63 = vsel %vm3145_vm1, %v3170_v55, %v9904_v35  ;;  %v9157_v15 = vld [vmem:[#allocation2 + $0x9ec] ss:$48 sps:$4 sm:$0xff]   ;;  %v9121_v24 = vld [vmem:[#allocation2 + $0xb04] ss:$48 sps:$4 sm:$0xff]   ;;  %v9158_v53 = vld [vmem:[#allocation2 + $0xa48] ss:$48 sps:$4 sm:$0xff]  }
 0x1ad   :  { %3078 = vmatpush1.bf16.msra.mxu1 %v9149_v61  ;;  %v8502_v0 = vpack.i.bf16 %v9904_v35, %v9914_v63  ;;  %v3205_v1 = vpack.c.bf16 %v9904_v35, %v9914_v63  ;;  %v9922_v3 = vsel %vm3145_vm1, %v3182_v28, %v9910_v52  ;;  %v9119_v55 = vld [vmem:[#allocation2 + $0xb00] ss:$48 sps:$4 sm:$0xff]   ;;  %v9163_v28 = vld [vmem:[#allocation2 + $0xaac] ss:$48 sps:$4 sm:$0xff]   ;;  %v9127_v29 = vld [vmem:[#allocation2 + $0xb64] ss:$48 sps:$4 sm:$0xff]  }
 0x1ae   :  { %v8512_v7 = vpack.i.bf16 %v9910_v52, %v9922_v3  ;;  %v3207_v8 = vpack.c.bf16 %v9910_v52, %v9922_v3  ;;  %3079 = vmatprep.subr.bf16.mxu1 %v9154_v6  ;;  %v9161_v30 = vld [vmem:[#allocation2 + $0xaa8] ss:$48 sps:$4 sm:$0xff]   ;;  %v9125_v32 = vld [vmem:[#allocation2 + $0xb60] ss:$48 sps:$4 sm:$0xff]   ;;  %v9166_v33 = vld [vmem:[#allocation2 + $0xb0c] ss:$48 sps:$4 sm:$0xff]  }
 0x1af   :  { %2978 = vmatpush1.bf16.msra.mxu0 %v9095_v46  ;;  %v9133_v45 = vld [vmem:[#allocation2 + $0xbc4] ss:$48 sps:$4 sm:$0xff]   ;;  %v9164_v46 = vld [vmem:[#allocation2 + $0xb08] ss:$48 sps:$4 sm:$0xff]   ;;  %v9131_v49 = vld [vmem:[#allocation2 + $0xbc0] ss:$48 sps:$4 sm:$0xff]  }
 0x1b0   :  { %2979 = vmatprep.subr.bf16.mxu0 %v9103_v57  ;;  %v9169_v57 = vld [vmem:[#allocation2 + $0xb6c] ss:$48 sps:$4 sm:$0xff]   ;;  %v9167_v61 = vld [vmem:[#allocation2 + $0xb68] ss:$48 sps:$4 sm:$0xff]  }
 0x1b1   :  { %3080 = vmatpush1.bf16.msra.mxu1 %v9152_v11  ;;  %v9170_v6 = vld [vmem:[#allocation2 + $0xbc8] ss:$48 sps:$4 sm:$0xff]   ;;  %v538_v11 = vsub.s32 4, %v9820_v20 }
 0x1b2   :  { %3081 = vmatprep.subr.bf16.mxu1 %v9157_v15  ;;  %v546_v15 = vsub.s32 6, %v9820_v20 }
 0x1b3   :  { %2980 = vmatpush1.bf16.msra.mxu0 %v9101_v5  ;;  %v9172_v5 = vld [vmem:[#allocation2 + $0xbcc] ss:$48 sps:$4 sm:$0xff]  }
 0x1b4   :  { %2981 = vmatprep.subr.bf16.mxu0 %v9109_v10  ;;  %v11430_v10 = vmov 0.0  }
 0x1b5   :  { %3082 = vmatpush1.bf16.msra.mxu1 %v9155_v18 }
 0x1b6   :  { %3083 = vmatprep.subr.bf16.mxu1 %v9160_v22  ;;  %v547_v22 = vrot.slane %v9828_v25, %v546_v15 }
 0x1b7   :  { %2982 = vmatpush1.bf16.msra.mxu0 %v9107_v14  ;;  %v542_v14 = vsub.s32 5, %v9820_v20 }
 0x1b8   :  { %2983 = vmatprep.subr.bf16.mxu0 %v9115_v16 }
 0x1b9   :  { %3084 = vmatpush1.bf16.msra.mxu1 %v9158_v53  ;;  %v543_v18 = vrot.slane %v9828_v25, %v542_v14 }
 0x1ba   :  { %3085 = vmatprep.subr.bf16.mxu1 %v9163_v28 }
 0x1bb   :  { %2984 = vmatpush1.bf16.msra.mxu0 %v9113_v19 }
 0x1bc   :  { %2985 = vmatprep.subr.bf16.mxu0 %v9121_v24 }
 0x1bd   :  { %3086 = vmatpush1.bf16.msra.mxu1 %v9161_v30 }
 0x1be   :  { %3087 = vmatprep.subr.bf16.mxu1 %v9166_v33 }
 0x1bf   :  { %2986 = vmatpush1.bf16.msra.mxu0 %v9119_v55 }
 0x1c0   :  { %2987 = vmatprep.subr.bf16.mxu0 %v9127_v29 }
 0x1c1   :  { %3088 = vmatpush1.bf16.msra.mxu1 %v9164_v46 }
 0x1c2   :  { %3089 = vmatprep.subr.bf16.mxu1 %v9169_v57 }
 0x1c3   :  { %2988 = vmatpush1.bf16.msra.mxu0 %v9125_v32 }
 0x1c4   :  { %2989 = vmatprep.subr.bf16.mxu0 %v9133_v45 }
 0x1c5   :  { %3090 = vmatpush1.bf16.msra.mxu1 %v9167_v61 }
 0x1c6   :  { %3091 = vmatprep.subr.bf16.mxu1 %v9172_v5 }
 0x1c7   :  { %2990 = vmatpush1.bf16.msra.mxu0 %v9131_v49 }
 0x1c8   :  { %8118 = vmatprep.subr.bf16.mxu0 %v11430_v10 }
 0x1c9   :  { %3092 = vmatpush1.bf16.msra.mxu1 %v9170_v6 }
 0x1ca   :  { %2992 = vmatmul.mubr.bf16.vlgmr.msra.gmra.mrb[16].mxu0 %v9784_v37  ;;  %8124 = vmatprep.subr.bf16.mxu1 %v11430_v10 }
 0x1cb   :  { %3001 = vmatprep.mubr.bf16.mxu0 %v9786_v44 }
 0x1cc   :  { %3094 = vmatmul.mubr.bf16.vlgmr.msra.gmra.mrb[16].mxu1 %v9784_v37  ;;  %v550_v37 = vsub.s32 7, %v9820_v20 }
 0x1cd   :  { %3103 = vmatprep.mubr.bf16.mxu1 %v9786_v44  ;;  %v539_v44 = vrot.slane %v9828_v25, %v538_v11 }
 0x1ce   :  { %v551_v24 = vrot.slane %v9828_v25, %v550_v37 }
 0x1d2   :  { %3002 = vmatmul.mubr.bf16.gmra.mrb[20].mxu0 %v9791_v51 }
 0x1d3   :  { %8120 = vmatprep.mubr.msk.bf16.mxu0 %vm9596_vm2, %v11430_v10 }
 0x1d4   :  { %3104 = vmatmul.mubr.bf16.gmra.mrb[20].mxu1 %v9791_v51 }
 0x1d5   :  { %8126 = vmatprep.mubr.msk.bf16.mxu1 %vm9596_vm2, %v11430_v10 }
 0x21d   :  { %v2789_v16 = vpop.f32.mrb[8].mxu0 }
 0x21e   :  { %v2791_v19 = vpop.f32.mrb[9].mxu0  ;;  %v8322_v53 = vadd.f32 %v2789_v16, %v539_v44 }
 0x21f   :  { %v2793_v51 = vpop.f32.mrb[10].mxu0  ;;  %v8323_v29 = vadd.f32 %v2791_v19, %v543_v18  ;;  %v2891_v32 = vpop.f32.mrb[8].mxu1 }
 0x220   :  { %v8324_v55 = vadd.f32 %v2793_v51, %v539_v44  ;;  %v2795_v28 = vpop.f32.mrb[11].mxu0  ;;  %v9948_v45 = vadd.f32 %v2891_v32, %v547_v22  ;;  %v2893_v46 = vpop.f32.mrb[9].mxu1 }
 0x221   :  { %v8325_v30 = vadd.f32 %v2795_v28, %v543_v18  ;;  %v9950_v61 = vadd.f32 %v2893_v46, %v551_v24  ;;  %v2895_v5 = vpop.f32.mrb[10].mxu1 }
 0x222   :  { %v3289_v33 = vpack.c.bf16 %v8324_v55, %v8322_v53  ;;  %v8437_v20 = vpack.i.bf16 %v8324_v55, %v8322_v53  ;;  %v8330_v6 = vadd.f32 %v2895_v5, %v547_v22  ;;  %v2897_v11 = vpop.f32.mrb[11].mxu1 }
 0x223   :  { %v3291_v49 = vpack.c.bf16 %v8325_v30, %v8323_v29  ;;  %v8447_v57 = vpack.i.bf16 %v8325_v30, %v8323_v29  ;;  %v8331_v15 = vadd.f32 %v2897_v11, %v551_v24 }
 0x224   :  { %8438 = vrot.lane.b32.xlu0 %v8437_v20, %s9597_s0  ;;  %v3406_v25 = vsel %vm3401_vm3, %v3289_v33, 0  ;;  %v3293_v19 = vpack.c.bf16 %v8330_v6, %v9948_v45  ;;  %v8457_v51 = vpack.i.bf16 %v8330_v6, %v9948_v45  ;;  %v3242_v33 = vrot.slane %v8324_v55, 2 }
 0x225   :  { %v2799_v14 = vpop.f32.mrb[12].mxu0  ;;  %8448 = vrot.lane.b32.xlu1 %v8447_v57, %s9597_s0  ;;  %8119 = vmatpush3.bf16.xpose.msra.mxu0 %v3406_v25  ;;  %v3295_v29 = vpack.c.bf16 %v8331_v15, %v9950_v61  ;;  %v8467_v32 = vpack.i.bf16 %v8331_v15, %v9950_v61  ;;  %v3266_v45 = vrot.slane %v8330_v6, 2  ;;  %v3278_v5 = vrot.slane %v8331_v15, 2 }
 0x226   :  { %v8326_v37 = vadd.f32 %v2799_v14, %v539_v44  ;;  %v2801_v16 = vpop.f32.mrb[13].mxu0  ;;  %8130 = vmatprep.subr.bf16.mxu0 %v11430_v10  ;;  %v3254_v44 = vrot.slane %v8325_v30, 2  ;;  %v3500_v30 = vsel %vm3401_vm3, %v3291_v49, 0 }
 0x227   :  { %v8327_v53 = vadd.f32 %v2801_v16, %v543_v18  ;;  %v2803_v28 = vpop.f32.mrb[14].mxu0  ;;  %v2901_v18 = vpop.f32.mrb[12].mxu1  ;;  %v3688_v47 = vsel %vm3401_vm3, %v3295_v29, 0 }
 0x228   :  { %v3243_v20 = vrot.slane %v8326_v37, 2  ;;  %v2804_v46 = vpop.f32.mrb[15].mxu0  ;;  %8443 = vrot.lane.b32.xlu0 %v8442_v58, %s9597_s0  ;;  %v8332_v25 = vadd.f32 %v2901_v18, %v547_v22  ;;  %v2903_v61 = vpop.f32.mrb[13].mxu1 }
 0x229   :  { %v3255_v57 = vrot.slane %v8327_v53, 2  ;;  %8453 = vrot.lane.b32.xlu1 %v8452_v2, %s9597_s0  ;;  %v8333_v11 = vadd.f32 %v2903_v61, %v551_v24  ;;  %v2905_v58 = vpop.f32.mrb[14].mxu1 }
 0x22a   :  { %v3244_v55 = vsel %vm3145_vm1, %v3242_v33, %v3243_v20  ;;  %v3267_v2 = vrot.slane %v8332_v25, 2  ;;  %v2906_v15 = vpop.f32.mrb[15].mxu1 }
 0x22b   :  { %v8477_v14 = vpack.i.bf16 %v3243_v20, %v3244_v55  ;;  %v3256_v37 = vsel %vm3145_vm1, %v3254_v44, %v3255_v57  ;;  %v3297_v16 = vpack.c.bf16 %v3243_v20, %v3244_v55  ;;  %v3279_v24 = vrot.slane %v8333_v11, 2 }
 0x22c   :  { %8458 = vrot.lane.b32.xlu0 %v8457_v51, %s9597_s0  ;;  %8121 = vmatmul.mubr.msk.bf16.vlgmr.msra.gmra.mrb[24].mxu0 %vm3401_vm3, %v3193_v54  ;;  %v8487_v22 = vpack.i.bf16 %v3255_v57, %v3256_v37  ;;  %v3299_v6 = vpack.c.bf16 %v3255_v57, %v3256_v37  ;;  %v3268_v39 = vsel %vm3145_vm1, %v3266_v45, %v3267_v2 }
 0x22d   :  { %8463 = vrot.lane.b32.xlu1 %v8462_v21, %s9597_s0  ;;  %8131 = vmatpush3.bf16.xpose.msra.mxu0 %v3500_v30  ;;  %v8497_v40 = vpack.i.bf16 %v3267_v2, %v3268_v39  ;;  %v3280_v54 = vsel %vm3145_vm1, %v3278_v5, %v3279_v24  ;;  %v3301_v49 = vpack.c.bf16 %v3267_v2, %v3268_v39  ;;  %v3594_v21 = vsel %vm3401_vm3, %v3293_v19, 0 }
 0x22e   :  { %8132 = vmatprep.mubr.msk.bf16.mxu0 %vm9596_vm2, %v11430_v10  ;;  %8142 = vmatprep.subr.bf16.mxu0 %v11430_v10  ;;  %v8507_v51 = vpack.i.bf16 %v3279_v24, %v3280_v54  ;;  %v3303_v53 = vpack.c.bf16 %v3279_v24, %v3280_v54  ;;  %v3782_v48 = vsel %vm3401_vm3, %v3297_v16, 0  ;;  %v3876_v56 = vsel %vm3401_vm3, %v3299_v6, 0 }
 0x230   :  { %8468 = vrot.lane.b32.xlu0 %v8467_v32, %s9597_s0  ;;  %v4064_v60 = vsel %vm3401_vm3, %v3303_v53, 0 }
 0x231   :  { %8473 = vrot.lane.b32.xlu1 %v8472_v12, %s9597_s0 }
 0x234   :  { %8478 = vrot.lane.b32.xlu0 %v8477_v14, %s9597_s0  ;;  %8133 = vmatmul.mubr.msk.bf16.vlgmr.msra.gmra.mrb[28].mxu0 %vm3401_vm3, %v3195_v59  ;;  %v3970_v59 = vsel %vm3401_vm3, %v3301_v49, 0 }
 0x235   :  { %8483 = vrot.lane.b32.xlu1 %v8482_v34, %s9597_s0  ;;  %8143 = vmatpush3.bf16.xpose.msra.mxu0 %v3594_v21 }
 0x236   :  { %8144 = vmatprep.mubr.msk.bf16.mxu0 %vm9596_vm2, %v11430_v10  ;;  %8154 = vmatprep.subr.bf16.mxu0 %v11430_v10 }
 0x238   :  { %8488 = vrot.lane.b32.xlu0 %v8487_v22, %s9597_s0 }
 0x239   :  { %8493 = vrot.lane.b32.xlu1 %v8492_v38, %s9597_s0 }
 0x23c   :  { %8498 = vrot.lane.b32.xlu0 %v8497_v40, %s9597_s0  ;;  %8145 = vmatmul.mubr.msk.bf16.vlgmr.msra.gmra.mrb[32].mxu0 %vm3401_vm3, %v3197_v9 }
 0x23d   :  { %8503 = vrot.lane.b32.xlu1 %v8502_v0, %s9597_s0  ;;  %8155 = vmatpush3.bf16.xpose.msra.mxu0 %v3688_v47 }
 0x23e   :  { %8156 = vmatprep.mubr.msk.bf16.mxu0 %vm9596_vm2, %v11430_v10  ;;  %8166 = vmatprep.subr.bf16.mxu0 %v11430_v10 }
 0x240   :  { %8508 = vrot.lane.b32.xlu0 %v8507_v51, %s9597_s0 }
 0x241   :  { %8513 = vrot.lane.b32.xlu1 %v8512_v7, %s9597_s0 }
 0x244   :  { %8157 = vmatmul.mubr.msk.bf16.vlgmr.msra.gmra.mrb[36].mxu0 %vm3401_vm3, %v3199_v13 }
 0x245   :  { %8167 = vmatpush3.bf16.xpose.msra.mxu0 %v3782_v48  ;;  %8168 = vmatprep.mubr.msk.bf16.mxu0 %vm9596_vm2, %v11430_v10 }
 0x246   :  { %8178 = vmatprep.subr.bf16.mxu0 %v11430_v10 }
 0x24c   :  { %8169 = vmatmul.mubr.msk.bf16.vlgmr.msra.gmra.mrb[40].mxu0 %vm3401_vm3, %v3201_v36  ;;  %v517_v36 = vld [vmem:[#allocation4 + $0x8] sm:$0xf] }
 0x24d   :  { %8179 = vmatpush3.bf16.xpose.msra.mxu0 %v3876_v56  ;;  %8180 = vmatprep.mubr.msk.bf16.mxu0 %vm9596_vm2, %v11430_v10  ;;  %v555_v43 = vrot.slane %v517_v36, %v9826_v23  ;;  %v563_v20 = vrot.slane %v517_v36, %v9834_v27  ;;  %v567_v25 = vrot.slane %v517_v36, %v9837_v42  ;;  %v10987_v23 = vld [vmem:[#allocation6 + $0x1c0] ss:$16 sps:$4 sm:$0xff]  }
 0x24e   :  { %8190 = vmatprep.subr.bf16.mxu0 %v11430_v10  ;;  %11544 = vst [vmem:[#allocation26_spill] sm:$0xff] %v10987_v23 }
 0x254   :  { %8181 = vmatmul.mubr.msk.bf16.vlgmr.msra.gmra.mrb[44].mxu0 %vm3401_vm3, %v3203_v50  ;;  %v559_v50 = vrot.slane %v517_v36, %v9831_v26 }
 0x255   :  { %8191 = vmatpush3.bf16.xpose.msra.mxu0 %v3970_v59  ;;  %8192 = vmatprep.mubr.msk.bf16.mxu0 %vm9596_vm2, %v11430_v10 }
 0x256   :  { %8202 = vmatprep.subr.bf16.mxu0 %v11430_v10 }
 0x25c   :  { %8193 = vmatmul.mubr.msk.bf16.vlgmr.msra.gmra.mrb[48].mxu0 %vm3401_vm3, %v3205_v1 }
 0x25d   :  { %8203 = vmatpush3.bf16.xpose.msra.mxu0 %v4064_v60  ;;  %8204 = vmatprep.mubr.msk.bf16.mxu0 %vm9596_vm2, %v11430_v10 }
 0x25e   :  { %8214 = vmatprep.subr.bf16.mxu0 %v11430_v10 }
 0x264   :  { %8205 = vmatmul.mubr.msk.bf16.vlgmr.msra.gmra.mrb[52].mxu0 %vm3401_vm3, %v3207_v8 }
 0x265   :  { %8216 = vmatprep.mubr.msk.bf16.mxu0 %vm9596_vm2, %v11430_v10 }
 0x296   :  { %v8439_v62 = vpop.permute.xlu0 %8438 }
 0x297   :  { %v8441_v4 = vunpack.i.h.bf16 %v8439_v62  ;;  %v8440_v9 = vunpack.i.l.bf16 %v8439_v62  ;;  %v8449_v13 = vpop.permute.xlu1 %8448 }
 0x298   :  { %v8451_v41 = vunpack.i.h.bf16 %v8449_v13  ;;  %v8450_v31 = vunpack.i.l.bf16 %v8449_v13 }
 0x299   :  { %v3290_v17 = vpack.c.bf16 %v8441_v4, %v8440_v9 }
 0x29a   :  { %v8444_v12 = vpop.permute.xlu0 %8443  ;;  %v3292_v63 = vpack.c.bf16 %v8451_v41, %v8450_v31 }
 0x29b   :  { %v3453_v34 = vsel %vm3401_vm3, %v3290_v17, 0  ;;  %v8446_v35 = vunpack.i.h.bf16 %v8444_v12  ;;  %v8445_v38 = vunpack.i.l.bf16 %v8444_v12  ;;  %v8454_v0 = vpop.permute.xlu1 %8453 }
 0x29c   :  { %8125 = vmatpush3.bf16.xpose.msra.mxu1 %v3453_v34  ;;  %v3547_v18 = vsel %vm3401_vm3, %v3292_v63, 0  ;;  %v8456_v55 = vunpack.i.h.bf16 %v8454_v0  ;;  %v8455_v11 = vunpack.i.l.bf16 %v8454_v0 }
 0x29d   :  { %8136 = vmatprep.subr.bf16.mxu1 %v11430_v10  ;;  %v2993_v52 = vpop.f32.mrb[16].mxu0  ;;  %v3194_v19 = vpack.c.bf16 %v8446_v35, %v8445_v38 }
 0x29e   :  { %v2995_v1 = vpop.f32.mrb[17].mxu0  ;;  %v8459_v3 = vpop.permute.xlu0 %8458  ;;  %v10068_v7 = vadd.f32 %v2993_v52, %v555_v43  ;;  %v3196_v49 = vpack.c.bf16 %v8456_v55, %v8455_v11 }
 0x29f   :  { %v2997_v8 = vpop.f32.mrb[18].mxu0  ;;  %v10070_v28 = vadd.f32 %v2995_v1, %v559_v50  ;;  %v3095_v46 = vpop.f32.mrb[16].mxu1  ;;  %v8461_v44 = vunpack.i.h.bf16 %v8459_v3  ;;  %v8460_v57 = vunpack.i.l.bf16 %v8459_v3 }
 0x2a0   :  { %v10072_v29 = vadd.f32 %v2997_v8, %v555_v43  ;;  %v2999_v32 = vpop.f32.mrb[19].mxu0  ;;  %v3097_v45 = vpop.f32.mrb[17].mxu1  ;;  %v10087_v37 = vadd.f32 %v3095_v46, %v563_v20 }
 0x2a1   :  { %v10074_v33 = vadd.f32 %v2999_v32, %v559_v50  ;;  %v3099_v61 = vpop.f32.mrb[18].mxu1  ;;  %v8464_v16 = vpop.permute.xlu1 %8463  ;;  %v3294_v30 = vpack.c.bf16 %v8461_v44, %v8460_v57  ;;  %v10095_v40 = vadd.f32 %v3097_v45, %v567_v25 }
 0x2a2   :  { %v3385_v5 = vpack.c.bf16 %v10072_v29, %v10068_v7  ;;  %v10089_v2 = vadd.f32 %v3099_v61, %v563_v20  ;;  %v8469_v22 = vpop.permute.xlu0 %8468  ;;  %v3101_v54 = vpop.f32.mrb[19].mxu1  ;;  %v8466_v59 = vunpack.i.h.bf16 %v8464_v16  ;;  %v8465_v13 = vunpack.i.l.bf16 %v8464_v16 }
 0x2a3   :  { %8127 = vmatmul.mubr.msk.bf16.vlgmr.msra.gmra.mrb[24].mxu1 %vm3401_vm3, %v3194_v19  ;;  %v10099_v21 = vadd.f32 %v3101_v54, %v567_v25  ;;  %v8471_v60 = vunpack.i.h.bf16 %v8469_v22  ;;  %v8470_v62 = vunpack.i.l.bf16 %v8469_v22  ;;  %v3641_v4 = vsel %vm3401_vm3, %v3294_v30, 0 }
 0x2a4   :  { %8137 = vmatpush3.bf16.xpose.msra.mxu1 %v3547_v18  ;;  %8138 = vmatprep.mubr.msk.bf16.mxu1 %vm9596_vm2, %v11430_v10  ;;  %v3362_v17 = vrot.slane %v10089_v2, 2  ;;  %v3198_v63 = vpack.c.bf16 %v8466_v59, %v8465_v13  ;;  %v4562_v16 = vsel %vm4560_vm4, %v3385_v5, 0 }
 0x2a5   :  { %8148 = vmatprep.subr.bf16.mxu1 %v11430_v10  ;;  %v3003_v58 = vpop.f32.mrb[20].mxu0  ;;  %v3374_v12 = vrot.slane %v10099_v21, 2  ;;  %v3296_v38 = vpack.c.bf16 %v8471_v60, %v8470_v62  ;;  %v8474_v3 = vpop.permute.xlu1 %8473  ;;  %8215 = vmatpush3.bf16.msra.mxu0 %v4562_v16 }
 0x2a6   :  { %v10091_v6 = vadd.f32 %v3003_v58, %v555_v43  ;;  %v3005_v15 = vpop.f32.mrb[21].mxu0  ;;  %v8479_v52 = vpop.permute.xlu0 %8478  ;;  %v8476_v18 = vunpack.i.h.bf16 %v8474_v3  ;;  %v8475_v45 = vunpack.i.l.bf16 %v8474_v3  ;;  %8226 = vmatprep.subr.bf16.mxu0 %v11430_v10 }
 0x2a7   :  { %v10093_v24 = vadd.f32 %v3005_v15, %v559_v50  ;;  %v3007_v39 = vpop.f32.mrb[22].mxu0  ;;  %v3105_v47 = vpop.f32.mrb[20].mxu1  ;;  %v8480_v46 = vunpack.i.l.bf16 %v8479_v52  ;;  %v3735_v44 = vsel %vm3401_vm3, %v3296_v38, 0  ;;  %v3338_v15 = vrot.slane %v10072_v29, 2 }
 0x2a8   :  { %v3008_v51 = vpop.f32.mrb[23].mxu0  ;;  %v8344_v48 = vadd.f32 %v3105_v47, %v563_v20  ;;  %v3107_v56 = vpop.f32.mrb[21].mxu1  ;;  %v8481_v20 = vunpack.i.h.bf16 %v8479_v52  ;;  %v3200_v55 = vpack.c.bf16 %v8476_v18, %v8475_v45  ;;  %v3350_v39 = vrot.slane %v10074_v33, 2 }
 0x2a9   :  { %v3109_v9 = vpop.f32.mrb[22].mxu1  ;;  %v8345_v36 = vadd.f32 %v3107_v56, %v567_v25  ;;  %v8484_v11 = vpop.permute.xlu1 %8483  ;;  %v10151_v5 = vrot.slane %v10091_v6, 2  ;;  %v10154_v51 = vrot.slane %v10093_v24, 2  ;;  %v8522_v56 = vpack.i.bf16 %v10074_v33, %v10070_v28 }
 0x2aa   :  { %v3110_v31 = vpop.f32.mrb[23].mxu1  ;;  %v10110_v34 = vrot.slane %v8344_v48, 2  ;;  %v3298_v25 = vpack.c.bf16 %v8481_v20, %v8480_v46  ;;  %v8489_v61 = vpop.permute.xlu0 %8488  ;;  %v8486_v54 = vunpack.i.h.bf16 %v8484_v11  ;;  %v8517_v48 = vpack.i.bf16 %v10072_v29, %v10068_v7 }
 0x2ab   :  { %8139 = vmatmul.mubr.msk.bf16.vlgmr.msra.gmra.mrb[28].mxu1 %vm3401_vm3, %v3196_v49  ;;  %v10116_v50 = vrot.slane %v8345_v36, 2  ;;  %v8491_v58 = vunpack.i.h.bf16 %v8489_v61  ;;  %v8490_v30 = vunpack.i.l.bf16 %v8489_v61  ;;  %v8485_v49 = vunpack.i.l.bf16 %v8484_v11 }
 0x2ac   :  { %8149 = vmatpush3.bf16.xpose.msra.mxu1 %v3641_v4  ;;  %8150 = vmatprep.mubr.msk.bf16.mxu1 %vm9596_vm2, %v11430_v10  ;;  %v10120_v0 = vsel %vm3145_vm1, %v3362_v17, %v10110_v34  ;;  %v3829_v22 = vsel %vm3401_vm3, %v3298_v25, 0  ;;  %v10163_v62 = vsel %vm3145_vm1, %v3338_v15, %v10151_v5  ;;  %v10167_v6 = vsel %vm3145_vm1, %v3350_v39, %v10154_v51 }
 0x2ad   :  { %8160 = vmatprep.subr.bf16.mxu1 %v11430_v10  ;;  %v10124_v1 = vsel %vm3145_vm1, %v3374_v12, %v10116_v50  ;;  %v3300_v47 = vpack.c.bf16 %v8491_v58, %v8490_v30  ;;  %v3202_v60 = vpack.c.bf16 %v8486_v54, %v8485_v49  ;;  %v8494_v24 = vpop.permute.xlu1 %8493 }
 0x2ae   :  { %v8499_v59 = vpop.permute.xlu0 %8498  ;;  %v8496_v38 = vunpack.i.h.bf16 %v8494_v24  ;;  %v8495_v52 = vunpack.i.l.bf16 %v8494_v24 }
 0x2af   :  { %v8501_v12 = vunpack.i.h.bf16 %v8499_v59  ;;  %v8500_v31 = vunpack.i.l.bf16 %v8499_v59  ;;  %v3923_v36 = vsel %vm3401_vm3, %v3300_v47, 0 }
 0x2b0   :  { %v3204_v20 = vpack.c.bf16 %v8496_v38, %v8495_v52 }
 0x2b1   :  { %v8504_v46 = vpop.permute.xlu1 %8503 }
 0x2b2   :  { %v8509_v3 = vpop.permute.xlu0 %8508  ;;  %v8506_v25 = vunpack.i.h.bf16 %v8504_v46  ;;  %v8505_v61 = vunpack.i.l.bf16 %v8504_v46 }
 0x2b3   :  { %8151 = vmatmul.mubr.msk.bf16.vlgmr.msra.gmra.mrb[32].mxu1 %vm3401_vm3, %v3198_v63  ;;  %v3302_v63 = vpack.c.bf16 %v8501_v12, %v8500_v31  ;;  %v8510_v18 = vunpack.i.l.bf16 %v8509_v3 }
 0x2b4   :  { %8161 = vmatpush3.bf16.xpose.msra.mxu1 %v3735_v44  ;;  %8162 = vmatprep.mubr.msk.bf16.mxu1 %vm9596_vm2, %v11430_v10  ;;  %v8511_v44 = vunpack.i.h.bf16 %v8509_v3  ;;  %v3206_v11 = vpack.c.bf16 %v8506_v25, %v8505_v61 }
 0x2b5   :  { %8172 = vmatprep.subr.bf16.mxu1 %v11430_v10  ;;  %v4017_v45 = vsel %vm3401_vm3, %v3302_v63, 0  ;;  %v8514_v16 = vpop.permute.xlu1 %8513 }
 0x2b6   :  { %v8516_v30 = vunpack.i.h.bf16 %v8514_v16 }
 0x2bb   :  { %8163 = vmatmul.mubr.msk.bf16.vlgmr.msra.gmra.mrb[36].mxu1 %vm3401_vm3, %v3200_v55  ;;  %v3304_v55 = vpack.c.bf16 %v8511_v44, %v8510_v18 }
 0x2bc   :  { %8173 = vmatpush3.bf16.xpose.msra.mxu1 %v3829_v22  ;;  %8174 = vmatprep.mubr.msk.bf16.mxu1 %vm9596_vm2, %v11430_v10  ;;  %v8515_v22 = vunpack.i.l.bf16 %v8514_v16 }
 0x2bd   :  { %8184 = vmatprep.subr.bf16.mxu1 %v11430_v10  ;;  %v4111_v58 = vsel %vm3401_vm3, %v3304_v55, 0 }
 0x2be   :  { %v3208_v15 = vpack.c.bf16 %v8516_v30, %v8515_v22 }
 0x2c3   :  { %8175 = vmatmul.mubr.msk.bf16.vlgmr.msra.gmra.mrb[40].mxu1 %vm3401_vm3, %v3202_v60 }
 0x2c4   :  { %8185 = vmatpush3.bf16.xpose.msra.mxu1 %v3923_v36  ;;  %8186 = vmatprep.mubr.msk.bf16.mxu1 %vm9596_vm2, %v11430_v10 }
 0x2c5   :  { %8196 = vmatprep.subr.bf16.mxu1 %v11430_v10 }
 0x2cb   :  { %8187 = vmatmul.mubr.msk.bf16.vlgmr.msra.gmra.mrb[44].mxu1 %vm3401_vm3, %v3204_v20 }
 0x2cc   :  { %8197 = vmatpush3.bf16.xpose.msra.mxu1 %v4017_v45  ;;  %8198 = vmatprep.mubr.msk.bf16.mxu1 %vm9596_vm2, %v11430_v10 }
 0x2cd   :  { %8208 = vmatprep.subr.bf16.mxu1 %v11430_v10 }
 0x2d3   :  { %8199 = vmatmul.mubr.msk.bf16.vlgmr.msra.gmra.mrb[48].mxu1 %vm3401_vm3, %v3206_v11 }
 0x2d4   :  { %8209 = vmatpush3.bf16.xpose.msra.mxu1 %v4111_v58  ;;  %8210 = vmatprep.mubr.msk.bf16.mxu1 %vm9596_vm2, %v11430_v10 }
 0x2d5   :  { %8220 = vmatprep.subr.bf16.mxu1 %v11430_v10 }
 0x2db   :  { %8211 = vmatmul.mubr.msk.bf16.vlgmr.msra.gmra.mrb[52].mxu1 %vm3401_vm3, %v3208_v15 }
 0x2dc   :  { %8222 = vmatprep.mubr.msk.bf16.mxu1 %vm9596_vm2, %v11430_v10 }
 0x2ff   :  { %v10195_v39 = vpop.f32.mrb[24].mxu0 }
 0x300   :  { %v8122_v54 = vpop.f32.mrb[25].mxu0 }
 0x301   :  { %v10197_v49 = vpop.f32.mrb[26].mxu0 }
 0x302   :  { %v8123_v47 = vpop.f32.mrb[27].mxu0 }
 0x307   :  { %v10199_v59 = vpop.f32.mrb[28].mxu0 }
 0x308   :  { %v8134_v60 = vpop.f32.mrb[29].mxu0 }
 0x309   :  { %v10201_v24 = vpop.f32.mrb[30].mxu0 }
 0x30a   :  { %v8135_v12 = vpop.f32.mrb[31].mxu0 }
 0x30f   :  { %v10203_v31 = vpop.f32.mrb[32].mxu0 }
 0x310   :  { %v8146_v36 = vpop.f32.mrb[33].mxu0 }
 0x311   :  { %v10205_v38 = vpop.f32.mrb[34].mxu0 }
 0x312   :  { %v8147_v52 = vpop.f32.mrb[35].mxu0 }
 0x317   :  { %v10207_v63 = vpop.f32.mrb[36].mxu0 }
 0x318   :  { %v8158_v3 = vpop.f32.mrb[37].mxu0 }
 0x319   :  { %v10209_v20 = vpop.f32.mrb[38].mxu0 }
 0x31a   :  { %v8159_v46 = vpop.f32.mrb[39].mxu0 }
 0x31f   :  { %v10211_v44 = vpop.f32.mrb[40].mxu0 }
 0x320   :  { %v8170_v18 = vpop.f32.mrb[41].mxu0 }
 0x321   :  { %v10213_v45 = vpop.f32.mrb[42].mxu0 }
 0x322   :  { %v8171_v25 = vpop.f32.mrb[43].mxu0 }
 0x327   :  { %v10215_v61 = vpop.f32.mrb[44].mxu0 }
 0x328   :  { %v8182_v55 = vpop.f32.mrb[45].mxu0 }
 0x329   :  { %v10217_v11 = vpop.f32.mrb[46].mxu0  ;;  %v4155_v55 = vsel %vm4154_vm5, %v10195_v39, -inf }
 0x32a   :  { %v8183_v16 = vpop.f32.mrb[47].mxu0 }
 0x32f   :  { %v10219_v58 = vpop.f32.mrb[48].mxu0 }
 0x330   :  { %v8194_v30 = vpop.f32.mrb[49].mxu0 }
 0x331   :  { %v10221_v22 = vpop.f32.mrb[50].mxu0 }
 0x332   :  { %v8195_v15 = vpop.f32.mrb[51].mxu0 }
 0x337   :  { %v10223_v54 = vpop.f32.mrb[52].mxu0 }
 0x338   :  { %v8206_v47 = vpop.f32.mrb[53].mxu0 }
 0x339   :  { %v10225_v60 = vpop.f32.mrb[54].mxu0 }
 0x33a   :  { %v8207_v12 = vpop.f32.mrb[55].mxu0 }
 0x376   :  { %v10227_v36 = vpop.f32.mrb[24].mxu1 }
 0x377   :  { %v8128_v52 = vpop.f32.mrb[25].mxu1  ;;  %v4162_v3 = vsel %vm4154_vm5, %v10227_v36, -inf }
 0x378   :  { %4163 = vmax.xlane.f32.xlu0 %v4162_v3  ;;  %v10231_v46 = vpop.f32.mrb[26].mxu1  ;;  %v4168_v52 = vsel %vm4154_vm5, %v10199_v59, -inf }
 0x379   :  { %v8129_v18 = vpop.f32.mrb[27].mxu1  ;;  %v4165_v25 = vsel %vm4158_vm6, %v10231_v46, -inf }
 0x37a   :  { %4166 = vmax.xlane.f32.xlu1 %v4165_v25 }
 0x37e   :  { %v10237_v16 = vpop.f32.mrb[28].mxu1  ;;  %4156 = vmax.xlane.f32.xlu1 %v4155_v55  ;;  %v4159_v55 = vsel %vm4158_vm6, %v10197_v49, -inf }
 0x37f   :  { %v8140_v30 = vpop.f32.mrb[29].mxu1  ;;  %v4174_v15 = vsel %vm4154_vm5, %v10237_v16, -inf }
 0x380   :  { %4175 = vmax.xlane.f32.xlu0 %v4174_v15  ;;  %v10241_v47 = vpop.f32.mrb[30].mxu1 }
 0x381   :  { %v8141_v12 = vpop.f32.mrb[31].mxu1  ;;  %v4177_v3 = vsel %vm4158_vm6, %v10241_v47, -inf }
 0x382   :  { %4169 = vmax.xlane.f32.xlu1 %v4168_v52  ;;  %v4171_v12 = vsel %vm4158_vm6, %v10201_v24, -inf }
 0x384   :  { %4178 = vmax.xlane.f32.xlu0 %v4177_v3 }
 0x386   :  { %v10247_v18 = vpop.f32.mrb[32].mxu1 }
 0x387   :  { %v8152_v25 = vpop.f32.mrb[33].mxu1 }
 0x388   :  { %v10251_v30 = vpop.f32.mrb[34].mxu1  ;;  %4160 = vmax.xlane.f32.xlu0 %v4159_v55 }
 0x389   :  { %v8153_v15 = vpop.f32.mrb[35].mxu1  ;;  %v4189_v3 = vsel %vm4158_vm6, %v10251_v30, -inf }
 0x38c   :  { %4172 = vmax.xlane.f32.xlu0 %v4171_v12 }
 0x38e   :  { %v10255_v57 = vpop.f32.mrb[36].mxu1 }
 0x38f   :  { %v8164_v52 = vpop.f32.mrb[37].mxu1 }
 0x390   :  { %v10259_v32 = vpop.f32.mrb[38].mxu1  ;;  %4190 = vmax.xlane.f32.xlu0 %v4189_v3 }
 0x391   :  { %v8165_v25 = vpop.f32.mrb[39].mxu1  ;;  %v4201_v55 = vsel %vm4158_vm6, %v10259_v32, -inf }
 0x393   :  { %8518 = vrot.lane.b32.xlu1 %v8517_v48, %s9597_s0 }
 0x394   :  { %4202 = vmax.xlane.f32.xlu0 %v4201_v55 }
 0x396   :  { %v10267_v15 = vpop.f32.mrb[40].mxu1 }
 0x397   :  { %v8176_v12 = vpop.f32.mrb[41].mxu1 }
 0x398   :  { %v10269_v52 = vpop.f32.mrb[42].mxu1 }
 0x399   :  { %v8177_v17 = vpop.f32.mrb[43].mxu1 }
 0x39e   :  { %v10271_v19 = vpop.f32.mrb[44].mxu1 }
 0x39f   :  { %v8188_v8 = vpop.f32.mrb[45].mxu1 }
 0x3a0   :  { %v10273_v3 = vpop.f32.mrb[46].mxu1 }
 0x3a1   :  { %v8189_v25 = vpop.f32.mrb[47].mxu1 }
 0x3a2   :  { %v4186_v25 = vsel %vm4154_vm5, %v10247_v18, -inf }
 0x3a6   :  { %v10275_v13 = vpop.f32.mrb[48].mxu1 }
 0x3a7   :  { %v8200_v7 = vpop.f32.mrb[49].mxu1 }
 0x3a8   :  { %v10277_v29 = vpop.f32.mrb[50].mxu1  ;;  %v4198_v7 = vsel %vm4154_vm5, %v10255_v57, -inf }
 0x3a9   :  { %v8201_v48 = vpop.f32.mrb[51].mxu1 }
 0x3aa   :  { %8523 = vrot.lane.b32.xlu0 %v8522_v56, %s9597_s0  ;;  %v4180_v48 = vsel %vm4154_vm5, %v10203_v31, -inf  ;;  %v4192_v56 = vsel %vm4154_vm5, %v10207_v63, -inf }
 0x3ae   :  { %v10283_v55 = vpop.f32.mrb[52].mxu1 }
 0x3af   :  { %v8212_v17 = vpop.f32.mrb[53].mxu1 }
 0x3b0   :  { %v10285_v12 = vpop.f32.mrb[54].mxu1  ;;  %v4210_v17 = vsel %vm4154_vm5, %v10267_v15, -inf }
 0x3b1   :  { %v8213_v8 = vpop.f32.mrb[55].mxu1 }
 0x3b2   :  { %v4183_v8 = vsel %vm4158_vm6, %v10205_v38, -inf }
 0x3b7   :  { %4187 = vmax.xlane.f32.xlu1 %v4186_v25  ;;  %v4213_v25 = vsel %vm4158_vm6, %v10269_v52, -inf }
 0x3bb   :  { %4199 = vmax.xlane.f32.xlu1 %v4198_v7 }
 0x3bf   :  { %4181 = vmax.xlane.f32.xlu1 %v4180_v48 }
 0x3c3   :  { %4193 = vmax.xlane.f32.xlu1 %v4192_v56 }
 0x3c7   :  { %4211 = vmax.xlane.f32.xlu1 %v4210_v17 }
 0x3c9   :  { %4184 = vmax.xlane.f32.xlu0 %v4183_v8 }
 0x3cd   :  { %4214 = vmax.xlane.f32.xlu0 %v4213_v25 }
 0x405   :  { %v4164_v7 = vpop.xlane.xlu0 %4163 }
 0x406   :  { %v4254_v41 = vsub.f32 %v10227_v36, %v4164_v7 }
 0x407   :  { %v4167_v48 = vpop.xlane.xlu1 %4166 }
 0x408   :  { %v4288_v9 = vmul.f32 1.442695, %v4254_v41  ;;  %v4255_v53 = vsub.f32 %v10231_v46, %v4167_v48  ;;  %v4222_v48 = vsel %vm4154_vm5, %v10271_v19, -inf }
 0x40a   :  { %9365 = vpow2.f32 %v4288_v9  ;;  %v4290_v56 = vmul.f32 1.442695, %v4255_v53 }
 0x40b   :  { %v4157_v4 = vpop.xlane.xlu1 %4156 }
 0x40c   :  { %9367 = vpow2.f32 %v4290_v56  ;;  %v4252_v17 = vsub.f32 %v10195_v39, %v4157_v4 }
 0x40d   :  { %v4176_v14 = vpop.xlane.xlu0 %4175 }
 0x40e   :  { %v4258_v8 = vsub.f32 %v10237_v16, %v4176_v14  ;;  %v4284_v35 = vmul.f32 1.442695, %v4252_v17  ;;  %v11520_v17 = vmov 0.0  }
 0x40f   :  { %v4170_v43 = vpop.xlane.xlu1 %4169 }
 0x410   :  { %v4296_v10 = vmul.f32 1.442695, %v4258_v8  ;;  %v4256_v25 = vsub.f32 %v10199_v59, %v4170_v43 }
 0x411   :  { %v4179_v42 = vpop.xlane.xlu0 %4178 }
 0x412   :  { %9369 = vpow2.f32 %v4296_v10  ;;  %v4259_v41 = vsub.f32 %v10241_v47, %v4179_v42  ;;  %v4292_v53 = vmul.f32 1.442695, %v4256_v25 }
 0x413   :  { %9371 = vpow2.f32 %v4284_v35  ;;  %v8519_v36 = vpop.permute.xlu1 %8518 }
 0x414   :  { %v10307_v9 = vpop.eup %9365  ;;  %v4298_v46 = vmul.f32 1.442695, %v4259_v41  ;;  %v8521_v7 = vunpack.i.h.bf16 %v8519_v36  ;;  %v8520_v4 = vunpack.i.l.bf16 %v8519_v36 }
 0x415   :  { %v4161_v39 = vpop.xlane.xlu0 %4160  ;;  %v4354_v14 = vsel %vm4154_vm5, %v10307_v9, 0.0 }
 0x416   :  { %v10311_v16 = vpop.eup %9367  ;;  %9373 = vpow2.f32 %v4298_v46  ;;  %v3386_v43 = vpack.c.bf16 %v8521_v7, %v8520_v4  ;;  %v4253_v10 = vsub.f32 %v10197_v49, %v4161_v39  ;;  %4355 = vadd.xlane.f32.xlu1 %v4354_v14  ;;  %v4195_v49 = vsel %vm4158_vm6, %v10209_v20, -inf }
 0x417   :  { %v4357_v42 = vsel %vm4158_vm6, %v10311_v16, 0.0  ;;  %9375 = vpow2.f32 %v4292_v53 }
 0x418   :  { %v4286_v35 = vmul.f32 1.442695, %v4253_v10  ;;  %4358 = vadd.xlane.f32.xlu0 %v4357_v42  ;;  %v4609_v59 = vsel %vm4560_vm4, %v3386_v43, 0 }
 0x419   :  { %8221 = vmatpush3.bf16.msra.mxu1 %v4609_v59  ;;  %v4173_v47 = vpop.xlane.xlu0 %4172 }
 0x41a   :  { %v4257_v56 = vsub.f32 %v10201_v24, %v4173_v47  ;;  %4223 = vmax.xlane.f32.xlu1 %v4222_v48  ;;  %8232 = vmatprep.subr.bf16.mxu1 %v11520_v17  ;;  %9377 = vpow2.f32 %v4286_v35  ;;  %v4225_v35 = vsel %vm4158_vm6, %v10273_v3, -inf }
 0x41c   :  { %v10323_v8 = vpop.eup %9369  ;;  %v4294_v25 = vmul.f32 1.442695, %v4257_v56  ;;  %4196 = vmax.xlane.f32.xlu0 %v4195_v49 }
 0x41d   :  { %v10325_v41 = vpop.eup %9371  ;;  %v4191_v36 = vpop.xlane.xlu0 %4190  ;;  %v4366_v53 = vsel %vm4154_vm5, %v10323_v8, 0.0 }
 0x41e   :  { %v4263_v46 = vsub.f32 %v10251_v30, %v4191_v36  ;;  %4367 = vadd.xlane.f32.xlu1 %v4366_v53  ;;  %9379 = vpow2.f32 %v4294_v25  ;;  %v4348_v39 = vsel %vm4154_vm5, %v10325_v41, 0.0 }
 0x420   :  { %v10330_v24 = vpop.eup %9373  ;;  %v4306_v7 = vmul.f32 1.442695, %v4263_v46 }
 0x421   :  { %v4203_v4 = vpop.xlane.xlu0 %4202  ;;  %v4369_v14 = vsel %vm4158_vm6, %v10330_v24, 0.0  ;;  %v10336_v43 = vpop.eup %9375 }
 0x422   :  { %v4267_v10 = vsub.f32 %v10259_v32, %v4203_v4  ;;  %4349 = vadd.xlane.f32.xlu1 %v4348_v39  ;;  %4370 = vadd.xlane.f32.xlu0 %v4369_v14  ;;  %9381 = vpow2.f32 %v4306_v7  ;;  %v4360_v42 = vsel %vm4154_vm5, %v10336_v43, 0.0  ;;  %v11521_v4 = vpack.i.bf16 %v10099_v21, %v10095_v40 }
 0x424   :  { %v4314_v30 = vmul.f32 1.442695, %v4267_v10  ;;  %v10343_v59 = vpop.eup %9377 }
 0x425   :  { %v4351_v47 = vsel %vm4158_vm6, %v10343_v59, 0.0  ;;  %v10368_v10 = vpop.permute.xlu0 %8523 }
 0x426   :  { %4361 = vadd.xlane.f32.xlu1 %v4360_v42  ;;  %4226 = vmax.xlane.f32.xlu0 %v4225_v35  ;;  %9383 = vpow2.f32 %v4314_v30 }
 0x428   :  { %v10347_v48 = vpop.eup %9379 }
 0x429   :  { %v4363_v32 = vsel %vm4158_vm6, %v10347_v48, 0.0 }
 0x42a   :  { %4352 = vadd.xlane.f32.xlu0 %v4351_v47  ;;  %v4207_v47 = vsel %vm4158_vm6, %v10213_v45, -inf }
 0x42c   :  { %v10351_v56 = vpop.eup %9381 }
 0x42d   :  { %v4381_v49 = vsel %vm4158_vm6, %v10351_v56, 0.0 }
 0x42e   :  { %4364 = vadd.xlane.f32.xlu0 %v4363_v32  ;;  %v4237_v32 = vsel %vm4158_vm6, %v10277_v29, -inf }
 0x430   :  { %v10355_v25 = vpop.eup %9383 }
 0x431   :  { %v4393_v36 = vsel %vm4158_vm6, %v10355_v25, 0.0 }
 0x432   :  { %4382 = vadd.xlane.f32.xlu0 %v4381_v49 }
 0x436   :  { %4394 = vadd.xlane.f32.xlu0 %v4393_v36  ;;  %v4219_v36 = vsel %vm4158_vm6, %v10217_v11, -inf }
 0x444   :  { %v4188_v53 = vpop.xlane.xlu1 %4187 }
 0x445   :  { %v4262_v46 = vsub.f32 %v10247_v18, %v4188_v53  ;;  %v11522_v18 = vpack.i.bf16 %v10089_v2, %v10087_v37  ;;  %v4249_v53 = vsel %vm4158_vm6, %v10285_v12, -inf }
 0x447   :  { %v4304_v7 = vmul.f32 1.442695, %v4262_v46 }
 0x448   :  { %v4200_v49 = vpop.xlane.xlu1 %4199 }
 0x449   :  { %9385 = vpow2.f32 %v4304_v7 }
 0x44c   :  { %8533 = vrot.lane.b32.xlu0 %v11521_v4, %s9597_s0 }
 0x453   :  { %v10364_v39 = vpop.eup %9385 }
 0x454   :  { %v4378_v14 = vsel %vm4154_vm5, %v10364_v39, 0.0 }
 0x455   :  { %4379 = vadd.xlane.f32.xlu1 %v4378_v14  ;;  %v4231_v14 = vsel %vm4158_vm6, %v10221_v22, -inf }
 0x456   :  { %v4185_v30 = vpop.xlane.xlu0 %4184 }
 0x457   :  { %v4261_v42 = vsub.f32 %v10205_v38, %v4185_v30  ;;  %v4266_v38 = vsub.f32 %v10255_v57, %v4200_v49  ;;  %v4182_v30 = vpop.xlane.xlu1 %4181 }
 0x458   :  { %v4260_v57 = vsub.f32 %v10203_v31, %v4182_v30  ;;  %v4216_v31 = vsel %vm4154_vm5, %v10215_v61, -inf }
 0x459   :  { %v4302_v35 = vmul.f32 1.442695, %v4261_v42  ;;  %v4312_v7 = vmul.f32 1.442695, %v4266_v38 }
 0x45b   :  { %9387 = vpow2.f32 %v4302_v35  ;;  %v4300_v35 = vmul.f32 1.442695, %v4260_v57  ;;  %v4215_v57 = vpop.xlane.xlu0 %4214 }
 0x45c   :  { %9389 = vpow2.f32 %v4312_v7 }
 0x45d   :  { %9391 = vpow2.f32 %v4300_v35 }
 0x465   :  { %v10384_v46 = vpop.eup %9387 }
 0x466   :  { %8528 = vrot.lane.b32.xlu1 %v11522_v18, %s9597_s0  ;;  %v4375_v4 = vsel %vm4158_vm6, %v10384_v46, 0.0  ;;  %v10390_v42 = vpop.eup %9389 }
 0x467   :  { %v4390_v18 = vsel %vm4154_vm5, %v10390_v42, 0.0 }
 0x46b   :  { %4208 = vmax.xlane.f32.xlu0 %v4207_v47  ;;  %v4194_v47 = vpop.xlane.xlu1 %4193 }
 0x46c   :  { %v4264_v49 = vsub.f32 %v10207_v63, %v4194_v47 }
 0x46e   :  { %v4308_v38 = vmul.f32 1.442695, %v4264_v49 }
 0x46f   :  { %4238 = vmax.xlane.f32.xlu0 %v4237_v32  ;;  %v4204_v32 = vsel %vm4154_vm5, %v10211_v44, -inf }
 0x470   :  { %9393 = vpow2.f32 %v4308_v38 }
 0x473   :  { %4220 = vmax.xlane.f32.xlu0 %v4219_v36  ;;  %v4234_v36 = vsel %vm4154_vm5, %v10275_v13, -inf }
 0x477   :  { %4250 = vmax.xlane.f32.xlu0 %v4249_v53  ;;  %v4212_v53 = vpop.xlane.xlu1 %4211 }
 0x478   :  { %v4270_v7 = vsub.f32 %v10267_v15, %v4212_v53  ;;  %v4240_v53 = vsel %vm4154_vm5, %v10223_v54, -inf }
 0x47a   :  { %v4320_v63 = vmul.f32 1.442695, %v4270_v7 }
 0x47b   :  { %4376 = vadd.xlane.f32.xlu0 %v4375_v4  ;;  %v4246_v4 = vsel %vm4154_vm5, %v10283_v55, -inf }
 0x47c   :  { %9395 = vpow2.f32 %v4320_v63  ;;  %v4271_v63 = vsub.f32 %v10269_v52, %v4215_v57 }
 0x47f   :  { %4232 = vmax.xlane.f32.xlu0 %v4231_v14  ;;  %v10405_v14 = vpop.eup %9391 }
 0x480   :  { %v4372_v30 = vsel %vm4154_vm5, %v10405_v14, 0.0  ;;  %v10411_v35 = vpop.eup %9393 }
 0x48a   :  { %4391 = vadd.xlane.f32.xlu1 %v4390_v18  ;;  %v4228_v18 = vsel %vm4154_vm5, %v10219_v58, -inf }
 0x48e   :  { %4205 = vmax.xlane.f32.xlu1 %v4204_v32  ;;  %v4384_v32 = vsel %vm4154_vm5, %v10411_v35, 0.0 }
 0x492   :  { %4235 = vmax.xlane.f32.xlu1 %v4234_v36 }
 0x496   :  { %4217 = vmax.xlane.f32.xlu1 %v4216_v31  ;;  %v10418_v31 = vpop.eup %9395 }
 0x49a   :  { %4247 = vmax.xlane.f32.xlu1 %v4246_v4 }
 0x49e   :  { %4373 = vadd.xlane.f32.xlu1 %v4372_v30 }
 0x4a2   :  { %4229 = vmax.xlane.f32.xlu1 %v4228_v18 }
 0x4a3   :  { %v4356_v15 = vpop.xlane.xlu1 %4355 }
 0x4a4   :  { %9397 = vrcp.f32 %v4356_v15  ;;  %v8526_v15 = vunpack.i.h.bf16 %v10368_v10 }
 0x4a5   :  { %v4359_v47 = vpop.xlane.xlu0 %4358 }
 0x4a6   :  { %9399 = vrcp.f32 %v4359_v47  ;;  %4385 = vadd.xlane.f32.xlu1 %v4384_v32  ;;  %v8525_v47 = vunpack.i.l.bf16 %v10368_v10 }
 0x4a7   :  { %v4224_v49 = vpop.xlane.xlu1 %4223 }
 0x4a8   :  { %v4274_v36 = vsub.f32 %v10271_v19, %v4224_v49  ;;  %v4402_v19 = vsel %vm4154_vm5, %v10418_v31, 0.0  ;;  %v4322_v49 = vmul.f32 1.442695, %v4271_v63  ;;  %v3388_v57 = vpack.c.bf16 %v8526_v15, %v8525_v47 }
 0x4a9   :  { %v4197_v38 = vpop.xlane.xlu0 %4196 }
 0x4aa   :  { %v4328_v7 = vmul.f32 1.442695, %v4274_v36  ;;  %v4265_v4 = vsub.f32 %v10209_v20, %v4197_v38  ;;  %4241 = vmax.xlane.f32.xlu1 %v4240_v53  ;;  %v4703_v63 = vsel %vm4560_vm4, %v3388_v57, 0  ;;  %v4243_v57 = vsel %vm4158_vm6, %v10225_v60, -inf }
 0x4ab   :  { %v4368_v30 = vpop.xlane.xlu1 %4367 }
 0x4ac   :  { %9401 = vpow2.f32 %v4328_v7  ;;  %v4310_v18 = vmul.f32 1.442695, %v4265_v4 }
 0x4ad   :  { %9403 = vrcp.f32 %v4368_v30 }
 0x4ae   :  { %v9398_v32 = vpop.eup %9397  ;;  %9405 = vpow2.f32 %v4310_v18  ;;  %4403 = vadd.xlane.f32.xlu1 %v4402_v19 }
 0x4af   :  { %v4478_v20 = vmul.f32 %v9398_v32, %v10307_v9  ;;  %v4350_v36 = vpop.xlane.xlu1 %4349  ;;  %v4371_v38 = vpop.xlane.xlu0 %4370 }
 0x4b0   :  { %v9400_v52 = vpop.eup %9399  ;;  %9407 = vrcp.f32 %v4350_v36 }
 0x4b1   :  { %4510 = vst.msk [vmem:[%s11429_s6 + $0x10] sm:$0xff] %vm4154_vm5, %v4478_v20  ;;  %v4479_v10 = vmul.f32 %v9400_v52, %v10311_v16  ;;  %9409 = vrcp.f32 %v4371_v38 }
 0x4b2   :  { %9411 = vpow2.f32 %v4322_v49 }
 0x4b3   :  { %4511 = vst.msk [vmem:[%s11429_s6 + $0x18] sm:$0x3] %vm4158_vm6, %v4479_v10  ;;  %v4362_v9 = vpop.xlane.xlu1 %4361  ;;  %v4227_v53 = vpop.xlane.xlu0 %4226  ;;  %v4542_v7 = vpack.c.bf16 %v4479_v10, %v4478_v20 }
 0x4b4   :  { %9413 = vrcp.f32 %v4362_v9  ;;  %v4275_v4 = vsub.f32 %v10273_v3, %v4227_v53 }
 0x4b5   :  { %8223 = vmatmul.mubr.msk.bf16.vlgmr.msra.gmra.mrb[56].mxu1 %vm4154_vm5, %v4542_v7 }
 0x4b6   :  { %v10439_v30 = vpop.eup %9401  ;;  %v4330_v16 = vmul.f32 1.442695, %v4275_v4  ;;  %8233 = vmatpush3.bf16.msra.mxu1 %v4703_v63  ;;  %8234 = vmatprep.mubr.msk.bf16.mxu1 %vm9596_vm2, %v11520_v17 }
 0x4b7   :  { %v9404_v18 = vpop.eup %9403  ;;  %v4353_v15 = vpop.xlane.xlu0 %4352  ;;  %v4414_v47 = vsel %vm4154_vm5, %v10439_v30, 0.0  ;;  %8244 = vmatprep.subr.bf16.mxu1 %v11520_v17 }
 0x4b8   :  { %v10446_v19 = vpop.eup %9405  ;;  %v4482_v3 = vmul.f32 %v9404_v18, %v10323_v8  ;;  %9415 = vpow2.f32 %v4330_v16  ;;  %4415 = vadd.xlane.f32.xlu1 %v4414_v47 }
 0x4b9   :  { %9417 = vrcp.f32 %v4353_v15  ;;  %v4387_v32 = vsel %vm4158_vm6, %v10446_v19, 0.0 }
 0x4ba   :  { %v9408_v49 = vpop.eup %9407  ;;  %4514 = vst.msk [vmem:[%s11429_s6 + $0x30] sm:$0xff] %vm4154_vm5, %v4482_v3  ;;  %4388 = vadd.xlane.f32.xlu0 %v4387_v32  ;;  %v11524_v32 = vpack.i.bf16 %v10151_v5, %v10163_v62 }
 0x4bb   :  { %v9410_v20 = vpop.eup %9409  ;;  %v4476_v36 = vmul.f32 %v9408_v49, %v10325_v41  ;;  %v4365_v38 = vpop.xlane.xlu0 %4364 }
 0x4bc   :  { %v4483_v52 = vmul.f32 %v9410_v20, %v10330_v24  ;;  %9419 = vrcp.f32 %v4365_v38  ;;  %v10457_v8 = vpop.eup %9411 }
 0x4bd   :  { %4508 = vst.msk [vmem:[%s11429_s6] sm:$0xff] %vm4154_vm5, %v4476_v36  ;;  %v4405_v53 = vsel %vm4158_vm6, %v10457_v8, 0.0 }
 0x4be   :  { %v9414_v10 = vpop.eup %9413  ;;  %4515 = vst.msk [vmem:[%s11429_s6 + $0x38] sm:$0x3] %vm4158_vm6, %v4483_v52  ;;  %4244 = vmax.xlane.f32.xlu0 %v4243_v57  ;;  %v4544_v41 = vpack.c.bf16 %v4483_v52, %v4482_v3  ;;  %v11523_v3 = vpack.c.bf16 %v10074_v33, %v10070_v28 }
 0x4bf   :  { %v4480_v24 = vmul.f32 %v9414_v10, %v10336_v43  ;;  %v4383_v9 = vpop.xlane.xlu0 %4382 }
 0x4c0   :  { %8235 = vmatmul.mubr.msk.bf16.vlgmr.msra.gmra.mrb[60].mxu1 %vm4154_vm5, %v4544_v41  ;;  %9421 = vrcp.f32 %v4383_v9 }
 0x4c1   :  { %4512 = vst.msk [vmem:[%s11429_s6 + $0x20] sm:$0xff] %vm4154_vm5, %v4480_v24  ;;  %8246 = vmatprep.mubr.msk.bf16.mxu1 %vm9596_vm2, %v11520_v17 }
 0x4c2   :  { %v10479_v7 = vpop.eup %9415  ;;  %4406 = vadd.xlane.f32.xlu0 %v4405_v53 }
 0x4c3   :  { %v9418_v4 = vpop.eup %9417  ;;  %v4395_v43 = vpop.xlane.xlu0 %4394  ;;  %v4417_v16 = vsel %vm4158_vm6, %v10479_v7, 0.0 }
 0x4c4   :  { %v4477_v63 = vmul.f32 %v9418_v4, %v10343_v59  ;;  %9423 = vrcp.f32 %v4395_v43  ;;  %v4656_v59 = vsel %vm4560_vm4, %v11523_v3, 0 }
 0x4c6   :  { %v9420_v18 = vpop.eup %9419  ;;  %4509 = vst.msk [vmem:[%s11429_s6 + $0x8] sm:$0x3] %vm4158_vm6, %v4477_v63  ;;  %4418 = vadd.xlane.f32.xlu0 %v4417_v16  ;;  %v4541_v15 = vpack.c.bf16 %v4477_v63, %v4476_v36  ;;  %v11525_v36 = vpack.c.bf16 %v10089_v2, %v10087_v37 }
 0x4c7   :  { %v4481_v47 = vmul.f32 %v9420_v18, %v10347_v48 }
 0x4c8   :  { %8217 = vmatmul.mubr.msk.bf16.vlgmr.msra.gmra.mrb[56].mxu0 %vm4154_vm5, %v4541_v15  ;;  %v4750_v38 = vsel %vm4560_vm4, %v11525_v36, 0 }
 0x4c9   :  { %4513 = vst.msk [vmem:[%s11429_s6 + $0x28] sm:$0x3] %vm4158_vm6, %v4481_v47  ;;  %8227 = vmatpush3.bf16.msra.mxu0 %v4656_v59  ;;  %8538 = vrot.lane.b32.xlu1 %v11524_v32, %s9597_s0  ;;  %v4543_v48 = vpack.c.bf16 %v4481_v47, %v4480_v24 }
 0x4ca   :  { %v9422_v49 = vpop.eup %9421  ;;  %8228 = vmatprep.mubr.msk.bf16.mxu0 %vm9596_vm2, %v11520_v17  ;;  %8238 = vmatprep.subr.bf16.mxu0 %v11520_v17 }
 0x4cb   :  { %v4487_v28 = vmul.f32 %v9422_v49, %v10351_v56  ;;  %v11526_v56 = vpack.i.bf16 %v10154_v51, %v10167_v6 }
 0x4cd   :  { %4519 = vst.msk [vmem:[%s11429_s6 + $0x58] sm:$0x3] %vm4158_vm6, %v4487_v28 }
 0x4ce   :  { %v9424_v33 = vpop.eup %9423 }
 0x4cf   :  { %v10511_v20 = vmul.f32 %v9424_v33, %v10355_v25  ;;  %v8534_v25 = vpop.permute.xlu0 %8533 }
 0x4d0   :  { %8229 = vmatmul.mubr.msk.bf16.vlgmr.msra.gmra.mrb[60].mxu0 %vm4154_vm5, %v4543_v48  ;;  %v8536_v41 = vunpack.i.h.bf16 %v8534_v25  ;;  %v8535_v24 = vunpack.i.l.bf16 %v8534_v25 }
 0x4d1   :  { %4523 = vst.msk [vmem:[%s11429_s6 + $0x78] sm:$0x3] %vm4158_vm6, %v10511_v20  ;;  %8239 = vmatpush3.bf16.msra.mxu0 %v4750_v38  ;;  %8240 = vmatprep.mubr.msk.bf16.mxu0 %vm9596_vm2, %v11520_v17 }
 0x4d2   :  { %8250 = vmatprep.subr.bf16.mxu0 %v11520_v17  ;;  %v3392_v4 = vpack.c.bf16 %v8536_v41, %v8535_v24 }
 0x4d4   :  { %v4891_v16 = vsel %vm4560_vm4, %v3392_v4, 0 }
 0x4dc   :  { %8543 = vrot.lane.b32.xlu0 %v11526_v56, %s9597_s0 }
 0x4e2   :  { %v4380_v37 = vpop.xlane.xlu1 %4379 }
 0x4e3   :  { %9425 = vrcp.f32 %v4380_v37 }
 0x4e6   :  { %v8529_v2 = vpop.permute.xlu1 %8528 }
 0x4e7   :  { %v8531_v52 = vunpack.i.h.bf16 %v8529_v2  ;;  %v8530_v57 = vunpack.i.l.bf16 %v8529_v2 }
 0x4e9   :  { %v3390_v10 = vpack.c.bf16 %v8531_v52, %v8530_v57 }
 0x4eb   :  { %v4797_v9 = vsel %vm4560_vm4, %v3390_v10, 0 }
 0x4ec   :  { %8245 = vmatpush3.bf16.msra.mxu1 %v4797_v9 }
 0x4ed   :  { %v9426_v53 = vpop.eup %9425  ;;  %8256 = vmatprep.subr.bf16.mxu1 %v11520_v17 }
 0x4ee   :  { %v4486_v43 = vmul.f32 %v9426_v53, %v10364_v39 }
 0x4f0   :  { %4518 = vst.msk [vmem:[%s11429_s6 + $0x50] sm:$0xff] %vm4154_vm5, %v4486_v43  ;;  %v4546_v63 = vpack.c.bf16 %v4487_v28, %v4486_v43 }
 0x4f2   :  { %8247 = vmatmul.mubr.msk.bf16.vlgmr.msra.gmra.mrb[64].mxu1 %vm4154_vm5, %v4546_v63 }
 0x4f3   :  { %8257 = vmatpush3.bf16.msra.mxu1 %v4891_v16  ;;  %8258 = vmatprep.mubr.msk.bf16.mxu1 %vm9596_vm2, %v11520_v17 }
 0x4f4   :  { %8268 = vmatprep.subr.bf16.mxu1 %v11520_v17 }
 0x4f8   :  { %v4209_v18 = vpop.xlane.xlu0 %4208 }
 0x4f9   :  { %v4269_v15 = vsub.f32 %v10213_v45, %v4209_v18 }
 0x4fb   :  { %v4318_v39 = vmul.f32 1.442695, %v4269_v15 }
 0x4fc   :  { %v4239_v47 = vpop.xlane.xlu0 %4238 }
 0x4fd   :  { %9427 = vpow2.f32 %v4318_v39  ;;  %v4279_v45 = vsub.f32 %v10277_v29, %v4239_v47 }
 0x4ff   :  { %v4338_v37 = vmul.f32 1.442695, %v4279_v45 }
 0x500   :  { %v4221_v3 = vpop.xlane.xlu0 %4220 }
 0x501   :  { %v4273_v59 = vsub.f32 %v10217_v11, %v4221_v3 }
 0x503   :  { %v4326_v32 = vmul.f32 1.442695, %v4273_v59 }
 0x504   :  { %v10544_v49 = vpop.xlane.xlu0 %4250 }
 0x505   :  { %9429 = vpow2.f32 %v4326_v32  ;;  %v4283_v28 = vsub.f32 %v10285_v12, %v10544_v49 }
 0x507   :  { %v10548_v33 = vpop.eup %9427 }
 0x508   :  { %v4377_v48 = vpop.xlane.xlu0 %4376  ;;  %v4399_v36 = vsel %vm4158_vm6, %v10548_v33, 0.0 }
 0x509   :  { %4400 = vadd.xlane.f32.xlu0 %v4399_v36  ;;  %9431 = vrcp.f32 %v4377_v48 }
 0x50c   :  { %v4233_v38 = vpop.xlane.xlu0 %4232 }
 0x50d   :  { %v4277_v11 = vsub.f32 %v10221_v22, %v4233_v38 }
 0x50f   :  { %v10554_v56 = vpop.eup %9429  ;;  %v4334_v2 = vmul.f32 1.442695, %v4277_v11 }
 0x510   :  { %v4411_v25 = vsel %vm4158_vm6, %v10554_v56, 0.0 }
 0x511   :  { %9433 = vpow2.f32 %v4334_v2  ;;  %4412 = vadd.xlane.f32.xlu0 %v4411_v25 }
 0x512   :  { %9435 = vpow2.f32 %v4338_v37 }
 0x513   :  { %v9432_v52 = vpop.eup %9431 }
 0x514   :  { %v4485_v57 = vmul.f32 %v9432_v52, %v10384_v46 }
 0x516   :  { %4517 = vst.msk [vmem:[%s11429_s6 + $0x48] sm:$0x3] %vm4158_vm6, %v4485_v57 }
 0x517   :  { %v4392_v29 = vpop.xlane.xlu1 %4391 }
 0x518   :  { %9437 = vrcp.f32 %v4392_v29 }
 0x51b   :  { %v10563_v22 = vpop.eup %9433  ;;  %v4206_v10 = vpop.xlane.xlu1 %4205 }
 0x51c   :  { %v4268_v41 = vsub.f32 %v10211_v44, %v4206_v10  ;;  %v4423_v24 = vsel %vm4158_vm6, %v10563_v22, 0.0  ;;  %v10568_v9 = vpop.eup %9435  ;;  %v11527_v10 = vpack.c.bf16 %v10099_v21, %v10095_v40 }
 0x51d   :  { %4424 = vadd.xlane.f32.xlu0 %v4423_v24  ;;  %v4429_v4 = vsel %vm4158_vm6, %v10568_v9, 0.0 }
 0x51e   :  { %v4316_v53 = vmul.f32 1.442695, %v4268_v41  ;;  %v4844_v41 = vsel %vm4560_vm4, %v11527_v10, 0 }
 0x51f   :  { %v4236_v46 = vpop.xlane.xlu1 %4235 }
 0x520   :  { %9439 = vpow2.f32 %v4316_v53  ;;  %v4278_v3 = vsub.f32 %v10275_v13, %v4236_v46 }
 0x521   :  { %4430 = vadd.xlane.f32.xlu0 %v4429_v4 }
 0x522   :  { %v9438_v43 = vpop.eup %9437  ;;  %v4336_v48 = vmul.f32 1.442695, %v4278_v3 }
 0x523   :  { %v4490_v63 = vmul.f32 %v9438_v43, %v10390_v42  ;;  %v4218_v16 = vpop.xlane.xlu1 %4217 }
 0x524   :  { %v4272_v18 = vsub.f32 %v10215_v61, %v4218_v16 }
 0x525   :  { %4522 = vst.msk [vmem:[%s11429_s6 + $0x70] sm:$0xff] %vm4154_vm5, %v4490_v63  ;;  %v4548_v44 = vpack.c.bf16 %v10511_v20, %v4490_v63 }
 0x526   :  { %v4324_v15 = vmul.f32 1.442695, %v4272_v18 }
 0x527   :  { %8259 = vmatmul.mubr.msk.bf16.vlgmr.msra.gmra.mrb[68].mxu1 %vm4154_vm5, %v4548_v44  ;;  %v4248_v39 = vpop.xlane.xlu1 %4247 }
 0x528   :  { %9441 = vpow2.f32 %v4324_v15  ;;  %8270 = vmatprep.mubr.msk.bf16.mxu1 %vm9596_vm2, %v11520_v17  ;;  %v4282_v36 = vsub.f32 %v10283_v55, %v4248_v39 }
 0x52a   :  { %v10582_v47 = vpop.eup %9439  ;;  %v4344_v37 = vmul.f32 1.442695, %v4282_v36 }
 0x52b   :  { %v4374_v42 = vpop.xlane.xlu1 %4373  ;;  %v4396_v61 = vsel %vm4154_vm5, %v10582_v47, 0.0 }
 0x52c   :  { %4397 = vadd.xlane.f32.xlu1 %v4396_v61  ;;  %9443 = vrcp.f32 %v4374_v42 }
 0x52f   :  { %v4230_v59 = vpop.xlane.xlu1 %4229 }
 0x530   :  { %v4276_v20 = vsub.f32 %v10219_v58, %v4230_v59  ;;  %v4346_v59 = vmul.f32 1.442695, %v4283_v28 }
 0x532   :  { %v10588_v32 = vpop.eup %9441  ;;  %v4332_v45 = vmul.f32 1.442695, %v4276_v20 }
 0x533   :  { %v4386_v38 = vpop.xlane.xlu1 %4385  ;;  %v4408_v11 = vsel %vm4154_vm5, %v10588_v32, 0.0 }
 0x534   :  { %9445 = vpow2.f32 %v4332_v45  ;;  %4409 = vadd.xlane.f32.xlu1 %v4408_v11 }
 0x535   :  { %9447 = vrcp.f32 %v4386_v38 }
 0x536   :  { %9449 = vpow2.f32 %v4336_v48  ;;  %v9444_v2 = vpop.eup %9443 }
 0x537   :  { %v4242_v13 = vpop.xlane.xlu1 %4241  ;;  %v4484_v25 = vmul.f32 %v9444_v2, %v10405_v14  ;;  %9451 = vpow2.f32 %v4344_v37 }
 0x538   :  { %v4280_v58 = vsub.f32 %v10223_v54, %v4242_v13 }
 0x539   :  { %4516 = vst.msk [vmem:[%s11429_s6 + $0x40] sm:$0xff] %vm4154_vm5, %v4484_v25  ;;  %v4545_v52 = vpack.c.bf16 %v4485_v57, %v4484_v25 }
 0x53a   :  { %v4340_v55 = vmul.f32 1.442695, %v4280_v58 }
 0x53b   :  { %v4404_v29 = vpop.xlane.xlu1 %4403  ;;  %8241 = vmatmul.mubr.msk.bf16.vlgmr.msra.gmra.mrb[64].mxu0 %vm4154_vm5, %v4545_v52 }
 0x53c   :  { %9453 = vpow2.f32 %v4340_v55  ;;  %8251 = vmatpush3.bf16.msra.mxu0 %v4844_v41  ;;  %8252 = vmatprep.mubr.msk.bf16.mxu0 %vm9596_vm2, %v11520_v17 }
 0x53d   :  { %9455 = vrcp.f32 %v4404_v29  ;;  %8262 = vmatprep.subr.bf16.mxu0 %v11520_v17 }
 0x53e   :  { %v10606_v54 = vpop.eup %9445 }
 0x53f   :  { %v9448_v14 = vpop.eup %9447  ;;  %v4420_v57 = vsel %vm4154_vm5, %v10606_v54, 0.0 }
 0x540   :  { %v10611_v24 = vpop.eup %9449  ;;  %v4488_v53 = vmul.f32 %v9448_v14, %v10411_v35  ;;  %4421 = vadd.xlane.f32.xlu1 %v4420_v57 }
 0x541   :  { %v4426_v40 = vsel %vm4154_vm5, %v10611_v24, 0.0  ;;  %v10620_v21 = vpop.eup %9451 }
 0x542   :  { %4520 = vst.msk [vmem:[%s11429_s6 + $0x60] sm:$0xff] %vm4154_vm5, %v4488_v53  ;;  %v4438_v35 = vsel %vm4154_vm5, %v10620_v21, 0.0 }
 0x544   :  { %4427 = vadd.xlane.f32.xlu1 %v4426_v40 }
 0x545   :  { %v4416_v46 = vpop.xlane.xlu1 %4415 }
 0x546   :  { %v10622_v4 = vpop.eup %9453  ;;  %9457 = vrcp.f32 %v4416_v46 }
 0x547   :  { %v9456_v43 = vpop.eup %9455  ;;  %v4389_v63 = vpop.xlane.xlu0 %4388  ;;  %v4432_v16 = vsel %vm4154_vm5, %v10622_v4, 0.0 }
 0x548   :  { %v4494_v18 = vmul.f32 %v9456_v43, %v10418_v31  ;;  %9459 = vrcp.f32 %v4389_v63  ;;  %4439 = vadd.xlane.f32.xlu1 %v4438_v35  ;;  %4433 = vadd.xlane.f32.xlu0 %v4432_v16 }
 0x549   :  { %v8539_v44 = vpop.permute.xlu1 %8538 }
 0x54a   :  { %7760 = vst.msk [vmem:[%s11429_s6 + $0x90] sm:$0xff] %vm4154_vm5, %v4494_v18  ;;  %v8541_v15 = vunpack.i.h.bf16 %v8539_v44  ;;  %v8540_v39 = vunpack.i.l.bf16 %v8539_v44 }
 0x54b   :  { %v4245_v42 = vpop.xlane.xlu0 %4244 }
 0x54c   :  { %v3394_v61 = vpack.c.bf16 %v8541_v15, %v8540_v39  ;;  %v4281_v3 = vsub.f32 %v10225_v60, %v4245_v42 }
 0x54e   :  { %v4342_v31 = vmul.f32 1.442695, %v4281_v3  ;;  %v4985_v20 = vsel %vm4560_vm4, %v3394_v61, 0 }
 0x54f   :  { %8269 = vmatpush3.bf16.msra.mxu1 %v4985_v20  ;;  %v4407_v48 = vpop.xlane.xlu0 %4406 }
 0x550   :  { %v9458_v36 = vpop.eup %9457  ;;  %9461 = vpow2.f32 %v4342_v31  ;;  %8280 = vmatprep.subr.bf16.mxu1 %v11520_v17 }
 0x551   :  { %v4498_v45 = vmul.f32 %v9458_v36, %v10439_v30  ;;  %9463 = vrcp.f32 %v4407_v48  ;;  %v11528_v30 = vpack.c.bf16 %v10151_v5, %v10163_v62 }
 0x552   :  { %v9460_v38 = vpop.eup %9459  ;;  %9465 = vpow2.f32 %v4346_v59 }
 0x553   :  { %7764 = vst.msk [vmem:[%s11429_s6 + $0xb0] sm:$0xff] %vm4154_vm5, %v4498_v45  ;;  %v4489_v60 = vmul.f32 %v9460_v38, %v10446_v19  ;;  %v4419_v12 = vpop.xlane.xlu0 %4418  ;;  %v4938_v28 = vsel %vm4560_vm4, %v11528_v30, 0  ;;  %v11529_v19 = vpack.i.bf16 %v10110_v34, %v10120_v0 }
 0x554   :  { %9467 = vrcp.f32 %v4419_v12 }
 0x555   :  { %4521 = vst.msk [vmem:[%s11429_s6 + $0x68] sm:$0x3] %vm4158_vm6, %v4489_v60  ;;  %v4547_v49 = vpack.c.bf16 %v4489_v60, %v4488_v53 }
 0x557   :  { %8253 = vmatmul.mubr.msk.bf16.vlgmr.msra.gmra.mrb[68].mxu0 %vm4154_vm5, %v4547_v49  ;;  %v8544_v11 = vpop.permute.xlu0 %8543 }
 0x558   :  { %8263 = vmatpush3.bf16.msra.mxu0 %v4938_v28  ;;  %v8546_v37 = vunpack.i.h.bf16 %v8544_v11  ;;  %v8545_v2 = vunpack.i.l.bf16 %v8544_v11  ;;  %8264 = vmatprep.mubr.msk.bf16.mxu0 %vm9596_vm2, %v11520_v17 }
 0x559   :  { %8548 = vrot.lane.b32.xlu1 %v11529_v19, %s9597_s0  ;;  %8274 = vmatprep.subr.bf16.mxu0 %v11520_v17 }
 0x55a   :  { %v10661_v13 = vpop.eup %9461  ;;  %v3396_v55 = vpack.c.bf16 %v8546_v37, %v8545_v2 }
 0x55b   :  { %v9464_v25 = vpop.eup %9463  ;;  %v4435_v5 = vsel %vm4158_vm6, %v10661_v13, 0.0 }
 0x55c   :  { %v10665_v62 = vpop.eup %9465  ;;  %v4495_v58 = vmul.f32 %v9464_v25, %v10457_v8  ;;  %4436 = vadd.xlane.f32.xlu0 %v4435_v5  ;;  %v5079_v14 = vsel %vm4560_vm4, %v3396_v55, 0 }
 0x55d   :  { %v4441_v41 = vsel %vm4158_vm6, %v10665_v62, 0.0 }
 0x55e   :  { %v9468_v52 = vpop.eup %9467  ;;  %7761 = vst.msk [vmem:[%s11429_s6 + $0x98] sm:$0x3] %vm4158_vm6, %v4495_v58  ;;  %v4550_v29 = vpack.c.bf16 %v4495_v58, %v4494_v18 }
 0x55f   :  { %v4499_v10 = vmul.f32 %v9468_v52, %v10479_v7  ;;  %v11530_v7 = vpack.i.bf16 %v10116_v50, %v10124_v1 }
 0x560   :  { %8271 = vmatmul.mubr.msk.bf16.vlgmr.msra.gmra.mrb[72].mxu1 %vm4154_vm5, %v4550_v29  ;;  %4442 = vadd.xlane.f32.xlu0 %v4441_v41 }
 0x561   :  { %7765 = vst.msk [vmem:[%s11429_s6 + $0xb8] sm:$0x3] %vm4158_vm6, %v4499_v10  ;;  %8281 = vmatpush3.bf16.msra.mxu1 %v5079_v14  ;;  %8282 = vmatprep.mubr.msk.bf16.mxu1 %vm9596_vm2, %v11520_v17  ;;  %v4552_v8 = vpack.c.bf16 %v4499_v10, %v4498_v45 }
 0x562   :  { %8292 = vmatprep.subr.bf16.mxu1 %v11520_v17 }
 0x568   :  { %8283 = vmatmul.mubr.msk.bf16.vlgmr.msra.gmra.mrb[76].mxu1 %vm4154_vm5, %v4552_v8 }
 0x569   :  { %8294 = vmatprep.mubr.msk.bf16.mxu1 %vm9596_vm2, %v11520_v17 }
 0x576   :  { %8553 = vrot.lane.b32.xlu0 %v11530_v7, %s9597_s0 }
 0x588   :  { %v4645_v57 = vpop.f32.mrb[56].mxu1 }
 0x589   :  { %v8224_v53 = vpop.f32.mrb[57].mxu1 }
 0x58a   :  { %v4648_v40 = vpop.f32.mrb[58].mxu1 }
 0x58b   :  { %v8562_v46 = vpack.i.bf16 %v4648_v40, %v4645_v57  ;;  %v8225_v43 = vpop.f32.mrb[59].mxu1 }
 0x593   :  { %v4739_v63 = vpop.f32.mrb[60].mxu1 }
 0x594   :  { %v8236_v35 = vpop.f32.mrb[61].mxu1 }
 0x595   :  { %v4742_v16 = vpop.f32.mrb[62].mxu1 }
 0x596   :  { %v8557_v18 = vpack.i.bf16 %v4742_v16, %v4739_v63  ;;  %v8237_v44 = vpop.f32.mrb[63].mxu1  ;;  %v4401_v15 = vpop.xlane.xlu0 %4400 }
 0x597   :  { %9469 = vrcp.f32 %v4401_v15 }
 0x598   :  { %8558 = vrot.lane.b32.xlu1 %v8557_v18, %s9597_s0 }
 0x59b   :  { %v10692_v39 = vpop.f32.mrb[56].mxu0 }
 0x59c   :  { %8563 = vrot.lane.b32.xlu1 %v8562_v46, %s9597_s0  ;;  %v8218_v42 = vpop.f32.mrb[57].mxu0 }
 0x59d   :  { %v10695_v61 = vpop.f32.mrb[58].mxu0 }
 0x59e   :  { %v8219_v3 = vpop.f32.mrb[59].mxu0  ;;  %v4413_v59 = vpop.xlane.xlu0 %4412 }
 0x59f   :  { %9471 = vrcp.f32 %v4413_v59 }
 0x5a1   :  { %v9470_v31 = vpop.eup %9469 }
 0x5a2   :  { %v4493_v20 = vmul.f32 %v9470_v31, %v10548_v33 }
 0x5a3   :  { %v10698_v48 = vpop.f32.mrb[60].mxu0 }
 0x5a4   :  { %7759 = vst.msk [vmem:[%s11429_s6 + $0x88] sm:$0x3] %vm4158_vm6, %v4493_v20  ;;  %v8230_v36 = vpop.f32.mrb[61].mxu0 }
 0x5a5   :  { %v10704_v45 = vpop.f32.mrb[62].mxu0 }
 0x5a6   :  { %v8231_v38 = vpop.f32.mrb[63].mxu0 }
 0x5a9   :  { %v9472_v60 = vpop.eup %9471 }
 0x5aa   :  { %v4497_v12 = vmul.f32 %v9472_v60, %v10554_v56  ;;  %v4425_v49 = vpop.xlane.xlu0 %4424  ;;  %v10788_v60 = vld [vmem:[#allocation6 + $0xc] ss:$16 sps:$4 sm:$0xff]  }
 0x5ab   :  { %9473 = vrcp.f32 %v4425_v49  ;;  %v10792_v49 = vld [vmem:[#allocation6] ss:$16 sps:$4 sm:$0xff]  }
 0x5ac   :  { %7763 = vst.msk [vmem:[%s11429_s6 + $0xa8] sm:$0x3] %vm4158_vm6, %v4497_v12 }
 0x5ae   :  { %v4431_v33 = vpop.xlane.xlu0 %4430 }
 0x5af   :  { %9475 = vrcp.f32 %v4431_v33 }
 0x5b5   :  { %v9474_v30 = vpop.eup %9473 }
 0x5b6   :  { %v4501_v28 = vmul.f32 %v9474_v30, %v10563_v22  ;;  %v10798_v30 = vld [vmem:[#allocation6 + $0x24] ss:$16 sps:$4 sm:$0xff]  }
 0x5b8   :  { %7767 = vst.msk [vmem:[%s11429_s6 + $0xc8] sm:$0x3] %vm4158_vm6, %v4501_v28 }
 0x5b9   :  { %v9476_v11 = vpop.eup %9475  ;;  %v4398_v37 = vpop.xlane.xlu1 %4397 }
 0x5ba   :  { %v4503_v56 = vmul.f32 %v9476_v11, %v10568_v9  ;;  %9477 = vrcp.f32 %v4398_v37  ;;  %v10804_v37 = vld [vmem:[#allocation6 + $0x20] ss:$16 sps:$4 sm:$0xff]  }
 0x5bc   :  { %7769 = vst.msk [vmem:[%s11429_s6 + $0xd8] sm:$0x3] %vm4158_vm6, %v4503_v56 }
 0x5c1   :  { %v4410_v2 = vpop.xlane.xlu1 %4409 }
 0x5c2   :  { %9479 = vrcp.f32 %v4410_v2 }
 0x5c4   :  { %v9478_v19 = vpop.eup %9477 }
 0x5c5   :  { %v4492_v22 = vmul.f32 %v9478_v19, %v10582_v47  ;;  %v10722_v25 = vpop.f32.mrb[64].mxu1  ;;  %v11531_v47 = vpack.c.bf16 %v10154_v51, %v10167_v6  ;;  %v11532_v6 = vpack.c.bf16 %v10110_v34, %v10120_v0  ;;  %v10758_v0 = vld [vmem:[#allocation6 + $0x4] ss:$16 sps:$4 sm:$0xff]  }
 0x5c6   :  { %v8248_v5 = vpop.f32.mrb[65].mxu1 }
 0x5c7   :  { %7758 = vst.msk [vmem:[%s11429_s6 + $0x80] sm:$0xff] %vm4154_vm5, %v4492_v22  ;;  %v10728_v9 = vpop.f32.mrb[66].mxu1  ;;  %v4549_v58 = vpack.c.bf16 %v4493_v20, %v4492_v22  ;;  %v5032_v29 = vsel %vm4560_vm4, %v11531_v47, 0  ;;  %v5126_v7 = vsel %vm4560_vm4, %v11532_v6, 0  ;;  %v10813_v22 = vld [vmem:[#allocation6 + $0x44] ss:$16 sps:$4 sm:$0xff]  }
 0x5c8   :  { %v8572_v55 = vpack.i.bf16 %v10728_v9, %v10722_v25  ;;  %v8249_v52 = vpop.f32.mrb[67].mxu1  ;;  %v10815_v5 = vld [vmem:[#allocation6 + $0x2c] ss:$16 sps:$4 sm:$0xff]   ;;  %v10820_v47 = vld [vmem:[#allocation6 + $0x40] ss:$16 sps:$4 sm:$0xff]  }
 0x5c9   :  { %8265 = vmatmul.mubr.msk.bf16.vlgmr.msra.gmra.mrb[72].mxu0 %vm4154_vm5, %v4549_v58  ;;  %v10844_v6 = vld [vmem:[#allocation6 + $0x6c] ss:$16 sps:$4 sm:$0xff]   ;;  %v10855_v25 = vld [vmem:[#allocation6 + $0xa4] ss:$16 sps:$4 sm:$0xff]  }
 0x5ca   :  { %8275 = vmatpush3.bf16.msra.mxu0 %v5032_v29  ;;  %8276 = vmatprep.mubr.msk.bf16.mxu0 %vm9596_vm2, %v11520_v17  ;;  %v10822_v29 = vld [vmem:[#allocation6 + $0x28] ss:$16 sps:$4 sm:$0xff]   ;;  %v10857_v9 = vld [vmem:[#allocation6 + $0x8c] ss:$16 sps:$4 sm:$0xff]  }
 0x5cb   :  { %8286 = vmatprep.subr.bf16.mxu0 %v11520_v17 }
 0x5cc   :  { %v9480_v10 = vpop.eup %9479 }
 0x5cd   :  { %v4496_v41 = vmul.f32 %v9480_v10, %v10588_v32  ;;  %v4422_v14 = vpop.xlane.xlu1 %4421  ;;  %v10826_v10 = vld [vmem:[#allocation6 + $0x64] ss:$16 sps:$4 sm:$0xff]  }
 0x5ce   :  { %9481 = vrcp.f32 %v4422_v14  ;;  %v10833_v14 = vld [vmem:[#allocation6 + $0x60] ss:$16 sps:$4 sm:$0xff]  }
 0x5cf   :  { %7762 = vst.msk [vmem:[%s11429_s6 + $0xa0] sm:$0xff] %vm4154_vm5, %v4496_v41  ;;  %v4551_v8 = vpack.c.bf16 %v4497_v12, %v4496_v41  ;;  %v10829_v41 = vld [vmem:[#allocation6 + $0x4c] ss:$16 sps:$4 sm:$0xff]  }
 0x5d1   :  { %v4428_v51 = vpop.xlane.xlu1 %4427  ;;  %8277 = vmatmul.mubr.msk.bf16.vlgmr.msra.gmra.mrb[76].mxu0 %vm4154_vm5, %v4551_v8  ;;  %v10835_v8 = vld [vmem:[#allocation6 + $0x48] ss:$16 sps:$4 sm:$0xff]  }
 0x5d2   :  { %9483 = vrcp.f32 %v4428_v51  ;;  %8287 = vmatpush3.bf16.msra.mxu0 %v5126_v7  ;;  %8288 = vmatprep.mubr.msk.bf16.mxu0 %vm9596_vm2, %v11520_v17  ;;  %v10842_v51 = vld [vmem:[#allocation6 + $0x84] ss:$16 sps:$4 sm:$0xff]   ;;  %v10849_v7 = vld [vmem:[#allocation6 + $0x80] ss:$16 sps:$4 sm:$0xff]  }
 0x5d3   :  { %8298 = vmatprep.subr.bf16.mxu0 %v11520_v17 }
 0x5d5   :  { %v4440_v32 = vpop.xlane.xlu1 %4439  ;;  %v4434_v57 = vpop.xlane.xlu0 %4433 }
 0x5d6   :  { %9485 = vrcp.f32 %v4440_v32  ;;  %v10851_v32 = vld [vmem:[#allocation6 + $0x68] ss:$16 sps:$4 sm:$0xff]  }
 0x5d7   :  { %9487 = vrcp.f32 %v4434_v57  ;;  %v10861_v57 = vld [vmem:[#allocation6 + $0xa0] ss:$16 sps:$4 sm:$0xff]  }
 0x5d8   :  { %v9482_v53 = vpop.eup %9481 }
 0x5d9   :  { %v4500_v40 = vmul.f32 %v9482_v53, %v10606_v54  ;;  %v8549_v46 = vpop.permute.xlu1 %8548  ;;  %v11533_v54 = vpack.c.bf16 %v10116_v50, %v10124_v1  ;;  %v10863_v53 = vld [vmem:[#allocation6 + $0x88] ss:$16 sps:$4 sm:$0xff]  }
 0x5da   :  { %v8551_v43 = vunpack.i.h.bf16 %v8549_v46  ;;  %v8550_v63 = vunpack.i.l.bf16 %v8549_v46 }
 0x5db   :  { %7766 = vst.msk [vmem:[%s11429_s6 + $0xc0] sm:$0xff] %vm4154_vm5, %v4500_v40  ;;  %v4553_v34 = vpack.c.bf16 %v4501_v28, %v4500_v40  ;;  %v5220_v44 = vsel %vm4560_vm4, %v11533_v54, 0  ;;  %v10877_v54 = vld [vmem:[#allocation6 + $0xc0] ss:$16 sps:$4 sm:$0xff]  }
 0x5dc   :  { %v9484_v35 = vpop.eup %9483  ;;  %v3398_v16 = vpack.c.bf16 %v8551_v43, %v8550_v63  ;;  %v10867_v43 = vld [vmem:[#allocation6 + $0xc4] ss:$16 sps:$4 sm:$0xff]   ;;  %v10869_v63 = vld [vmem:[#allocation6 + $0xac] ss:$16 sps:$4 sm:$0xff]  }
 0x5dd   :  { %v4502_v18 = vmul.f32 %v9484_v35, %v10611_v24  ;;  %8289 = vmatmul.mubr.msk.bf16.vlgmr.msra.gmra.mrb[80].mxu0 %vm4154_vm5, %v4553_v34 }
 0x5de   :  { %8299 = vmatpush3.bf16.msra.mxu0 %v5220_v44  ;;  %v5173_v15 = vsel %vm4560_vm4, %v3398_v16, 0  ;;  %8300 = vmatprep.mubr.msk.bf16.mxu0 %vm9596_vm2, %v11520_v17  ;;  %v10879_v44 = vld [vmem:[#allocation6 + $0xa8] ss:$16 sps:$4 sm:$0xff]  }
 0x5df   :  { %7768 = vst.msk [vmem:[%s11429_s6 + $0xd0] sm:$0xff] %vm4154_vm5, %v4502_v18  ;;  %8293 = vmatpush3.bf16.msra.mxu1 %v5173_v15  ;;  %v4554_v24 = vpack.c.bf16 %v4503_v56, %v4502_v18  ;;  %6144 = vmatprep.subr.bf16.mxu0 %v10758_v0  ;;  %v10806_v56 = vld [vmem:[#allocation6 + $0x8] ss:$16 sps:$4 sm:$0xff]  }
 0x5e0   :  { %v9486_v42 = vpop.eup %9485  ;;  %8304 = vmatprep.subr.bf16.mxu1 %v11520_v17 }
 0x5e1   :  { %v9488_v50 = vpop.eup %9487  ;;  %v4506_v1 = vmul.f32 %v9486_v42, %v10620_v21 }
 0x5e2   :  { %v4504_v3 = vmul.f32 %v9488_v50, %v10622_v4  ;;  %8295 = vmatmul.mubr.msk.bf16.vlgmr.msra.gmra.mrb[80].mxu1 %vm4154_vm5, %v4554_v24 }
 0x5e3   :  { %7772 = vst.msk [vmem:[%s11429_s6 + $0xf0] sm:$0xff] %vm4154_vm5, %v4506_v1  ;;  %8306 = vmatprep.mubr.msk.bf16.mxu1 %vm9596_vm2, %v11520_v17 }
 0x5e4   :  { %7770 = vst.msk [vmem:[%s11429_s6 + $0xe0] sm:$0xff] %vm4154_vm5, %v4504_v3 }
 0x5e9   :  { %v4437_v59 = vpop.xlane.xlu0 %4436 }
 0x5ea   :  { %9489 = vrcp.f32 %v4437_v59 }
 0x5ed   :  { %v4443_v21 = vpop.xlane.xlu0 %4442 }
 0x5ee   :  { %9491 = vrcp.f32 %v4443_v21 }
 0x5f1   :  { %v8554_v4 = vpop.permute.xlu0 %8553 }
 0x5f2   :  { %v8556_v31 = vunpack.i.h.bf16 %v8554_v4  ;;  %v8555_v20 = vunpack.i.l.bf16 %v8554_v4 }
 0x5f4   :  { %v9490_v36 = vpop.eup %9489  ;;  %v3400_v38 = vpack.c.bf16 %v8556_v31, %v8555_v20  ;;  %v10899_v31 = vld [vmem:[#allocation6 + $0xe0] ss:$16 sps:$4 sm:$0xff]   ;;  %v10901_v20 = vld [vmem:[#allocation6 + $0xc8] ss:$16 sps:$4 sm:$0xff]  }
 0x5f5   :  { %v4505_v12 = vmul.f32 %v9490_v36, %v10661_v13  ;;  %v10911_v36 = vld [vmem:[#allocation6 + $0x100] ss:$16 sps:$4 sm:$0xff]  }
 0x5f6   :  { %v5267_v17 = vsel %vm4560_vm4, %v3400_v38, 0  ;;  %v10913_v38 = vld [vmem:[#allocation6 + $0xe8] ss:$16 sps:$4 sm:$0xff]  }
 0x5f7   :  { %7771 = vst.msk [vmem:[%s11429_s6 + $0xe8] sm:$0x3] %vm4158_vm6, %v4505_v12  ;;  %8305 = vmatpush3.bf16.msra.mxu1 %v5267_v17  ;;  %v4555_v33 = vpack.c.bf16 %v4505_v12, %v4504_v3  ;;  %v10917_v12 = vld [vmem:[#allocation6 + $0x124] ss:$16 sps:$4 sm:$0xff]   ;;  %v10919_v17 = vld [vmem:[#allocation6 + $0x10c] ss:$16 sps:$4 sm:$0xff]  }
 0x5f8   :  { %v9492_v28 = vpop.eup %9491  ;;  %6230 = vmatprep.subr.bf16.mxu1 %v10788_v60 }
 0x5f9   :  { %v4507_v11 = vmul.f32 %v9492_v28, %v10665_v62  ;;  %8301 = vmatmul.mubr.msk.bf16.vlgmr.msra.gmra.mrb[84].mxu0 %vm4154_vm5, %v4555_v33  ;;  %v10923_v33 = vld [vmem:[#allocation6 + $0x120] ss:$16 sps:$4 sm:$0xff]   ;;  %v10925_v28 = vld [vmem:[#allocation6 + $0x108] ss:$16 sps:$4 sm:$0xff]  }
 0x5fa   :  { %6145 = vmatpush1.bf16.msra.mxu0 %v10792_v49  ;;  %v4927_v13 = vpop.f32.mrb[68].mxu1 }
 0x5fb   :  { %7773 = vst.msk [vmem:[%s11429_s6 + $0xf8] sm:$0x3] %vm4158_vm6, %v4507_v11  ;;  %v8260_v2 = vpop.f32.mrb[69].mxu1  ;;  %6146 = vmatprep.subr.bf16.mxu0 %v10798_v30  ;;  %v4556_v19 = vpack.c.bf16 %v4507_v11, %v4506_v1  ;;  %v10929_v11 = vld [vmem:[#allocation6 + $0x144] ss:$16 sps:$4 sm:$0xff]  }
 0x5fc   :  { %v4930_v62 = vpop.f32.mrb[70].mxu1  ;;  %v10935_v2 = vld [vmem:[#allocation6 + $0x140] ss:$16 sps:$4 sm:$0xff]  }
 0x5fd   :  { %v8567_v58 = vpack.i.bf16 %v4930_v62, %v4927_v13  ;;  %v8261_v52 = vpop.f32.mrb[71].mxu1  ;;  %8307 = vmatmul.mubr.msk.bf16.vlgmr.msra.gmra.mrb[84].mxu1 %vm4154_vm5, %v4556_v19  ;;  %v10931_v13 = vld [vmem:[#allocation6 + $0x12c] ss:$16 sps:$4 sm:$0xff]   ;;  %v10937_v19 = vld [vmem:[#allocation6 + $0x128] ss:$16 sps:$4 sm:$0xff]  }
 0x5fe   :  { %6147 = vmatpush1.bf16.msra.mxu0 %v10804_v37  ;;  %6231 = vmatpush1.bf16.msra.mxu1 %v10806_v56  ;;  %v10941_v62 = vld [vmem:[#allocation6 + $0x164] ss:$16 sps:$4 sm:$0xff]   ;;  %v10947_v52 = vld [vmem:[#allocation6 + $0x160] ss:$16 sps:$4 sm:$0xff]  }
 0x5ff   :  { %8568 = vrot.lane.b32.xlu1 %v8567_v58, %s9597_s0  ;;  %6148 = vmatprep.subr.bf16.mxu0 %v10813_v22  ;;  %v10943_v58 = vld [vmem:[#allocation6 + $0x14c] ss:$16 sps:$4 sm:$0xff]   ;;  %11534 = vst [vmem:[#allocation16_spill] sm:$0xff] %v10947_v52 }
 0x600   :  { %6232 = vmatprep.subr.bf16.mxu1 %v10815_v5 }
 0x602   :  { %6149 = vmatpush1.bf16.msra.mxu0 %v10820_v47  ;;  %6233 = vmatpush1.bf16.msra.mxu1 %v10822_v29 }
 0x603   :  { %8573 = vrot.lane.b32.xlu1 %v8572_v55, %s9597_s0  ;;  %6150 = vmatprep.subr.bf16.mxu0 %v10826_v10 }
 0x604   :  { %6234 = vmatprep.subr.bf16.mxu1 %v10829_v41 }
 0x606   :  { %6151 = vmatpush1.bf16.msra.mxu0 %v10833_v14  ;;  %6235 = vmatpush1.bf16.msra.mxu1 %v10835_v8 }
 0x607   :  { %6152 = vmatprep.subr.bf16.mxu0 %v10842_v51  ;;  %6236 = vmatprep.subr.bf16.mxu1 %v10844_v6 }
 0x60a   :  { %v8559_v55 = vpop.permute.xlu1 %8558  ;;  %6153 = vmatpush1.bf16.msra.mxu0 %v10849_v7  ;;  %6237 = vmatpush1.bf16.msra.mxu1 %v10851_v32 }
 0x60b   :  { %v8561_v40 = vunpack.i.h.bf16 %v8559_v55  ;;  %v8560_v46 = vunpack.i.l.bf16 %v8559_v55  ;;  %6154 = vmatprep.subr.bf16.mxu0 %v10855_v25  ;;  %6238 = vmatprep.subr.bf16.mxu1 %v10857_v9  ;;  %v10949_v55 = vld [vmem:[#allocation6 + $0x148] ss:$16 sps:$4 sm:$0xff]  }
 0x60d   :  { %v5344_v34 = vsel %vm3401_vm3, %v10698_v48, %v8560_v46  ;;  %v5345_v35 = vsel %vm3401_vm3, %v10704_v45, %v8561_v40  ;;  %v10885_v48 = vld [vmem:[#allocation6 + $0xe4] ss:$16 sps:$4 sm:$0xff]   ;;  %v10887_v45 = vld [vmem:[#allocation6 + $0xcc] ss:$16 sps:$4 sm:$0xff]  }
 0x60e   :  { %v8564_v16 = vpop.permute.xlu1 %8563  ;;  %6155 = vmatpush1.bf16.msra.mxu0 %v10861_v57  ;;  %6239 = vmatpush1.bf16.msra.mxu1 %v10863_v53  ;;  %v5351_v18 = vpack.c.bf16 %v5345_v35, %v5344_v34  ;;  %v10881_v42 = vpop.f32.mrb[64].mxu0  ;;  %v10953_v40 = vld [vmem:[#allocation6 + $0x184] ss:$16 sps:$4 sm:$0xff]   ;;  %v10955_v46 = vld [vmem:[#allocation6 + $0x16c] ss:$16 sps:$4 sm:$0xff]  }
 0x60f   :  { %v8566_v15 = vunpack.i.h.bf16 %v8564_v16  ;;  %v8565_v24 = vunpack.i.l.bf16 %v8564_v16  ;;  %6156 = vmatprep.subr.bf16.mxu0 %v10867_v43  ;;  %6240 = vmatprep.subr.bf16.mxu1 %v10869_v63  ;;  %v8242_v50 = vpop.f32.mrb[65].mxu0  ;;  %11535 = vst [vmem:[#allocation17_spill] sm:$0xff] %v10953_v40  ;;  %v10959_v34 = vld [vmem:[#allocation6 + $0x180] ss:$16 sps:$4 sm:$0xff]   ;;  %v10961_v35 = vld [vmem:[#allocation6 + $0x168] ss:$16 sps:$4 sm:$0xff]  }
 0x610   :  { %6176 = vmatprep.mubr.bf16.mxu0 %v5351_v18  ;;  %6262 = vmatprep.mubr.bf16.mxu1 %v5351_v18  ;;  %v10893_v59 = vpop.f32.mrb[66].mxu0  ;;  %11536 = vst [vmem:[#allocation18_spill] sm:$0xff] %v10959_v34  ;;  %11537 = vst [vmem:[#allocation19_spill] sm:$0xff] %v10961_v35  ;;  %v10965_v16 = vld [vmem:[#allocation6 + $0x1a4] ss:$16 sps:$4 sm:$0xff]  }
 0x611   :  { %v5342_v1 = vsel %vm3401_vm3, %v10692_v39, %v8565_v24  ;;  %v5343_v3 = vsel %vm3401_vm3, %v10695_v61, %v8566_v15  ;;  %v8243_v4 = vpop.f32.mrb[67].mxu0  ;;  %v10905_v39 = vld [vmem:[#allocation6 + $0x104] ss:$16 sps:$4 sm:$0xff]   ;;  %v10907_v61 = vld [vmem:[#allocation6 + $0xec] ss:$16 sps:$4 sm:$0xff]   ;;  %11538 = vst [vmem:[#allocation20_spill] sm:$0xff] %v10965_v16 }
 0x612   :  { %v10895_v21 = vpack.c.bf16 %v5343_v3, %v5342_v1  ;;  %6157 = vmatpush1.bf16.msra.mxu0 %v10877_v54  ;;  %6241 = vmatpush1.bf16.msra.mxu1 %v10879_v44  ;;  %v10967_v18 = vld [vmem:[#allocation6 + $0x18c] ss:$16 sps:$4 sm:$0xff]   ;;  %v10973_v24 = vld [vmem:[#allocation6 + $0x1a0] ss:$16 sps:$4 sm:$0xff]   ;;  %v10975_v50 = vld [vmem:[#allocation6 + $0x188] ss:$16 sps:$4 sm:$0xff]  }
 0x613   :  { %6158 = vmatprep.subr.bf16.mxu0 %v10885_v48  ;;  %6242 = vmatprep.subr.bf16.mxu1 %v10887_v45  ;;  %11539 = vst [vmem:[#allocation21_spill] sm:$0xff] %v10967_v18  ;;  %11540 = vst [vmem:[#allocation22_spill] sm:$0xff] %v10973_v24  ;;  %v10979_v3 = vld [vmem:[#allocation6 + $0x1c4] ss:$16 sps:$4 sm:$0xff]   ;;  %v10981_v4 = vld [vmem:[#allocation6 + $0x1ac] ss:$16 sps:$4 sm:$0xff]  }
 0x614   :  { %11541 = vst [vmem:[#allocation23_spill] sm:$0xff] %v10975_v50  ;;  %11542 = vst [vmem:[#allocation24_spill] sm:$0xff] %v10979_v3 }
 0x615   :  { %11543 = vst [vmem:[#allocation25_spill] sm:$0xff] %v10981_v4 }
 0x616   :  { %6159 = vmatpush1.bf16.msra.mxu0 %v10899_v31  ;;  %6243 = vmatpush1.bf16.msra.mxu1 %v10901_v20 }
 0x617   :  { %6160 = vmatprep.subr.bf16.mxu0 %v10905_v39  ;;  %6244 = vmatprep.subr.bf16.mxu1 %v10907_v61 }
 0x61a   :  { %6161 = vmatpush1.bf16.msra.mxu0 %v10911_v36  ;;  %6245 = vmatpush1.bf16.msra.mxu1 %v10913_v38 }
 0x61b   :  { %6162 = vmatprep.subr.bf16.mxu0 %v10917_v12  ;;  %6246 = vmatprep.subr.bf16.mxu1 %v10919_v17 }
 0x61e   :  { %6163 = vmatpush1.bf16.msra.mxu0 %v10923_v33  ;;  %6247 = vmatpush1.bf16.msra.mxu1 %v10925_v28 }
 0x61f   :  { %6164 = vmatprep.subr.bf16.mxu0 %v10929_v11  ;;  %6248 = vmatprep.subr.bf16.mxu1 %v10931_v13 }
 0x622   :  { %6165 = vmatpush1.bf16.msra.mxu0 %v10935_v2  ;;  %6249 = vmatpush1.bf16.msra.mxu1 %v10937_v19 }
 0x623   :  { %6166 = vmatprep.subr.bf16.mxu0 %v10941_v62  ;;  %6250 = vmatprep.subr.bf16.mxu1 %v10943_v58 }
 0x626   :  { %6167 = vmatpush1.bf16.msra.mxu0 %v10947_v52  ;;  %6251 = vmatpush1.bf16.msra.mxu1 %v10949_v55 }
 0x627   :  { %6168 = vmatprep.subr.bf16.mxu0 %v10953_v40  ;;  %6252 = vmatprep.subr.bf16.mxu1 %v10955_v46 }
 0x62a   :  { %6169 = vmatpush1.bf16.msra.mxu0 %v10959_v34  ;;  %6253 = vmatpush1.bf16.msra.mxu1 %v10961_v35  ;;  %v10971_v15 = vpop.f32.mrb[68].mxu0  ;;  %v10989_v34 = vld [vmem:[#allocation6 + $0x1a8] ss:$16 sps:$4 sm:$0xff]  }
 0x62b   :  { %v8254_v1 = vpop.f32.mrb[69].mxu0  ;;  %6170 = vmatprep.subr.bf16.mxu0 %v10965_v16  ;;  %6254 = vmatprep.subr.bf16.mxu1 %v10967_v18  ;;  %11545 = vst [vmem:[#allocation27_spill] sm:$0xff] %v10989_v34  ;;  %v10995_v16 = vld [vmem:[#allocation6 + $0x1cc] ss:$16 sps:$4 sm:$0xff]  }
 0x62c   :  { %v10983_v27 = vpop.f32.mrb[70].mxu0  ;;  %v10993_v1 = vld [vmem:[#allocation6 + $0x1e4] ss:$16 sps:$4 sm:$0xff]   ;;  %11547 = vst [vmem:[#allocation29_spill] sm:$0xff] %v10995_v16 }
 0x62d   :  { %v8255_v26 = vpop.f32.mrb[71].mxu0  ;;  %11546 = vst [vmem:[#allocation28_spill] sm:$0xff] %v10993_v1 }
 0x62e   :  { %6171 = vmatpush1.bf16.msra.mxu0 %v10973_v24  ;;  %6255 = vmatpush1.bf16.msra.mxu1 %v10975_v50  ;;  %v10999_v26 = vld [vmem:[#allocation6 + $0x1e0] ss:$16 sps:$4 sm:$0xff]   ;;  %v11001_v24 = vld [vmem:[#allocation6 + $0x1c8] ss:$16 sps:$4 sm:$0xff]  }
 0x62f   :  { %6172 = vmatprep.subr.bf16.mxu0 %v10979_v3  ;;  %6256 = vmatprep.subr.bf16.mxu1 %v10981_v4  ;;  %11548 = vst [vmem:[#allocation30_spill] sm:$0xff] %v10999_v26  ;;  %11549 = vst [vmem:[#allocation31_spill] sm:$0xff] %v11001_v24  ;;  %v11005_v3 = vld [vmem:[#allocation6 + $0x1ec] ss:$16 sps:$4 sm:$0xff]   ;;  %v11007_v4 = vld [vmem:[#allocation6 + $0x204] ss:$16 sps:$4 sm:$0xff]  }
 0x630   :  { %11550 = vst [vmem:[#allocation32_spill] sm:$0xff] %v11005_v3  ;;  %11551 = vst [vmem:[#allocation33_spill] sm:$0xff] %v11007_v4 }
 0x632   :  { %6173 = vmatpush1.bf16.msra.mxu0 %v10987_v23  ;;  %6257 = vmatpush1.bf16.msra.mxu1 %v10989_v34  ;;  %v11011_v23 = vld [vmem:[#allocation6 + $0x1e8] ss:$16 sps:$4 sm:$0xff]   ;;  %v11013_v34 = vld [vmem:[#allocation6 + $0x200] ss:$16 sps:$4 sm:$0xff]  }
 0x633   :  { %v5021_v50 = vpop.f32.mrb[72].mxu1  ;;  %6174 = vmatprep.subr.bf16.mxu0 %v10993_v1  ;;  %6258 = vmatprep.subr.bf16.mxu1 %v10995_v16  ;;  %11552 = vst [vmem:[#allocation34_spill] sm:$0xff] %v11011_v23  ;;  %11553 = vst [vmem:[#allocation35_spill] sm:$0xff] %v11013_v34  ;;  %v11017_v1 = vld [vmem:[#allocation6 + $0x20c] ss:$16 sps:$4 sm:$0xff]  }
 0x634   :  { %v8272_v18 = vpop.f32.mrb[73].mxu1  ;;  %11554 = vst [vmem:[#allocation36_spill] sm:$0xff] %v11017_v1  ;;  %v11019_v16 = vld [vmem:[#allocation6 + $0x224] ss:$16 sps:$4 sm:$0xff]  }
 0x635   :  { %v5024_v35 = vpop.f32.mrb[74].mxu1  ;;  %11555 = vst [vmem:[#allocation37_spill] sm:$0xff] %v11019_v16 }
 0x636   :  { %v8582_v40 = vpack.i.bf16 %v5024_v35, %v5021_v50  ;;  %v8273_v52 = vpop.f32.mrb[75].mxu1  ;;  %6175 = vmatpush1.bf16.msra.mxu0 %v10999_v26  ;;  %6259 = vmatpush1.bf16.msra.mxu1 %v11001_v24  ;;  %v11027_v35 = vld [vmem:[#allocation6 + $0x220] ss:$16 sps:$4 sm:$0xff]   ;;  %v11031_v50 = vld [vmem:[#allocation6 + $0x22c] ss:$16 sps:$4 sm:$0xff]  }
 0x637   :  { %6260 = vmatprep.subr.bf16.mxu1 %v11005_v3  ;;  %6187 = vmatprep.subr.bf16.mxu0 %v11007_v4  ;;  %v11025_v52 = vld [vmem:[#allocation6 + $0x208] ss:$16 sps:$4 sm:$0xff]   ;;  %11557 = vst [vmem:[#allocation39_spill] sm:$0xff] %v11027_v35  ;;  %11558 = vst [vmem:[#allocation40_spill] sm:$0xff] %v11031_v50  ;;  %v11033_v4 = vld [vmem:[#allocation6 + $0x244] ss:$16 sps:$4 sm:$0xff]  }
 0x638   :  { %8583 = vrot.lane.b32.xlu1 %v8582_v40, %s9597_s0  ;;  %11556 = vst [vmem:[#allocation38_spill] sm:$0xff] %v11025_v52  ;;  %11559 = vst [vmem:[#allocation41_spill] sm:$0xff] %v11033_v4  ;;  %v11040_v24 = vld [vmem:[#allocation6 + $0x240] ss:$16 sps:$4 sm:$0xff]  }
 0x639   :  { %6177 = vmatmul.mubr.bf16.vlgmr.msra.gmra.mrb[88].mxu0 %v10895_v21  ;;  %11561 = vst [vmem:[#allocation43_spill] sm:$0xff] %v11040_v24 }
 0x63a   :  { %6261 = vmatpush1.bf16.msra.mxu1 %v11011_v23  ;;  %6188 = vmatpush1.bf16.msra.mxu0 %v11013_v34  ;;  %v11038_v34 = vld [vmem:[#allocation6 + $0x228] ss:$16 sps:$4 sm:$0xff]  }
 0x63b   :  { %v5115_v18 = vpop.f32.mrb[76].mxu1  ;;  %6273 = vmatprep.subr.bf16.mxu1 %v11017_v1  ;;  %6189 = vmatprep.subr.bf16.mxu0 %v11019_v16  ;;  %11560 = vst [vmem:[#allocation42_spill] sm:$0xff] %v11038_v34  ;;  %v11044_v16 = vld [vmem:[#allocation6 + $0x24c] ss:$16 sps:$4 sm:$0xff]   ;;  %v11209_v1 = vld [vmem:[#allocation6 + $0x3e8] ss:$16 sps:$4 sm:$0xff]  }
 0x63c   :  { %v8284_v40 = vpop.f32.mrb[77].mxu1  ;;  %11562 = vst [vmem:[#allocation44_spill] sm:$0xff] %v11044_v16 }
 0x63d   :  { %v5118_v26 = vpop.f32.mrb[78].mxu1  ;;  %6263 = vmatmul.mubr.bf16.vlgmr.msra.gmra.mrb[88].mxu1 %v10895_v21  ;;  %v11046_v40 = vld [vmem:[#allocation6 + $0x264] ss:$16 sps:$4 sm:$0xff]   ;;  %v11051_v21 = vld [vmem:[#allocation6 + $0x248] ss:$16 sps:$4 sm:$0xff]  }
 0x63e   :  { %v8577_v23 = vpack.i.bf16 %v5118_v26, %v5115_v18  ;;  %v8285_v3 = vpop.f32.mrb[79].mxu1  ;;  %6274 = vmatpush1.bf16.msra.mxu1 %v11025_v52  ;;  %6190 = vmatpush1.bf16.msra.mxu0 %v11027_v35  ;;  %11563 = vst [vmem:[#allocation45_spill] sm:$0xff] %v11046_v40  ;;  %11564 = vst [vmem:[#allocation46_spill] sm:$0xff] %v11051_v21  ;;  %v11057_v26 = vld [vmem:[#allocation6 + $0x26c] ss:$16 sps:$4 sm:$0xff]  }
 0x63f   :  { %6275 = vmatprep.subr.bf16.mxu1 %v11031_v50  ;;  %6191 = vmatprep.subr.bf16.mxu0 %v11033_v4  ;;  %v11053_v3 = vld [vmem:[#allocation6 + $0x260] ss:$16 sps:$4 sm:$0xff]   ;;  %11566 = vst [vmem:[#allocation48_spill] sm:$0xff] %v11057_v26  ;;  %v11059_v18 = vld [vmem:[#allocation6 + $0x284] ss:$16 sps:$4 sm:$0xff]  }
 0x640   :  { %8578 = vrot.lane.b32.xlu0 %v8577_v23, %s9597_s0  ;;  %11565 = vst [vmem:[#allocation47_spill] sm:$0xff] %v11053_v3  ;;  %11567 = vst [vmem:[#allocation49_spill] sm:$0xff] %v11059_v18  ;;  %v11063_v23 = vld [vmem:[#allocation6 + $0x268] ss:$16 sps:$4 sm:$0xff]   ;;  %v11205_v50 = vld [vmem:[#allocation6 + $0x3ec] ss:$16 sps:$4 sm:$0xff]  }
 0x641   :  { %11568 = vst [vmem:[#allocation50_spill] sm:$0xff] %v11063_v23 }
 0x642   :  { %6276 = vmatpush1.bf16.msra.mxu1 %v11038_v34  ;;  %6192 = vmatpush1.bf16.msra.mxu0 %v11040_v24  ;;  %v11065_v34 = vld [vmem:[#allocation6 + $0x280] ss:$16 sps:$4 sm:$0xff]   ;;  %v11069_v24 = vld [vmem:[#allocation6 + $0x28c] ss:$16 sps:$4 sm:$0xff]  }
 0x643   :  { %6277 = vmatprep.subr.bf16.mxu1 %v11044_v16  ;;  %6193 = vmatprep.subr.bf16.mxu0 %v11046_v40  ;;  %11569 = vst [vmem:[#allocation51_spill] sm:$0xff] %v11065_v34  ;;  %11570 = vst [vmem:[#allocation52_spill] sm:$0xff] %v11069_v24  ;;  %v11071_v16 = vld [vmem:[#allocation6 + $0x2a4] ss:$16 sps:$4 sm:$0xff]   ;;  %v11075_v40 = vld [vmem:[#allocation6 + $0x288] ss:$16 sps:$4 sm:$0xff]  }
 0x644   :  { %11571 = vst [vmem:[#allocation53_spill] sm:$0xff] %v11071_v16  ;;  %11572 = vst [vmem:[#allocation54_spill] sm:$0xff] %v11075_v40 }
 0x646   :  { %6278 = vmatpush1.bf16.msra.mxu1 %v11051_v21  ;;  %6194 = vmatpush1.bf16.msra.mxu0 %v11053_v3  ;;  %v11077_v21 = vld [vmem:[#allocation6 + $0x2a0] ss:$16 sps:$4 sm:$0xff]   ;;  %v11081_v3 = vld [vmem:[#allocation6 + $0x2ac] ss:$16 sps:$4 sm:$0xff]  }
 0x647   :  { %6279 = vmatprep.subr.bf16.mxu1 %v11057_v26  ;;  %6195 = vmatprep.subr.bf16.mxu0 %v11059_v18  ;;  %11573 = vst [vmem:[#allocation55_spill] sm:$0xff] %v11077_v21  ;;  %11574 = vst [vmem:[#allocation56_spill] sm:$0xff] %v11081_v3  ;;  %v11083_v26 = vld [vmem:[#allocation6 + $0x2c4] ss:$16 sps:$4 sm:$0xff]   ;;  %v11087_v18 = vld [vmem:[#allocation6 + $0x2a8] ss:$16 sps:$4 sm:$0xff]  }
 0x648   :  { %11575 = vst [vmem:[#allocation57_spill] sm:$0xff] %v11083_v26  ;;  %11576 = vst [vmem:[#allocation58_spill] sm:$0xff] %v11087_v18 }
 0x64a   :  { %6280 = vmatpush1.bf16.msra.mxu1 %v11063_v23  ;;  %6196 = vmatpush1.bf16.msra.mxu0 %v11065_v34  ;;  %v11089_v23 = vld [vmem:[#allocation6 + $0x2c0] ss:$16 sps:$4 sm:$0xff]   ;;  %v11093_v34 = vld [vmem:[#allocation6 + $0x2cc] ss:$16 sps:$4 sm:$0xff]  }
 0x64b   :  { %6281 = vmatprep.subr.bf16.mxu1 %v11069_v24  ;;  %6197 = vmatprep.subr.bf16.mxu0 %v11071_v16  ;;  %11577 = vst [vmem:[#allocation59_spill] sm:$0xff] %v11089_v23  ;;  %11578 = vst [vmem:[#allocation60_spill] sm:$0xff] %v11093_v34  ;;  %v11095_v24 = vld [vmem:[#allocation6 + $0x2e4] ss:$16 sps:$4 sm:$0xff]   ;;  %v11099_v16 = vld [vmem:[#allocation6 + $0x2c8] ss:$16 sps:$4 sm:$0xff]  }
 0x64c   :  { %11579 = vst [vmem:[#allocation61_spill] sm:$0xff] %v11095_v24  ;;  %11580 = vst [vmem:[#allocation62_spill] sm:$0xff] %v11099_v16 }
 0x64e   :  { %6282 = vmatpush1.bf16.msra.mxu1 %v11075_v40  ;;  %6198 = vmatpush1.bf16.msra.mxu0 %v11077_v21  ;;  %v11101_v40 = vld [vmem:[#allocation6 + $0x2e0] ss:$16 sps:$4 sm:$0xff]   ;;  %v11105_v21 = vld [vmem:[#allocation6 + $0x2ec] ss:$16 sps:$4 sm:$0xff]  }
 0x64f   :  { %6283 = vmatprep.subr.bf16.mxu1 %v11081_v3  ;;  %6199 = vmatprep.subr.bf16.mxu0 %v11083_v26  ;;  %11581 = vst [vmem:[#allocation63_spill] sm:$0xff] %v11101_v40  ;;  %11582 = vst [vmem:[#allocation64_spill] sm:$0xff] %v11105_v21  ;;  %v11107_v3 = vld [vmem:[#allocation6 + $0x304] ss:$16 sps:$4 sm:$0xff]   ;;  %v11111_v26 = vld [vmem:[#allocation6 + $0x2e8] ss:$16 sps:$4 sm:$0xff]  }
 0x650   :  { %11583 = vst [vmem:[#allocation65_spill] sm:$0xff] %v11107_v3  ;;  %11584 = vst [vmem:[#allocation66_spill] sm:$0xff] %v11111_v26 }
 0x652   :  { %6284 = vmatpush1.bf16.msra.mxu1 %v11087_v18  ;;  %6200 = vmatpush1.bf16.msra.mxu0 %v11089_v23  ;;  %v11113_v18 = vld [vmem:[#allocation6 + $0x300] ss:$16 sps:$4 sm:$0xff]   ;;  %v11117_v23 = vld [vmem:[#allocation6 + $0x30c] ss:$16 sps:$4 sm:$0xff]  }
 0x653   :  { %6285 = vmatprep.subr.bf16.mxu1 %v11093_v34  ;;  %6201 = vmatprep.subr.bf16.mxu0 %v11095_v24  ;;  %11585 = vst [vmem:[#allocation67_spill] sm:$0xff] %v11113_v18  ;;  %11586 = vst [vmem:[#allocation68_spill] sm:$0xff] %v11117_v23  ;;  %v11119_v34 = vld [vmem:[#allocation6 + $0x324] ss:$16 sps:$4 sm:$0xff]   ;;  %v11123_v24 = vld [vmem:[#allocation6 + $0x308] ss:$16 sps:$4 sm:$0xff]  }
 0x654   :  { %11587 = vst [vmem:[#allocation69_spill] sm:$0xff] %v11119_v34  ;;  %11588 = vst [vmem:[#allocation70_spill] sm:$0xff] %v11123_v24 }
 0x656   :  { %6286 = vmatpush1.bf16.msra.mxu1 %v11099_v16  ;;  %6202 = vmatpush1.bf16.msra.mxu0 %v11101_v40  ;;  %v11125_v16 = vld [vmem:[#allocation6 + $0x320] ss:$16 sps:$4 sm:$0xff]   ;;  %v11129_v40 = vld [vmem:[#allocation6 + $0x32c] ss:$16 sps:$4 sm:$0xff]  }
 0x657   :  { %6287 = vmatprep.subr.bf16.mxu1 %v11105_v21  ;;  %6203 = vmatprep.subr.bf16.mxu0 %v11107_v3  ;;  %11589 = vst [vmem:[#allocation71_spill] sm:$0xff] %v11125_v16  ;;  %11590 = vst [vmem:[#allocation72_spill] sm:$0xff] %v11129_v40  ;;  %v11131_v21 = vld [vmem:[#allocation6 + $0x344] ss:$16 sps:$4 sm:$0xff]   ;;  %v11135_v3 = vld [vmem:[#allocation6 + $0x328] ss:$16 sps:$4 sm:$0xff]  }
 0x658   :  { %11591 = vst [vmem:[#allocation73_spill] sm:$0xff] %v11131_v21  ;;  %11592 = vst [vmem:[#allocation74_spill] sm:$0xff] %v11135_v3 }
 0x65a   :  { %6288 = vmatpush1.bf16.msra.mxu1 %v11111_v26  ;;  %6204 = vmatpush1.bf16.msra.mxu0 %v11113_v18  ;;  %v11137_v26 = vld [vmem:[#allocation6 + $0x340] ss:$16 sps:$4 sm:$0xff]   ;;  %v11141_v18 = vld [vmem:[#allocation6 + $0x34c] ss:$16 sps:$4 sm:$0xff]  }
 0x65b   :  { %6289 = vmatprep.subr.bf16.mxu1 %v11117_v23  ;;  %6205 = vmatprep.subr.bf16.mxu0 %v11119_v34  ;;  %11593 = vst [vmem:[#allocation75_spill] sm:$0xff] %v11137_v26  ;;  %11594 = vst [vmem:[#allocation76_spill] sm:$0xff] %v11141_v18  ;;  %v11143_v23 = vld [vmem:[#allocation6 + $0x364] ss:$16 sps:$4 sm:$0xff]   ;;  %v11147_v34 = vld [vmem:[#allocation6 + $0x348] ss:$16 sps:$4 sm:$0xff]  }
 0x65c   :  { %11595 = vst [vmem:[#allocation77_spill] sm:$0xff] %v11143_v23  ;;  %11596 = vst [vmem:[#allocation78_spill] sm:$0xff] %v11147_v34 }
 0x65e   :  { %6290 = vmatpush1.bf16.msra.mxu1 %v11123_v24  ;;  %6206 = vmatpush1.bf16.msra.mxu0 %v11125_v16  ;;  %v11149_v24 = vld [vmem:[#allocation6 + $0x360] ss:$16 sps:$4 sm:$0xff]   ;;  %v11153_v16 = vld [vmem:[#allocation6 + $0x36c] ss:$16 sps:$4 sm:$0xff]  }
 0x65f   :  { %6291 = vmatprep.subr.bf16.mxu1 %v11129_v40  ;;  %6207 = vmatprep.subr.bf16.mxu0 %v11131_v21  ;;  %11597 = vst [vmem:[#allocation79_spill] sm:$0xff] %v11149_v24  ;;  %11598 = vst [vmem:[#allocation80_spill] sm:$0xff] %v11153_v16  ;;  %v11155_v40 = vld [vmem:[#allocation6 + $0x384] ss:$16 sps:$4 sm:$0xff]   ;;  %v11159_v21 = vld [vmem:[#allocation6 + $0x368] ss:$16 sps:$4 sm:$0xff]  }
 0x660   :  { %11599 = vst [vmem:[#allocation81_spill] sm:$0xff] %v11155_v40  ;;  %11600 = vst [vmem:[#allocation82_spill] sm:$0xff] %v11159_v21 }
 0x662   :  { %6292 = vmatpush1.bf16.msra.mxu1 %v11135_v3  ;;  %6208 = vmatpush1.bf16.msra.mxu0 %v11137_v26  ;;  %v11161_v3 = vld [vmem:[#allocation6 + $0x380] ss:$16 sps:$4 sm:$0xff]   ;;  %v11165_v26 = vld [vmem:[#allocation6 + $0x38c] ss:$16 sps:$4 sm:$0xff]  }
 0x663   :  { %6293 = vmatprep.subr.bf16.mxu1 %v11141_v18  ;;  %6209 = vmatprep.subr.bf16.mxu0 %v11143_v23  ;;  %11601 = vst [vmem:[#allocation83_spill] sm:$0xff] %v11161_v3  ;;  %11602 = vst [vmem:[#allocation84_spill] sm:$0xff] %v11165_v26  ;;  %v11167_v18 = vld [vmem:[#allocation6 + $0x3a4] ss:$16 sps:$4 sm:$0xff]   ;;  %v11171_v23 = vld [vmem:[#allocation6 + $0x388] ss:$16 sps:$4 sm:$0xff]  }
 0x664   :  { %11603 = vst [vmem:[#allocation85_spill] sm:$0xff] %v11167_v18  ;;  %11604 = vst [vmem:[#allocation86_spill] sm:$0xff] %v11171_v23 }
 0x666   :  { %6294 = vmatpush1.bf16.msra.mxu1 %v11147_v34  ;;  %6210 = vmatpush1.bf16.msra.mxu0 %v11149_v24  ;;  %v11173_v34 = vld [vmem:[#allocation6 + $0x3a0] ss:$16 sps:$4 sm:$0xff]   ;;  %v11177_v24 = vld [vmem:[#allocation6 + $0x3ac] ss:$16 sps:$4 sm:$0xff]  }
 0x667   :  { %6295 = vmatprep.subr.bf16.mxu1 %v11153_v16  ;;  %6211 = vmatprep.subr.bf16.mxu0 %v11155_v40  ;;  %11605 = vst [vmem:[#allocation87_spill] sm:$0xff] %v11173_v34  ;;  %11606 = vst [vmem:[#allocation88_spill] sm:$0xff] %v11177_v24  ;;  %v11179_v16 = vld [vmem:[#allocation6 + $0x3c4] ss:$16 sps:$4 sm:$0xff]   ;;  %v11183_v40 = vld [vmem:[#allocation6 + $0x3a8] ss:$16 sps:$4 sm:$0xff]  }
 0x668   :  { %11607 = vst [vmem:[#allocation89_spill] sm:$0xff] %v11179_v16  ;;  %11608 = vst [vmem:[#allocation90_spill] sm:$0xff] %v11183_v40 }
 0x66a   :  { %6296 = vmatpush1.bf16.msra.mxu1 %v11159_v21  ;;  %6212 = vmatpush1.bf16.msra.mxu0 %v11161_v3  ;;  %v11185_v21 = vld [vmem:[#allocation6 + $0x3c0] ss:$16 sps:$4 sm:$0xff]   ;;  %v11189_v3 = vld [vmem:[#allocation6 + $0x3cc] ss:$16 sps:$4 sm:$0xff]  }
 0x66b   :  { %6297 = vmatprep.subr.bf16.mxu1 %v11165_v26  ;;  %6213 = vmatprep.subr.bf16.mxu0 %v11167_v18  ;;  %11609 = vst [vmem:[#allocation91_spill] sm:$0xff] %v11185_v21  ;;  %v11191_v26 = vld [vmem:[#allocation6 + $0x3e4] ss:$16 sps:$4 sm:$0xff]  }
 0x66e   :  { %6298 = vmatpush1.bf16.msra.mxu1 %v11171_v23  ;;  %6214 = vmatpush1.bf16.msra.mxu0 %v11173_v34  ;;  %v11195_v34 = vld [vmem:[#allocation6 + $0x3c8] ss:$16 sps:$4 sm:$0xff]   ;;  %v11197_v23 = vld [vmem:[#allocation6 + $0x3e0] ss:$16 sps:$4 sm:$0xff]  }
 0x66f   :  { %6299 = vmatprep.subr.bf16.mxu1 %v11177_v24  ;;  %6215 = vmatprep.subr.bf16.mxu0 %v11179_v16 }
 0x671   :  { %v8569_v18 = vpop.permute.xlu1 %8568 }
 0x672   :  { %v8571_v4 = vunpack.i.h.bf16 %v8569_v18  ;;  %v8570_v35 = vunpack.i.l.bf16 %v8569_v18  ;;  %6300 = vmatpush1.bf16.msra.mxu1 %v11183_v40  ;;  %6216 = vmatpush1.bf16.msra.mxu0 %v11185_v21 }
 0x673   :  { %6301 = vmatprep.subr.bf16.mxu1 %v11189_v3  ;;  %6217 = vmatprep.subr.bf16.mxu0 %v11191_v26 }
 0x674   :  { %v5348_v16 = vsel %vm3401_vm3, %v10971_v15, %v8570_v35  ;;  %v5349_v24 = vsel %vm3401_vm3, %v10983_v27, %v8571_v4  ;;  %v11630_v4 = vld [vmem:[#allocation35_spill] sm:$0xff]  ;;  %v11632_v35 = vld [vmem:[#allocation38_spill] sm:$0xff] }
 0x675   :  { %v8574_v18 = vpop.permute.xlu1 %8573  ;;  %v5353_v40 = vpack.c.bf16 %v5349_v24, %v5348_v16  ;;  %v11629_v24 = vld [vmem:[#allocation36_spill] sm:$0xff] }
 0x676   :  { %v8576_v52 = vunpack.i.h.bf16 %v8574_v18  ;;  %v8575_v21 = vunpack.i.l.bf16 %v8574_v18  ;;  %6302 = vmatpush1.bf16.msra.mxu1 %v11195_v34  ;;  %6218 = vmatpush1.bf16.msra.mxu0 %v11197_v23  ;;  %v11635_v18 = vld [vmem:[#allocation41_spill] sm:$0xff] }
 0x677   :  { %6219 = vmatprep.mubr.bf16.mxu0 %v5353_v40  ;;  %6305 = vmatprep.mubr.bf16.mxu1 %v5353_v40  ;;  %v11633_v40 = vld [vmem:[#allocation40_spill] sm:$0xff] }
 0x678   :  { %v5346_v15 = vsel %vm3401_vm3, %v10881_v42, %v8575_v21  ;;  %v5347_v27 = vsel %vm3401_vm3, %v10893_v59, %v8576_v52  ;;  %6303 = vmatprep.subr.bf16.mxu1 %v11205_v50  ;;  %7158 = vmatprep.subr.bf16.mxu0 %v10758_v0  ;;  %v11631_v52 = vld [vmem:[#allocation37_spill] sm:$0xff]  ;;  %v11634_v21 = vld [vmem:[#allocation39_spill] sm:$0xff] }
 0x679   :  { %v5352_v16 = vpack.c.bf16 %v5347_v27, %v5346_v15  ;;  %v11636_v15 = vld [vmem:[#allocation42_spill] sm:$0xff]  ;;  %v11637_v27 = vld [vmem:[#allocation44_spill] sm:$0xff] }
 0x67a   :  { %6304 = vmatpush1.bf16.msra.mxu1 %v11209_v1 }
 0x67b   :  { %6220 = vmatmul.mubr.bf16.vlgmr.msra.gmra.mrb[88].mxu0 %v5352_v16  ;;  %7244 = vmatprep.subr.bf16.mxu1 %v10788_v60 }
 0x67c   :  { %7159 = vmatpush1.bf16.msra.mxu0 %v10792_v49 }
 0x67d   :  { %6306 = vmatmul.mubr.bf16.vlgmr.msra.gmra.mrb[88].mxu1 %v5352_v16  ;;  %7160 = vmatprep.subr.bf16.mxu0 %v10798_v30  ;;  %v11638_v16 = vld [vmem:[#allocation43_spill] sm:$0xff] }
 0x67e   :  { %7245 = vmatpush1.bf16.msra.mxu1 %v10806_v56 }
 0x67f   :  { %7246 = vmatprep.subr.bf16.mxu1 %v10815_v5 }
 0x680   :  { %7161 = vmatpush1.bf16.msra.mxu0 %v10804_v37 }
 0x681   :  { %7162 = vmatprep.subr.bf16.mxu0 %v10813_v22 }
 0x682   :  { %7247 = vmatpush1.bf16.msra.mxu1 %v10822_v29  ;;  %v11611_v29 = vld [vmem:[#allocation17_spill] sm:$0xff] }
 0x683   :  { %7248 = vmatprep.subr.bf16.mxu1 %v10829_v41  ;;  %v11612_v41 = vld [vmem:[#allocation19_spill] sm:$0xff] }
 0x684   :  { %7163 = vmatpush1.bf16.msra.mxu0 %v10820_v47  ;;  %v11610_v47 = vld [vmem:[#allocation16_spill] sm:$0xff] }
 0x685   :  { %7164 = vmatprep.subr.bf16.mxu0 %v10826_v10 }
 0x686   :  { %7249 = vmatpush1.bf16.msra.mxu1 %v10835_v8 }
 0x687   :  { %7250 = vmatprep.subr.bf16.mxu1 %v10844_v6  ;;  %v11614_v6 = vld [vmem:[#allocation18_spill] sm:$0xff] }
 0x688   :  { %7165 = vmatpush1.bf16.msra.mxu0 %v10833_v14 }
 0x689   :  { %7166 = vmatprep.subr.bf16.mxu0 %v10842_v51  ;;  %v11613_v51 = vld [vmem:[#allocation21_spill] sm:$0xff] }
 0x68a   :  { %7251 = vmatpush1.bf16.msra.mxu1 %v10851_v32 }
 0x68b   :  { %7252 = vmatprep.subr.bf16.mxu1 %v10857_v9 }
 0x68c   :  { %7167 = vmatpush1.bf16.msra.mxu0 %v10849_v7 }
 0x68d   :  { %7168 = vmatprep.subr.bf16.mxu0 %v10855_v25  ;;  %v11615_v25 = vld [vmem:[#allocation20_spill] sm:$0xff] }
 0x68e   :  { %7253 = vmatpush1.bf16.msra.mxu1 %v10863_v53  ;;  %v11617_v53 = vld [vmem:[#allocation25_spill] sm:$0xff] }
 0x68f   :  { %7254 = vmatprep.subr.bf16.mxu1 %v10869_v63 }
 0x690   :  { %7169 = vmatpush1.bf16.msra.mxu0 %v10861_v57  ;;  %v11616_v57 = vld [vmem:[#allocation23_spill] sm:$0xff] }
 0x691   :  { %7170 = vmatprep.subr.bf16.mxu0 %v10867_v43  ;;  %v11618_v43 = vld [vmem:[#allocation22_spill] sm:$0xff] }
 0x692   :  { %7255 = vmatpush1.bf16.msra.mxu1 %v10879_v44  ;;  %v11619_v44 = vld [vmem:[#allocation24_spill] sm:$0xff] }
 0x693   :  { %7256 = vmatprep.subr.bf16.mxu1 %v10887_v45 }
 0x694   :  { %7171 = vmatpush1.bf16.msra.mxu0 %v10877_v54 }
 0x695   :  { %7172 = vmatprep.subr.bf16.mxu0 %v10885_v48  ;;  %v11620_v48 = vld [vmem:[#allocation27_spill] sm:$0xff] }
 0x696   :  { %7257 = vmatpush1.bf16.msra.mxu1 %v10901_v20 }
 0x697   :  { %7258 = vmatprep.subr.bf16.mxu1 %v10907_v61  ;;  %v11622_v61 = vld [vmem:[#allocation26_spill] sm:$0xff] }
 0x698   :  { %7173 = vmatpush1.bf16.msra.mxu0 %v10899_v31 }
 0x699   :  { %7174 = vmatprep.subr.bf16.mxu0 %v10905_v39  ;;  %v11621_v39 = vld [vmem:[#allocation29_spill] sm:$0xff] }
 0x69a   :  { %7259 = vmatpush1.bf16.msra.mxu1 %v10913_v38  ;;  %v11623_v38 = vld [vmem:[#allocation28_spill] sm:$0xff] }
 0x69b   :  { %7260 = vmatprep.subr.bf16.mxu1 %v10919_v17 }
 0x69c   :  { %7175 = vmatpush1.bf16.msra.mxu0 %v10911_v36  ;;  %v4974_v0 = vpop.f32.mrb[72].mxu0 }
 0x69d   :  { %v8266_v60 = vpop.f32.mrb[73].mxu0  ;;  %7176 = vmatprep.subr.bf16.mxu0 %v10917_v12 }
 0x69e   :  { %7261 = vmatpush1.bf16.msra.mxu1 %v10925_v28  ;;  %v4977_v49 = vpop.f32.mrb[74].mxu0  ;;  %v11640_v60 = vld [vmem:[#allocation46_spill] sm:$0xff] }
 0x69f   :  { %v8267_v30 = vpop.f32.mrb[75].mxu0  ;;  %7262 = vmatprep.subr.bf16.mxu1 %v10931_v13 }
 0x6a0   :  { %7177 = vmatpush1.bf16.msra.mxu0 %v10923_v33  ;;  %v11624_v33 = vld [vmem:[#allocation31_spill] sm:$0xff] }
 0x6a1   :  { %7178 = vmatprep.subr.bf16.mxu0 %v10929_v11  ;;  %v11642_v30 = vld [vmem:[#allocation47_spill] sm:$0xff] }
 0x6a2   :  { %7263 = vmatpush1.bf16.msra.mxu1 %v10937_v19 }
 0x6a3   :  { %7264 = vmatprep.subr.bf16.mxu1 %v10943_v58 }
 0x6a4   :  { %7179 = vmatpush1.bf16.msra.mxu0 %v10935_v2  ;;  %v5068_v37 = vpop.f32.mrb[76].mxu0  ;;  %v11625_v2 = vld [vmem:[#allocation32_spill] sm:$0xff] }
 0x6a5   :  { %v8278_v56 = vpop.f32.mrb[77].mxu0  ;;  %7180 = vmatprep.subr.bf16.mxu0 %v10941_v62  ;;  %v11626_v62 = vld [vmem:[#allocation30_spill] sm:$0xff] }
 0x6a6   :  { %7265 = vmatpush1.bf16.msra.mxu1 %v10949_v55  ;;  %v5071_v22 = vpop.f32.mrb[78].mxu0  ;;  %v11627_v55 = vld [vmem:[#allocation33_spill] sm:$0xff]  ;;  %v11644_v56 = vld [vmem:[#allocation50_spill] sm:$0xff] }
 0x6a7   :  { %v8279_v5 = vpop.f32.mrb[79].mxu0  ;;  %7266 = vmatprep.subr.bf16.mxu1 %v10955_v46  ;;  %v11628_v46 = vld [vmem:[#allocation34_spill] sm:$0xff] }
 0x6a8   :  { %7181 = vmatpush1.bf16.msra.mxu0 %v11610_v47  ;;  %v11646_v47 = vld [vmem:[#allocation51_spill] sm:$0xff] }
 0x6a9   :  { %7182 = vmatprep.subr.bf16.mxu0 %v11611_v29 }
 0x6aa   :  { %v8584_v10 = vpop.permute.xlu1 %8583  ;;  %7267 = vmatpush1.bf16.msra.mxu1 %v11612_v41 }
 0x6ab   :  { %v8586_v14 = vunpack.i.h.bf16 %v8584_v10  ;;  %v8585_v8 = vunpack.i.l.bf16 %v8584_v10  ;;  %7268 = vmatprep.subr.bf16.mxu1 %v11613_v51  ;;  %v11647_v10 = vld [vmem:[#allocation53_spill] sm:$0xff]  ;;  %v11649_v51 = vld [vmem:[#allocation56_spill] sm:$0xff] }
 0x6ac   :  { %7183 = vmatpush1.bf16.msra.mxu0 %v11614_v6 }
 0x6ad   :  { %v6356_v7 = vsel %vm3401_vm3, %v4974_v0, %v8585_v8  ;;  %v6357_v32 = vsel %vm3401_vm3, %v4977_v49, %v8586_v14  ;;  %7184 = vmatprep.subr.bf16.mxu0 %v11615_v25  ;;  %v11639_v0 = vld [vmem:[#allocation45_spill] sm:$0xff]  ;;  %v11641_v49 = vld [vmem:[#allocation48_spill] sm:$0xff]  ;;  %v11648_v14 = vld [vmem:[#allocation54_spill] sm:$0xff] }
 0x6ae   :  { %v6364_v9 = vpack.c.bf16 %v6357_v32, %v6356_v7  ;;  %7269 = vmatpush1.bf16.msra.mxu1 %v11616_v57  ;;  %v11650_v7 = vld [vmem:[#allocation55_spill] sm:$0xff]  ;;  %v11651_v25 = vld [vmem:[#allocation57_spill] sm:$0xff]  ;;  %v11652_v57 = vld [vmem:[#allocation58_spill] sm:$0xff] }
 0x6af   :  { %7270 = vmatprep.subr.bf16.mxu1 %v11617_v53 }
 0x6b0   :  { %7185 = vmatpush1.bf16.msra.mxu0 %v11618_v43  ;;  %v11274_v63 = vpop.f32.mrb[80].mxu0 }
 0x6b1   :  { %v8290_v54 = vpop.f32.mrb[81].mxu0  ;;  %7186 = vmatprep.subr.bf16.mxu0 %v11619_v44  ;;  %v11654_v44 = vld [vmem:[#allocation59_spill] sm:$0xff] }
 0x6b2   :  { %v8579_v42 = vpop.permute.xlu0 %8578  ;;  %7271 = vmatpush1.bf16.msra.mxu1 %v11620_v48  ;;  %v11278_v45 = vpop.f32.mrb[82].mxu0  ;;  %v11653_v54 = vld [vmem:[#allocation60_spill] sm:$0xff]  ;;  %v11656_v48 = vld [vmem:[#allocation62_spill] sm:$0xff] }
 0x6b3   :  { %v8581_v59 = vunpack.i.h.bf16 %v8579_v42  ;;  %v8580_v31 = vunpack.i.l.bf16 %v8579_v42  ;;  %v8291_v20 = vpop.f32.mrb[83].mxu0  ;;  %7272 = vmatprep.subr.bf16.mxu1 %v11621_v39  ;;  %v11655_v42 = vld [vmem:[#allocation61_spill] sm:$0xff]  ;;  %v11660_v39 = vld [vmem:[#allocation66_spill] sm:$0xff] }
 0x6b4   :  { %7187 = vmatpush1.bf16.msra.mxu0 %v11622_v61  ;;  %v11659_v20 = vld [vmem:[#allocation65_spill] sm:$0xff]  ;;  %v11661_v61 = vld [vmem:[#allocation68_spill] sm:$0xff] }
 0x6b5   :  { %v5209_v36 = vpop.f32.mrb[80].mxu1  ;;  %7188 = vmatprep.subr.bf16.mxu0 %v11623_v38  ;;  %v6358_v12 = vsel %vm3401_vm3, %v5068_v37, %v8580_v31  ;;  %v6359_v17 = vsel %vm3401_vm3, %v5071_v22, %v8581_v59  ;;  %v11643_v37 = vld [vmem:[#allocation49_spill] sm:$0xff]  ;;  %v11645_v22 = vld [vmem:[#allocation52_spill] sm:$0xff]  ;;  %v11658_v31 = vld [vmem:[#allocation63_spill] sm:$0xff] }
 0x6b6   :  { %7273 = vmatpush1.bf16.msra.mxu1 %v11624_v33  ;;  %v8296_v28 = vpop.f32.mrb[81].mxu1  ;;  %v6365_v11 = vpack.c.bf16 %v6359_v17, %v6358_v12  ;;  %v11657_v59 = vld [vmem:[#allocation64_spill] sm:$0xff]  ;;  %v11663_v38 = vld [vmem:[#allocation69_spill] sm:$0xff]  ;;  %v11664_v12 = vld [vmem:[#allocation70_spill] sm:$0xff] }
 0x6b7   :  { %v5212_v13 = vpop.f32.mrb[82].mxu1  ;;  %7274 = vmatprep.subr.bf16.mxu1 %v11625_v2  ;;  %v11665_v17 = vld [vmem:[#allocation72_spill] sm:$0xff]  ;;  %v11666_v33 = vld [vmem:[#allocation71_spill] sm:$0xff]  ;;  %v11667_v28 = vld [vmem:[#allocation73_spill] sm:$0xff] }
 0x6b8   :  { %v8592_v19 = vpack.i.bf16 %v5212_v13, %v5209_v36  ;;  %7189 = vmatpush1.bf16.msra.mxu0 %v11626_v62  ;;  %7190 = vmatprep.mubr.bf16.mxu0 %v6365_v11  ;;  %v8297_v58 = vpop.f32.mrb[83].mxu1  ;;  %v11662_v36 = vld [vmem:[#allocation67_spill] sm:$0xff]  ;;  %v11669_v13 = vld [vmem:[#allocation76_spill] sm:$0xff]  ;;  %v11672_v62 = vld [vmem:[#allocation78_spill] sm:$0xff] }
 0x6b9   :  { %7276 = vmatprep.mubr.bf16.mxu1 %v6365_v11  ;;  %7201 = vmatprep.subr.bf16.mxu0 %v11627_v55  ;;  %v11668_v11 = vld [vmem:[#allocation74_spill] sm:$0xff]  ;;  %v11670_v2 = vld [vmem:[#allocation75_spill] sm:$0xff]  ;;  %v11673_v58 = vld [vmem:[#allocation80_spill] sm:$0xff] }
 0x6ba   :  { %7275 = vmatpush1.bf16.msra.mxu1 %v11628_v46  ;;  %8593 = vrot.lane.b32.xlu1 %v8592_v19, %s9597_s0  ;;  %v11671_v19 = vld [vmem:[#allocation77_spill] sm:$0xff]  ;;  %v11674_v55 = vld [vmem:[#allocation79_spill] sm:$0xff] }
 0x6bb   :  { %7191 = vmatmul.mubr.bf16.vlgmr.msra.gmra.mrb[92].mxu0 %v6364_v9  ;;  %7287 = vmatprep.subr.bf16.mxu1 %v11629_v24  ;;  %v11675_v46 = vld [vmem:[#allocation81_spill] sm:$0xff]  ;;  %v11676_v24 = vld [vmem:[#allocation82_spill] sm:$0xff] }
 0x6bc   :  { %7202 = vmatpush1.bf16.msra.mxu0 %v11630_v4  ;;  %v11677_v4 = vld [vmem:[#allocation84_spill] sm:$0xff] }
 0x6bd   :  { %7277 = vmatmul.mubr.bf16.vlgmr.msra.gmra.mrb[92].mxu1 %v6364_v9  ;;  %7203 = vmatprep.subr.bf16.mxu0 %v11631_v52  ;;  %v11678_v52 = vld [vmem:[#allocation83_spill] sm:$0xff] }
 0x6be   :  { %7288 = vmatpush1.bf16.msra.mxu1 %v11632_v35  ;;  %v11679_v35 = vld [vmem:[#allocation85_spill] sm:$0xff] }
 0x6bf   :  { %7289 = vmatprep.subr.bf16.mxu1 %v11633_v40  ;;  %v11680_v40 = vld [vmem:[#allocation86_spill] sm:$0xff] }
 0x6c0   :  { %7204 = vmatpush1.bf16.msra.mxu0 %v11634_v21  ;;  %v11681_v21 = vld [vmem:[#allocation88_spill] sm:$0xff] }
 0x6c1   :  { %7205 = vmatprep.subr.bf16.mxu0 %v11635_v18  ;;  %v11682_v18 = vld [vmem:[#allocation87_spill] sm:$0xff] }
 0x6c2   :  { %7290 = vmatpush1.bf16.msra.mxu1 %v11636_v15  ;;  %v11683_v15 = vld [vmem:[#allocation89_spill] sm:$0xff] }
 0x6c3   :  { %7291 = vmatprep.subr.bf16.mxu1 %v11637_v27  ;;  %v11684_v27 = vld [vmem:[#allocation90_spill] sm:$0xff] }
 0x6c4   :  { %7206 = vmatpush1.bf16.msra.mxu0 %v11638_v16  ;;  %v11685_v16 = vld [vmem:[#allocation91_spill] sm:$0xff] }
 0x6c5   :  { %7207 = vmatprep.subr.bf16.mxu0 %v11639_v0 }
 0x6c6   :  { %7292 = vmatpush1.bf16.msra.mxu1 %v11640_v60 }
 0x6c7   :  { %7293 = vmatprep.subr.bf16.mxu1 %v11641_v49 }
 0x6c8   :  { %7208 = vmatpush1.bf16.msra.mxu0 %v11642_v30 }
 0x6c9   :  { %7209 = vmatprep.subr.bf16.mxu0 %v11643_v37 }
 0x6ca   :  { %7294 = vmatpush1.bf16.msra.mxu1 %v11644_v56 }
 0x6cb   :  { %7295 = vmatprep.subr.bf16.mxu1 %v11645_v22 }
 0x6cc   :  { %v11308_v5 = vpop.f32.mrb[84].mxu0  ;;  %7210 = vmatpush1.bf16.msra.mxu0 %v11646_v47  ;;  %v11686_v47 = vld [vmem:[#allocation12_spill] sm:$0xff] }
 0x6cd   :  { %v8302_v29 = vpop.f32.mrb[85].mxu0  ;;  %7211 = vmatprep.subr.bf16.mxu0 %v11647_v10  ;;  %v11687_v10 = vld [vmem:[#allocation13_spill] sm:$0xff] }
 0x6ce   :  { %v11312_v41 = vpop.f32.mrb[86].mxu0  ;;  %7296 = vmatpush1.bf16.msra.mxu1 %v11648_v14 }
 0x6cf   :  { %v8303_v8 = vpop.f32.mrb[87].mxu0  ;;  %7297 = vmatprep.subr.bf16.mxu1 %v11649_v51  ;;  %v11689_v51 = vld [vmem:[#allocation15_spill] sm:$0xff] }
 0x6d0   :  { %v5303_v6 = vpop.f32.mrb[84].mxu1  ;;  %7212 = vmatpush1.bf16.msra.mxu0 %v11650_v7 }
 0x6d1   :  { %v8308_v32 = vpop.f32.mrb[85].mxu1  ;;  %7213 = vmatprep.subr.bf16.mxu0 %v11651_v25 }
 0x6d2   :  { %v5306_v9 = vpop.f32.mrb[86].mxu1  ;;  %7298 = vmatpush1.bf16.msra.mxu1 %v11652_v57 }
 0x6d3   :  { %v8587_v53 = vpack.i.bf16 %v5306_v9, %v5303_v6  ;;  %v8309_v43 = vpop.f32.mrb[87].mxu1  ;;  %7299 = vmatprep.subr.bf16.mxu1 %v11653_v54 }
 0x6d4   :  { %7214 = vmatpush1.bf16.msra.mxu0 %v11654_v44 }
 0x6d5   :  { %8588 = vrot.lane.b32.xlu0 %v8587_v53, %s9597_s0  ;;  %7215 = vmatprep.subr.bf16.mxu0 %v11655_v42 }
 0x6d6   :  { %7300 = vmatpush1.bf16.msra.mxu1 %v11656_v48 }
 0x6d7   :  { %7301 = vmatprep.subr.bf16.mxu1 %v11657_v59 }
 0x6d8   :  { %7216 = vmatpush1.bf16.msra.mxu0 %v11658_v31 }
 0x6d9   :  { %7217 = vmatprep.subr.bf16.mxu0 %v11659_v20  ;;  %v6496_v20 = vld [vmem:[#allocation7] sm:$0xf] }
 0x6da   :  { %7302 = vmatpush1.bf16.msra.mxu1 %v11660_v39  ;;  %v6501_v39 = vrot.slane %v6496_v20, %v11686_v47 }
 0x6db   :  { %7303 = vmatprep.subr.bf16.mxu1 %v11661_v61 }
 0x6dc   :  { %7218 = vmatpush1.bf16.msra.mxu0 %v11662_v36  ;;  %v6505_v36 = vrot.slane %v6496_v20, %v11687_v10 }
 0x6dd   :  { %7219 = vmatprep.subr.bf16.mxu0 %v11663_v38  ;;  %v6513_v38 = vrot.slane %v6496_v20, %v11689_v51 }
 0x6de   :  { %7304 = vmatpush1.bf16.msra.mxu1 %v11664_v12 }
 0x6df   :  { %7305 = vmatprep.subr.bf16.mxu1 %v11665_v17 }
 0x6e0   :  { %7220 = vmatpush1.bf16.msra.mxu0 %v11666_v33 }
 0x6e1   :  { %7221 = vmatprep.subr.bf16.mxu0 %v11667_v28 }
 0x6e2   :  { %7306 = vmatpush1.bf16.msra.mxu1 %v11668_v11 }
 0x6e3   :  { %7307 = vmatprep.subr.bf16.mxu1 %v11669_v13 }
 0x6e4   :  { %7222 = vmatpush1.bf16.msra.mxu0 %v11670_v2 }
 0x6e5   :  { %7223 = vmatprep.subr.bf16.mxu0 %v11671_v19 }
 0x6e6   :  { %7308 = vmatpush1.bf16.msra.mxu1 %v11672_v62 }
 0x6e7   :  { %7309 = vmatprep.subr.bf16.mxu1 %v11673_v58 }
 0x6e8   :  { %7224 = vmatpush1.bf16.msra.mxu0 %v11674_v55 }
 0x6e9   :  { %7225 = vmatprep.subr.bf16.mxu0 %v11675_v46 }
 0x6ea   :  { %7310 = vmatpush1.bf16.msra.mxu1 %v11676_v24 }
 0x6eb   :  { %7311 = vmatprep.subr.bf16.mxu1 %v11677_v4 }
 0x6ec   :  { %7226 = vmatpush1.bf16.msra.mxu0 %v11678_v52 }
 0x6ed   :  { %7227 = vmatprep.subr.bf16.mxu0 %v11679_v35 }
 0x6ee   :  { %7312 = vmatpush1.bf16.msra.mxu1 %v11680_v40 }
 0x6ef   :  { %7313 = vmatprep.subr.bf16.mxu1 %v11681_v21 }
 0x6f0   :  { %7228 = vmatpush1.bf16.msra.mxu0 %v11682_v18 }
 0x6f1   :  { %7229 = vmatprep.subr.bf16.mxu0 %v11683_v15 }
 0x6f2   :  { %7314 = vmatpush1.bf16.msra.mxu1 %v11684_v27 }
 0x6f3   :  { %7315 = vmatprep.subr.bf16.mxu1 %v11189_v3 }
 0x6f4   :  { %7230 = vmatpush1.bf16.msra.mxu0 %v11685_v16 }
 0x6f5   :  { %7231 = vmatprep.subr.bf16.mxu0 %v11191_v26 }
 0x6f6   :  { %7316 = vmatpush1.bf16.msra.mxu1 %v11195_v34  ;;  %v5482_v34 = vld [vmem:[#allocation7] sm:$0xf] }
 0x6f7   :  { %7317 = vmatprep.subr.bf16.mxu1 %v11205_v50  ;;  %v5487_v29 = vrot.slane %v5482_v34, %v11686_v47  ;;  %v5491_v14 = vrot.slane %v5482_v34, %v11687_v10  ;;  %v5499_v6 = vrot.slane %v5482_v34, %v11689_v51 }
 0x6f8   :  { %7232 = vmatpush1.bf16.msra.mxu0 %v11197_v23 }
 0x6fa   :  { %7318 = vmatpush1.bf16.msra.mxu1 %v11209_v1 }
 0x72c   :  { %v8594_v0 = vpop.permute.xlu1 %8593 }
 0x72d   :  { %v8596_v60 = vunpack.i.h.bf16 %v8594_v0  ;;  %v8595_v49 = vunpack.i.l.bf16 %v8594_v0 }
 0x72f   :  { %v6360_v30 = vsel %vm3401_vm3, %v11274_v63, %v8595_v49  ;;  %v6361_v3 = vsel %vm3401_vm3, %v11278_v45, %v8596_v60  ;;  %v11688_v63 = vld [vmem:[#allocation14_spill] sm:$0xff] }
 0x730   :  { %v6366_v37 = vpack.c.bf16 %v6361_v3, %v6360_v30  ;;  %v5495_v45 = vrot.slane %v5482_v34, %v11688_v63  ;;  %v6509_v61 = vrot.slane %v6496_v20, %v11688_v63 }
 0x747   :  { %v8589_v56 = vpop.permute.xlu0 %8588 }
 0x748   :  { %v8591_v26 = vunpack.i.h.bf16 %v8589_v56  ;;  %v8590_v22 = vunpack.i.l.bf16 %v8589_v56 }
 0x74a   :  { %v6362_v50 = vsel %vm3401_vm3, %v11308_v5, %v8590_v22  ;;  %v6363_v1 = vsel %vm3401_vm3, %v11312_v41, %v8591_v26 }
 0x74b   :  { %v6367_v23 = vpack.c.bf16 %v6363_v1, %v6362_v50 }
 0x74d   :  { %7233 = vmatprep.mubr.bf16.mxu0 %v6367_v23  ;;  %7319 = vmatprep.mubr.bf16.mxu1 %v6367_v23 }
 0x74e   :  { %v6221_v8 = vpop.f32.mrb[88].mxu0  ;;  %7234 = vmatmul.mubr.bf16.vlgmr.msra.gmra.mrb[92].mxu0 %v6366_v37  ;;  %7320 = vmatmul.mubr.bf16.vlgmr.msra.gmra.mrb[92].mxu1 %v6366_v37 }
 0x74f   :  { %v8346_v7 = vadd.f32 %v6221_v8, %v5487_v29  ;;  %v6223_v32 = vpop.f32.mrb[89].mxu0 }
 0x750   :  { %v8347_v5 = vadd.f32 %v6223_v32, %v5491_v14  ;;  %v6307_v25 = vpop.f32.mrb[88].mxu1  ;;  %v6225_v9 = vpop.f32.mrb[90].mxu0 }
 0x751   :  { %6316 = vst [vmem:[%s11428_s5] sm:$0xff] %v8346_v7  ;;  %v8350_v41 = vadd.f32 %v6307_v25, %v5495_v45  ;;  %v8348_v57 = vadd.f32 %v6225_v9, %v5487_v29  ;;  %v6309_v53 = vpop.f32.mrb[89].mxu1  ;;  %v6227_v43 = vpop.f32.mrb[91].mxu0 }
 0x752   :  { %6317 = vst [vmem:[%s11428_s5 + $0x8] sm:$0xff] %v8347_v5  ;;  %v8351_v54 = vadd.f32 %v6309_v53, %v5499_v6  ;;  %v8349_v44 = vadd.f32 %v6227_v43, %v5491_v14  ;;  %v6311_v42 = vpop.f32.mrb[90].mxu1 }
 0x753   :  { %6318 = vst [vmem:[%s11428_s5 + $0x10] sm:$0xff] %v8350_v41  ;;  %6320 = vst [vmem:[%s11428_s5 + $0x20] sm:$0x3] %v8348_v57  ;;  %v8352_v48 = vadd.f32 %v6311_v42, %v5495_v45  ;;  %v6313_v59 = vpop.f32.mrb[91].mxu1 }
 0x754   :  { %6319 = vst [vmem:[%s11428_s5 + $0x18] sm:$0xff] %v8351_v54  ;;  %6321 = vst [vmem:[%s11428_s5 + $0x28] sm:$0x3] %v8349_v44  ;;  %v8353_v31 = vadd.f32 %v6313_v59, %v5499_v6 }
 0x755   :  { %6322 = vst [vmem:[%s11428_s5 + $0x30] sm:$0x3] %v8352_v48 }
 0x756   :  { %6323 = vst [vmem:[%s11428_s5 + $0x38] sm:$0x3] %v8353_v31 }
 0x821   :  { %v7235_v12 = vpop.f32.mrb[92].mxu0  ;;  %v7321_v17 = vpop.f32.mrb[92].mxu1 }
 0x822   :  { %v8354_v33 = vadd.f32 %v7235_v12, %v6501_v39  ;;  %v8358_v28 = vadd.f32 %v7321_v17, %v6509_v61  ;;  %v7237_v11 = vpop.f32.mrb[93].mxu0  ;;  %v7323_v13 = vpop.f32.mrb[93].mxu1 }
 0x823   :  { %v8355_v2 = vadd.f32 %v7237_v11, %v6505_v36  ;;  %v8359_v19 = vadd.f32 %v7323_v13, %v6513_v38  ;;  %v7239_v62 = vpop.f32.mrb[94].mxu0  ;;  %v7325_v58 = vpop.f32.mrb[94].mxu1 }
 0x824   :  { %8046 = vst [vmem:[%s11428_s5 + $0x40] sm:$0xff] %v8354_v33  ;;  %8048 = vst [vmem:[%s11428_s5 + $0x50] sm:$0xff] %v8358_v28  ;;  %v8356_v55 = vadd.f32 %v7239_v62, %v6501_v39  ;;  %v8360_v46 = vadd.f32 %v7325_v58, %v6509_v61  ;;  %v7241_v24 = vpop.f32.mrb[95].mxu0  ;;  %v7327_v4 = vpop.f32.mrb[95].mxu1 }
 0x825   :  { %8047 = vst [vmem:[%s11428_s5 + $0x48] sm:$0xff] %v8355_v2  ;;  %8049 = vst [vmem:[%s11428_s5 + $0x58] sm:$0xff] %v8359_v19  ;;  %v8357_v52 = vadd.f32 %v7241_v24, %v6505_v36  ;;  %v8361_v35 = vadd.f32 %v7327_v4, %v6513_v38 }
 0x826   :  { %8050 = vst [vmem:[%s11428_s5 + $0x60] sm:$0x3] %v8356_v55  ;;  %8052 = vst [vmem:[%s11428_s5 + $0x70] sm:$0x3] %v8360_v46 }
 0x827   :  { %8051 = vst [vmem:[%s11428_s5 + $0x68] sm:$0x3] %v8357_v52  ;;  %8053 = vst [vmem:[%s11428_s5 + $0x78] sm:$0x3] %v8361_v35 }
 0x828   :  { %7347 = vsyncpa [#allocation3], 1 }
 0x829   :  { %7348 = vsyncpa [#allocation5], 1 }
 0x82a   :  { %7349 = vsyncpa [#allocation8], 1 }

</bundles_post_ra>
